<compile_context>
chip_gen: v7x
topology: tpu7x:2x2x1
jax: 0.10.0
libtpu: 0.0.40
codegen_flags: <defaults>
</compile_context>

<pallas_src>
import jax
import jax.numpy as jnp
from jax import lax
from jax.experimental import pallas as pl
from jax.experimental.pallas import tpu as pltpu


def _round_up(x, m):
    return ((x + m - 1) // m) * m


def _ffn_kernel(x_ref, ln_w_ref, ln_b_ref, w1_ref, b1_ref, w2_ref, b2_ref,
                o_ref, xn_ref, acc_ref):
    h_idx = pl.program_id(1)

    @pl.when(h_idx == 0)
    def _init():
        # LayerNorm over the last dim, computed once per row tile (single reduction sweep).
        x = x_ref[...].astype(jnp.float32)
        inv_d = 1.0 / x.shape[-1]
        s = jnp.sum(x, axis=-1, keepdims=True)
        sq = jnp.sum(x * x, axis=-1, keepdims=True)
        mean = s * inv_d
        var = sq * inv_d - mean * mean
        xn = (x - mean) * lax.rsqrt(var + 1e-5)
        xn = xn * ln_w_ref[...] + ln_b_ref[...]
        xn_ref[...] = xn.astype(jnp.bfloat16)       # bf16 LHS for the MXU, reused across h tiles
        acc_ref[...] = jnp.zeros_like(acc_ref)

    # First matmul on this hidden tile: (rt, D) @ (D, th) -> (rt, th), f32 accumulate.
    h = jnp.dot(xn_ref[...], w1_ref[...], preferred_element_type=jnp.float32)
    h = h + b1_ref[...].astype(jnp.float32)

    # tanh-approx GELU (EUP slot). TODO(synk): nn.GELU() default is erf-exact; tanh approx differs by <~1e-3.
    c = 0.7978845608028654  # sqrt(2/pi)
    h = 0.5 * h * (1.0 + jnp.tanh(c * (h + 0.044715 * h * h * h)))

    # Second matmul, accumulated over hidden tiles into the f32 scratch.
    acc_ref[...] += jnp.dot(h.astype(jnp.bfloat16), w2_ref[...],
                            preferred_element_type=jnp.float32)

    @pl.when(h_idx == pl.num_programs(1) - 1)
    def _finalize():
        o_ref[...] = (acc_ref[...] + b2_ref[...].astype(jnp.float32)).astype(o_ref.dtype)


def feed_forward(x, params, *, row_tile=256, hidden_tile=1024):
    B, S, D = x.shape
    H = params["w1"].shape[1]
    assert D % 128 == 0, "dim must be a multiple of 128 lanes"
    assert row_tile % 16 == 0, "row_tile must be a multiple of 16 (bf16 sublane packing)"

    th = min(hidden_tile, H)
    assert th % 128 == 0 and H % th == 0, "hidden tile must be 128-aligned and divide hidden_dim"

    M = B * S
    # Large row tiles by default; only shrink when the whole problem is smaller than one tile.
    rt = min(row_tile, _round_up(M, 16))
    M_pad = _round_up(M, rt)

    xf = x.reshape(M, D)
    if M_pad != M:
        xf = jnp.pad(xf, ((0, M_pad - M), (0, 0)))

    # bf16 weights for the MXU (halves weight VMEM / DMA traffic); biases and LN params stay f32.
    w1 = params["w1"].astype(jnp.bfloat16)
    w2 = params["w2"].astype(jnp.bfloat16)
    ln_w = params["ln_w"].reshape(1, D).astype(jnp.float32)
    ln_b = params["ln_b"].reshape(1, D).astype(jnp.float32)
    b1 = params["b1"].reshape(1, H).astype(jnp.float32)
    b2 = params["b2"].reshape(1, D).astype(jnp.float32)

    grid = (M_pad // rt, H // th)

    cost = pl.CostEstimate(
        flops=4 * M_pad * D * H,                 # two matmuls: 2*M*D*H each
        transcendentals=M_pad * H,               # one tanh per hidden activation
        bytes_accessed=(xf.size * 4 + w1.size * 2 + w2.size * 2
                        + (b1.size + b2.size + 2 * D) * 4 + M_pad * D * 4),
    )

    out = pl.pallas_call(
        _ffn_kernel,
        out_shape=jax.ShapeDtypeStruct((M_pad, D), x.dtype),
        grid_spec=pltpu.PrefetchScalarGridSpec(
            num_scalar_prefetch=0,
            grid=grid,
            in_specs=[
                pl.BlockSpec((rt, D), lambda i, j: (i, 0)),   # x rows (constant over h -> no re-DMA)
                pl.BlockSpec((1, D), lambda i, j: (0, 0)),    # ln weight
                pl.BlockSpec((1, D), lambda i, j: (0, 0)),    # ln bias
                pl.BlockSpec((D, th), lambda i, j: (0, j)),   # w1 hidden tile
                pl.BlockSpec((1, th), lambda i, j: (0, j)),   # b1 hidden tile
                pl.BlockSpec((th, D), lambda i, j: (j, 0)),   # w2 hidden tile
                pl.BlockSpec((1, D), lambda i, j: (0, 0)),    # b2
            ],
            out_specs=pl.BlockSpec((rt, D), lambda i, j: (i, 0)),
            scratch_shapes=[
                pltpu.VMEM((rt, D), jnp.bfloat16),            # cached LayerNorm output (bf16 LHS)
                pltpu.VMEM((rt, D), jnp.float32),             # f32 output accumulator
            ],
        ),
        compiler_params=pltpu.CompilerParams(
            dimension_semantics=("parallel", "arbitrary"),
            vmem_limit_bytes=48 * 1024 * 1024,                # explicit budget (safe on v7x's 64 MiB)
        ),
        cost_estimate=cost,
    )(xf, ln_w, ln_b, w1, b1, w2, b2)

    return out[:M].reshape(B, S, D)


def init_params(key, dim, hidden_dim):
    k1, k2, k3, k4 = jax.random.split(key, 4)
    scale1 = 1.0 / jnp.sqrt(dim)
    scale2 = 1.0 / jnp.sqrt(hidden_dim)
    return {
        "ln_w": jnp.ones((dim,), jnp.float32),
        "ln_b": jnp.zeros((dim,), jnp.float32),
        # Linear weights stored as (in, out) so the kernel does x @ W + b,
        # equivalent to PyTorch's x @ W.T with W of shape (out, in).
        "w1": jax.random.uniform(k1, (dim, hidden_dim), jnp.float32, -scale1, scale1),
        "b1": jax.random.uniform(k2, (hidden_dim,), jnp.float32, -scale1, scale1),
        "w2": jax.random.uniform(k3, (hidden_dim, dim), jnp.float32, -scale2, scale2),
        "b2": jax.random.uniform(k4, (dim,), jnp.float32, -scale2, scale2),
    }


def feed_forward_ref(x, params):
    # Pure f32 reference with exact (erf) GELU, matching the PyTorch module.
    mean = jnp.mean(x, axis=-1, keepdims=True)
    var = jnp.mean((x - mean) ** 2, axis=-1, keepdims=True)
    xn = (x - mean) / jnp.sqrt(var + 1e-5)
    xn = xn * params["ln_w"] + params["ln_b"]
    h = xn @ params["w1"] + params["b1"]
    h = jax.nn.gelu(h, approximate=False)
    return h @ params["w2"] + params["b2"]


if __name__ == "__main__":
    # Small but lane/tile-friendly shapes: dim and hidden are 128-aligned, 2 row tiles x 2 hidden tiles.
    batch, seq, dim, hidden = 2, 256, 128, 512

    key = jax.random.PRNGKey(0)
    kx, kp = jax.random.split(key)
    x = jax.random.normal(kx, (batch, seq, dim), jnp.float32)
    params = init_params(kp, dim, hidden)

    out = feed_forward(x, params, row_tile=256, hidden_tile=256)
    out = jax.block_until_ready(out)

    ref = feed_forward_ref(x, params)
    assert out.shape == (batch, seq, dim)
    # bf16 matmul inputs + tanh-GELU vs f32/erf reference -> loosened tolerance.
    assert jnp.allclose(out, ref, atol=3e-2, rtol=3e-2), (
        "max abs diff = %f" % float(jnp.max(jnp.abs(out - ref))))

    print("KERNEL_OK")
</pallas_src>

<mosaic_0001>
module attributes {stable_mosaic.version = 11 : i64} {
  func.func @_ffn_kernel(%arg0: i32, %arg1: i32, %arg2: memref<256x128xf32, #tpu.memory_space<vmem>>, %arg3: memref<1x128xf32, #tpu.memory_space<vmem>>, %arg4: memref<1x128xf32, #tpu.memory_space<vmem>>, %arg5: memref<128x256xbf16, #tpu.memory_space<vmem>>, %arg6: memref<1x256xf32, #tpu.memory_space<vmem>>, %arg7: memref<256x128xbf16, #tpu.memory_space<vmem>>, %arg8: memref<1x128xf32, #tpu.memory_space<vmem>>, %arg9: memref<256x128xf32, #tpu.memory_space<vmem>>, %arg10: memref<256x128xbf16, #tpu.memory_space<vmem>>, %arg11: memref<256x128xf32, #tpu.memory_space<vmem>>) attributes {dimension_semantics = [#tpu.dimension_semantics<parallel>, #tpu.dimension_semantics<arbitrary>], iteration_bounds = array<i64: 2, 2>, scalar_prefetch = 0 : i64, scratch_operands = 2 : i64, tpu.core_type = #tpu.core_type<tc>, window_params = [{transform_indices = @transform_0, window_bounds = array<i64: 256, 128>}, {pipeline_mode = #tpu.pipeline_mode<synchronous>, transform_indices = @transform_1, window_bounds = array<i64: 1, 128>}, {pipeline_mode = #tpu.pipeline_mode<synchronous>, transform_indices = @transform_2, window_bounds = array<i64: 1, 128>}, {transform_indices = @transform_3, window_bounds = array<i64: 128, 256>}, {transform_indices = @transform_4, window_bounds = array<i64: 1, 256>}, {transform_indices = @transform_5, window_bounds = array<i64: 256, 128>}, {pipeline_mode = #tpu.pipeline_mode<synchronous>, transform_indices = @transform_6, window_bounds = array<i64: 1, 128>}, {transform_indices = @transform_7, window_bounds = array<i64: 256, 128>}]} {
    %c0_i32 = arith.constant 0 : i32
    %0 = arith.cmpi eq, %arg1, %c0_i32 : i32
    %1 = arith.extui %0 : i1 to i32
    %c0_i32_0 = arith.constant 0 : i32
    %2 = arith.cmpi ne, %1, %c0_i32_0 : i32
    scf.if %2 {
      %c0_18 = arith.constant 0 : index
      %c0_19 = arith.constant 0 : index
      %31 = vector.load %arg2[%c0_18, %c0_19] : memref<256x128xf32, #tpu.memory_space<vmem>>, vector<256x128xf32>
      %cst_20 = arith.constant dense<0.000000e+00> : vector<256xf32>
      %32 = vector.multi_reduction <add>, %31, %cst_20 [1] : vector<256x128xf32> to vector<256xf32>
      %33 = vector.shape_cast %32 : vector<256xf32> to vector<256x1xf32>
      %34 = arith.mulf %31, %31 : vector<256x128xf32>
      %cst_21 = arith.constant dense<0.000000e+00> : vector<256xf32>
      %35 = vector.multi_reduction <add>, %34, %cst_21 [1] : vector<256x128xf32> to vector<256xf32>
      %36 = vector.shape_cast %35 : vector<256xf32> to vector<256x1xf32>
      %cst_22 = arith.constant 7.812500e-03 : f32
      %37 = vector.broadcast %cst_22 : f32 to vector<256x1xf32>
      %38 = arith.mulf %33, %37 : vector<256x1xf32>
      %cst_23 = arith.constant 7.812500e-03 : f32
      %39 = vector.broadcast %cst_23 : f32 to vector<256x1xf32>
      %40 = arith.mulf %36, %39 : vector<256x1xf32>
      %41 = arith.mulf %38, %38 : vector<256x1xf32>
      %42 = arith.subf %40, %41 : vector<256x1xf32>
      %43 = vector.broadcast %38 : vector<256x1xf32> to vector<256x128xf32>
      %44 = arith.subf %31, %43 : vector<256x128xf32>
      %cst_24 = arith.constant 9.99999974E-6 : f32
      %45 = vector.broadcast %cst_24 : f32 to vector<256x1xf32>
      %46 = arith.addf %42, %45 : vector<256x1xf32>
      %47 = math.rsqrt %46 : vector<256x1xf32>
      %48 = vector.broadcast %47 : vector<256x1xf32> to vector<256x128xf32>
      %49 = arith.mulf %44, %48 : vector<256x128xf32>
      %c0_25 = arith.constant 0 : index
      %c0_26 = arith.constant 0 : index
      %50 = vector.load %arg3[%c0_25, %c0_26] : memref<1x128xf32, #tpu.memory_space<vmem>>, vector<1x128xf32>
      %51 = vector.broadcast %50 : vector<1x128xf32> to vector<256x128xf32>
      %52 = arith.mulf %49, %51 : vector<256x128xf32>
      %c0_27 = arith.constant 0 : index
      %c0_28 = arith.constant 0 : index
      %53 = vector.load %arg4[%c0_27, %c0_28] : memref<1x128xf32, #tpu.memory_space<vmem>>, vector<1x128xf32>
      %54 = vector.broadcast %53 : vector<1x128xf32> to vector<256x128xf32>
      %55 = arith.addf %52, %54 : vector<256x128xf32>
      %56 = arith.truncf %55 : vector<256x128xf32> to vector<256x128xbf16>
      %c0_29 = arith.constant 0 : index
      %c0_30 = arith.constant 0 : index
      %57 = vector.load %arg10[%c0_29, %c0_30] : memref<256x128xbf16, #tpu.memory_space<vmem>>, vector<256x128xbf16>
      tpu.vector_store %arg10[%c0_29, %c0_30], %56 {strides = array<i32>} : memref<256x128xbf16, #tpu.memory_space<vmem>>, vector<256x128xbf16>,
      %cst_31 = arith.constant 0.000000e+00 : f32
      %58 = vector.broadcast %cst_31 : f32 to vector<256x128xf32>
      %c0_32 = arith.constant 0 : index
      %c0_33 = arith.constant 0 : index
      %59 = vector.load %arg11[%c0_32, %c0_33] : memref<256x128xf32, #tpu.memory_space<vmem>>, vector<256x128xf32>
      tpu.vector_store %arg11[%c0_32, %c0_33], %58 {strides = array<i32>} : memref<256x128xf32, #tpu.memory_space<vmem>>, vector<256x128xf32>,
    } else {
    }
    %c0 = arith.constant 0 : index
    %c0_1 = arith.constant 0 : index
    %3 = vector.load %arg10[%c0, %c0_1] : memref<256x128xbf16, #tpu.memory_space<vmem>>, vector<256x128xbf16>
    %c0_2 = arith.constant 0 : index
    %c0_3 = arith.constant 0 : index
    %4 = vector.load %arg5[%c0_2, %c0_3] : memref<128x256xbf16, #tpu.memory_space<vmem>>, vector<128x256xbf16>
    %cst = arith.constant dense<0.000000e+00> : vector<256x256xf32>
    %5 = tpu.matmul %3, %4, %cst {dimension_numbers = #tpu.dot_dimension_numbers<[1], [0], [0], [1], [0, 0, 1, 1], [], []>} : vector<256x128xbf16>, vector<128x256xbf16>, vector<256x256xf32> -> vector<256x256xf32>
    %c0_4 = arith.constant 0 : index
    %c0_5 = arith.constant 0 : index
    %6 = vector.load %arg6[%c0_4, %c0_5] : memref<1x256xf32, #tpu.memory_space<vmem>>, vector<1x256xf32>
    %7 = vector.broadcast %6 : vector<1x256xf32> to vector<256x256xf32>
    %8 = arith.addf %5, %7 : vector<256x256xf32>
    %cst_6 = arith.constant 5.000000e-01 : f32
    %9 = vector.broadcast %cst_6 : f32 to vector<256x256xf32>
    %10 = arith.mulf %9, %8 : vector<256x256xf32>
    %cst_7 = arith.constant 4.471500e-02 : f32
    %11 = vector.broadcast %cst_7 : f32 to vector<256x256xf32>
    %12 = arith.mulf %11, %8 : vector<256x256xf32>
    %13 = arith.mulf %12, %8 : vector<256x256xf32>
    %14 = arith.mulf %13, %8 : vector<256x256xf32>
    %15 = arith.addf %8, %14 : vector<256x256xf32>
    %cst_8 = arith.constant 0.797884583 : f32
    %16 = vector.broadcast %cst_8 : f32 to vector<256x256xf32>
    %17 = arith.mulf %16, %15 : vector<256x256xf32>
    %18 = math.tanh %17 : vector<256x256xf32>
    %cst_9 = arith.constant 1.000000e+00 : f32
    %19 = vector.broadcast %cst_9 : f32 to vector<256x256xf32>
    %20 = arith.addf %19, %18 : vector<256x256xf32>
    %21 = arith.mulf %10, %20 : vector<256x256xf32>
    %c0_10 = arith.constant 0 : index
    %c0_11 = arith.constant 0 : index
    %22 = vector.load %arg11[%c0_10, %c0_11] : memref<256x128xf32, #tpu.memory_space<vmem>>, vector<256x128xf32>
    %23 = arith.truncf %21 : vector<256x256xf32> to vector<256x256xbf16>
    %c0_12 = arith.constant 0 : index
    %c0_13 = arith.constant 0 : index
    %24 = vector.load %arg7[%c0_12, %c0_13] : memref<256x128xbf16, #tpu.memory_space<vmem>>, vector<256x128xbf16>
    %cst_14 = arith.constant dense<0.000000e+00> : vector<256x128xf32>
    %25 = tpu.matmul %23, %24, %cst_14 {dimension_numbers = #tpu.dot_dimension_numbers<[1], [0], [0], [1], [0, 0, 1, 1], [], []>} : vector<256x256xbf16>, vector<256x128xbf16>, vector<256x128xf32> -> vector<256x128xf32>
    %26 = arith.addf %22, %25 : vector<256x128xf32>
    %c0_15 = arith.constant 0 : index
    %c0_16 = arith.constant 0 : index
    %27 = vector.load %arg11[%c0_15, %c0_16] : memref<256x128xf32, #tpu.memory_space<vmem>>, vector<256x128xf32>
    tpu.vector_store %arg11[%c0_15, %c0_16], %26 {strides = array<i32>} : memref<256x128xf32, #tpu.memory_space<vmem>>, vector<256x128xf32>,
    %c1_i32 = arith.constant 1 : i32
    %28 = arith.cmpi eq, %arg1, %c1_i32 : i32
    %29 = arith.extui %28 : i1 to i32
    %c0_i32_17 = arith.constant 0 : i32
    %30 = arith.cmpi ne, %29, %c0_i32_17 : i32
    scf.if %30 {
      %c0_18 = arith.constant 0 : index
      %c0_19 = arith.constant 0 : index
      %31 = vector.load %arg11[%c0_18, %c0_19] : memref<256x128xf32, #tpu.memory_space<vmem>>, vector<256x128xf32>
      %c0_20 = arith.constant 0 : index
      %c0_21 = arith.constant 0 : index
      %32 = vector.load %arg8[%c0_20, %c0_21] : memref<1x128xf32, #tpu.memory_space<vmem>>, vector<1x128xf32>
      %33 = vector.broadcast %32 : vector<1x128xf32> to vector<256x128xf32>
      %34 = arith.addf %31, %33 : vector<256x128xf32>
      %c0_22 = arith.constant 0 : index
      %c0_23 = arith.constant 0 : index
      %35 = vector.load %arg9[%c0_22, %c0_23] : memref<256x128xf32, #tpu.memory_space<vmem>>, vector<256x128xf32>
      tpu.vector_store %arg9[%c0_22, %c0_23], %34 {strides = array<i32>} : memref<256x128xf32, #tpu.memory_space<vmem>>, vector<256x128xf32>,
    } else {
    }
    return
  }
  func.func @transform_0(%arg0: i32, %arg1: i32) -> (i32, i32) {
    %c0_i32 = arith.constant 0 : i32
    %c0_i32_0 = arith.constant 0 : i32
    return %arg0, %c0_i32 : i32, i32
  }
  func.func @transform_1(%arg0: i32, %arg1: i32) -> (i32, i32) {
    %c0_i32 = arith.constant 0 : i32
    %c0_i32_0 = arith.constant 0 : i32
    %c0_i32_1 = arith.constant 0 : i32
    return %c0_i32, %c0_i32_0 : i32, i32
  }
  func.func @transform_2(%arg0: i32, %arg1: i32) -> (i32, i32) {
    %c0_i32 = arith.constant 0 : i32
    %c0_i32_0 = arith.constant 0 : i32
    %c0_i32_1 = arith.constant 0 : i32
    return %c0_i32, %c0_i32_0 : i32, i32
  }
  func.func @transform_3(%arg0: i32, %arg1: i32) -> (i32, i32) {
    %c0_i32 = arith.constant 0 : i32
    %c0_i32_0 = arith.constant 0 : i32
    return %c0_i32, %arg1 : i32, i32
  }
  func.func @transform_4(%arg0: i32, %arg1: i32) -> (i32, i32) {
    %c0_i32 = arith.constant 0 : i32
    %c0_i32_0 = arith.constant 0 : i32
    return %c0_i32, %arg1 : i32, i32
  }
  func.func @transform_5(%arg0: i32, %arg1: i32) -> (i32, i32) {
    %c0_i32 = arith.constant 0 : i32
    %c0_i32_0 = arith.constant 0 : i32
    return %arg1, %c0_i32 : i32, i32
  }
  func.func @transform_6(%arg0: i32, %arg1: i32) -> (i32, i32) {
    %c0_i32 = arith.constant 0 : i32
    %c0_i32_0 = arith.constant 0 : i32
    %c0_i32_1 = arith.constant 0 : i32
    return %c0_i32, %c0_i32_0 : i32, i32
  }
  func.func @transform_7(%arg0: i32, %arg1: i32) -> (i32, i32) {
    %c0_i32 = arith.constant 0 : i32
    %c0_i32_0 = arith.constant 0 : i32
    return %arg0, %c0_i32 : i32, i32
  }
}

</mosaic_0001>

<bundles_post_ra>
// kernel: tpu_custom_call.1
= control target key start
LH: loop header
LB: loop body
LE: loop exit
PB: predicated region body
PF: predicated region fallthrough
CT: control target
= control target key end

     0   :  { %s5227_s0 = inlined_call_operand.hbm [shape: f32[512,128], index: 0, kind: input, shape index: {}]   ;;  %s5228_s1 = inlined_call_operand.vmem [shape: f32[1,128], index: 1, kind: input, shape index: {}]   ;;  %s5229_s2 = inlined_call_operand.vmem [shape: f32[1,128], index: 2, kind: input, shape index: {}]   ;;  %s5230_s3 = inlined_call_operand.hbm [shape: bf16[128,512], index: 3, kind: input, shape index: {}]   ;;  %s5231_s4 = inlined_call_operand.vmem [shape: f32[1,512], index: 4, kind: input, shape index: {}]   ;;  %s5232_s5 = inlined_call_operand.hbm [shape: bf16[512,128], index: 5, kind: input, shape index: {}]   ;;  %s5233_s6 = inlined_call_operand.vmem [shape: f32[1,128], index: 6, kind: input, shape index: {}]   ;;  %s5234_s7 = inlined_call_operand.hbm [shape: f32[512,128], index: 7, kind: output, shape index: {}]  }
   0x1   :  { %5272 = sst [smem:[#allocation49_spill]] %s5228_s1 }
   0x2   :  { %5273 = sst [smem:[#allocation50_spill]] %s5229_s2 }
   0x3   :  { %5274 = sst [smem:[#allocation51_spill]] %s5230_s3 }
   0x4   :  { %5275 = sst [smem:[#allocation52_spill]] %s5233_s6 }
   0x5   :  { %5276 = sst [smem:[#allocation53_spill]] %s5234_s7 }
   0x6   :  { %12 = vsyncpa [#allocation5], 0 }
   0x7   :  { %14 = vsyncpa [#allocation5 + $0x1], 0 }
   0x8   :  { %15 = vsyncpa [#allocation8], 0 }
   0x9   :  { %17 = vsyncpa [#allocation8 + $0x1], 0 }
   0xa   :  { %18 = vsyncpa [#allocation6], 0 }
   0xb   :  { %20 = vsyncpa [#allocation6 + $0x1], 0  ;;  %s3378_s24 = smov 0   ;;  %s3380_s25 = smov 0  }
   0xc   :  { %s3382_s26 = smov 0   ;;  %s3384_s27 = smov 0  }
   0xd   :  { %s3386_s28 = smov 0   ;;  %s3388_s29 = smov 0  }
   0xe   :  { %s3390_s30 = smov 0   ;;  %s3392_s8 = smov 0  }
   0xf   :  { %s3394_s9 = smov 0   ;;  %s3396_s10 = smov 0  }
  0x10   :  { %s3398_s11 = smov 0  }
  0x11 LB: > { %5277 = sst [smem:[#allocation14_spill]] %s3291_s26  ;;  %s35_s12 = sadd.s32 1, %s3315_s9  ;;  %s3323_s11 = sphi %s3398_s11, %s26_s11   ;;  %s3319_s10 = sphi %s3396_s10, %s5397_s10   ;;  %s3315_s9 = sphi %s3394_s9, %s5403_s9   ;;  %s3311_s8 = sphi %s3392_s8, %s5395_s8   ;;  %s3307_s30 = sphi %s3390_s30, %s5402_s30   ;;  %s3303_s29 = sphi %s3388_s29, %s5394_s29   ;;  %s3299_s28 = sphi %s3386_s28, %s5401_s28   ;;  %s3295_s27 = sphi %s3384_s27, %s5400_s27   ;;  %s3291_s26 = sphi %s3382_s26, %s5392_s26   ;;  %s3287_s25 = sphi %s3380_s25, %s5399_s25   ;;  %s3283_s24 = sphi %s3378_s24, %s5398_s24  }
  0x12   : > { %5278 = sst [smem:[#allocation15_spill]] %s3303_s29  ;;  %p5238_p0 = scmp.eq.s32.totalorder %s3323_s11, 0 }
  0x13   : > { %5279 = sst [smem:[#allocation16_spill]] %s3311_s8  ;;  %p3435_p1 = scmp.ge.s32.totalorder %s35_s12, 2 }
  0x14   : > { %5280 = sst [smem:[#allocation17_spill]] %s3319_s10  ;;  %s113_s14 = sadd.s32 1, %s3291_s26 }
  0x15   : > { %p120_p2 = scmp.ne.s32.totalorder %s3291_s26, %s3287_s25  ;;  %s5405_s12 = smov (%p3435_p1, %s35_s12), 0 }
  0x16   : > { %5282 = sst [smem:[#allocation18_spill]] %s5405_s12  ;;  %s110_s15 = ssub.s32 %s3315_s9, %s5405_s12 }
  0x17   : > { %p122_p4 = por %p120_p2, %p5238_p0  ;;  %p5237_p5 = scmp.lt.s32.totalorder %s3323_s11, 4 }
  0x18   : > { %p111_p6 = scmp.eq.s32.totalorder %s110_s15, 0  ;;  %s279_s16 = sand.u32 1, %s3323_s11  }
  0x19   : > { %s281_s18 = sand.u32 1, %s3291_s26   ;;  %s2633_s20 = sshll.u32 %s3315_s9, 7 }
  0x1a   : > { %s3455_s17 = scalar_select %p111_p6, %s3291_s26, %s113_s14  }
  0x1b   : > { %s3458_s19 = sshll.u32 %s281_s18, 7  ;;  %s5284_s3 = sld [smem:[#allocation51_spill]] }
  0x1c   : > { %5283 = sst [smem:[#allocation19_spill]] %s3455_s17  ;;  %s283_s12 = scalar_lea.vmem [#allocation7], %s3458_s19 }
  0x1d   : > { %s290_s7 = sshll.u32 %s283_s12, 4  ;;  %p3469_p7 = pnand %p5237_p5, %p122_p4  ;;  %s3473_s7 = int_to_ptr.vmem [resolvable:$true] %s290_s7 }
  0x1e   : > { %s3476_s15 = scalar_lea.sflag [#allocation8], %s279_s16 }
  0x1f   : > { %p5240_p10 = pneg %p3469_p7 }
  0x21   : > { %s3464_s23 = scalar_lea.hbm %s5284_s3, %s2633_s20  ;;  %s3112_s21 = scalar_lea.hbm %s5284_s3, 4096 }
  0x22   : > { %s3107_s18 = scalar_lea.hbm %s3464_s23, 2048  ;;  %p3113_p13 = scmp.lt.u32.totalorder %s3464_s23, %s5284_s3 }
  0x23   : > { %p3108_p9 = scmp.ne.s32.totalorder %s3464_s23, %s3107_s18  ;;  %p3114_p2 = scmp.lt.u32.totalorder %s3112_s21, %s3107_s18 }
  0x24   : > { %p3116_p6 = scmp.lt.u32.totalorder %s3107_s18, %s3464_s23 }
  0x25   : > { %p3110_p11 = pnand %p5240_p10, %p3108_p9  ;;  %p3115_p4 = por %p3114_p2, %p3113_p13 }
  0x27   : > { %p3111_p12 = pneg %p3110_p11  ;;  %p3117_p5 = por %p3116_p6, %p3115_p4 }
  0x29   : > { %p3118_p3 = pnand %p3117_p5, %p3111_p12 }
  0x2b   : > { %3121 = shalt.err (!%p3118_p3)
}
  0x2c   : > { %s3122_s16 = scalar_lea.vmem %s3473_s7, 2048  ;;  %s3325_s12 = smov [#allocation7]  }
  0x2d   : > { %p3123_p9 = scmp.ne.s32.totalorder %s3473_s7, %s3122_s16  ;;  %s3127_s20 = sshll.u32 %s3325_s12, 4  ;;  %s3128_s20 = int_to_ptr.vmem [resolvable:$false] %s3127_s20 }
  0x2e   : > { %s3129_s17 = scalar_lea.vmem %s3128_s20, 4096  ;;  %p3130_p8 = scmp.lt.s32.totalorder %s3473_s7, %s3128_s20 }
  0x2f   : > { %p3125_p11 = pnand %p3123_p9, %p5240_p10  ;;  %p3131_p13 = scmp.lt.s32.totalorder %s3129_s17, %s3122_s16 }
  0x31   : > { %p3126_p0 = pneg %p3125_p11  ;;  %p3132_p2 = por %p3131_p13, %p3130_p8 }
  0x33   : > { %p3133_p4 = pnand %p3132_p2, %p3126_p0 }
  0x35   : > { %3136 = shalt.err (!%p3133_p4)
}
  0x36   : > { %s3326_s18 = smov 256   ;;  %s5239_s21 = smov 128  }
  0x37   : > { %s5241_s22 = smov 8   ;;  %p327_p0 = scmp.lt.s32.totalorder %s3323_s11, 5 }
  0x38   : > { %2762 = dma.hbm_to_vmem [thread:$0]  (!%p3469_p7), %s3464_s23, 2048, %s3473_s7, %s3476_s15, %s3326_s18, %s5239_s21, %s5241_s22  }
  0x39   : > { %p5286_p3 = scmp.ge.s32.totalorder %s3323_s11, 1  ;;  %s3514_s12 = sadd.s32 4294967295, %s3323_s11  }
  0x3a   : > { %s2572_s20 = sadd.s32 4294967294, %s3323_s11   ;;  %s38_s17 = sadd.s32 1, %s3319_s10 }
  0x3b   : > { %p3509_p5 = pnand %p5286_p3, %p327_p0  ;;  %s45_s3 = sadd.s32 1, %s3303_s29 }
  0x3c   : > { %s5407_s17 = smov (!%p3435_p1, %s38_s17), %s3319_s10  ;;  %p52_p8 = scmp.ne.s32.totalorder %s3303_s29, %s3299_s28 }
  0x3d   : > { %s5287_s16 = scalar_select %p3509_p5, 1, 0 }
  0x3e   : > { %p58_p12 = scmp.ne.s32.totalorder %s3299_s28, %s3295_s27  ;;  %p40_p6 = scmp.ge.s32.totalorder %s5407_s17, 2 }
  0x3f   : > { %p59_p9 = scmp.eq.s32.totalorder %s3514_s12, 0  ;;  %p5288_p11 = scmp.eq.s32.totalorder %s3323_s11, 0 }
  0x40   : > { %p223_p2 = scmp.eq.s32.totalorder %s3514_s12, 3  ;;  %s5409_s17 = smov (%p40_p6, %s5407_s17), 0 }
  0x41   : > { %p3529_p13 = por %p5288_p11, %p52_p8  ;;  %5290 = sst [smem:[#allocation20_spill]] %s5409_s17 }
  0x42   : > { %p3539_p1 = por %p59_p9, %p58_p12  ;;  %p5292_p4 = scmp.ne.s32.totalorder %s3287_s25, %s3283_s24 }
  0x43   : > { %s42_s18 = ssub.s32 %s3319_s10, %s5409_s17  ;;  %p3552_p3 = por %p223_p2, %p52_p8 }
  0x44   : > { %s5291_s13 = scalar_select %p3539_p1, 1, 0 }
  0x45   : > { %p3546_p0 = por %p5292_p4, %p59_p9  ;;  %p43_p11 = scmp.eq.s32.totalorder %s42_s18, 0 }
  0x46   : > { %s5294_s21 = scalar_select %p3552_p3, 1, 0 }
  0x47   : > { %s5293_s23 = scalar_select %p3546_p0, 1, 0 }
  0x48   : > { %p229_p10 = scmp.eq.s32.totalorder %s2572_s20, 3  ;;  %s258_s22 = sand.u32 1, %s3303_s29  }
  0x49   : > { %s2632_s26 = sshll.u32 %s3319_s10, 12  ;;  %s2575_s24 = sshll.u32 %s258_s22, 8 }
  0x4a   : > { %s3559_s8 = scalar_select %p43_p11, %s3303_s29, %s45_s3  }
  0x4b   : > { %p3564_p6 = por %p229_p10, %p58_p12  ;;  %s3571_s17 = scalar_lea.hbm %s5227_s0, %s2632_s26 }
  0x4c   : > { %5295 = sst [smem:[#allocation21_spill]] %s3559_s8  ;;  %p5297_p8 = scmp.lt.s32.totalorder %s3323_s11, 4 }
  0x4d   : > { %s5296_s6 = scalar_select %p3564_p6, 1, 0 }
  0x4e   : > { %p3577_p9 = pnand %p5297_p8, %p3529_p13  ;;  %s262_s20 = scalar_lea.vmem [#allocation4], %s2575_s24 }
  0x4f   : > { %s269_s18 = sshll.u32 %s262_s20, 4  ;;  %s3583_s10 = scalar_lea.sflag [#allocation5], %s258_s22  ;;  %s3581_s18 = int_to_ptr.vmem [resolvable:$true] %s269_s18 }
  0x50   : > { %s3137_s1 = scalar_lea.hbm %s3571_s17, 4096  ;;  %p3139_p12 = pneg %p3577_p9 }
  0x51   : > { %p3138_p10 = scmp.ne.s32.totalorder %s3571_s17, %s3137_s1  ;;  %s3142_s7 = scalar_lea.hbm %s5227_s0, 8192 }
  0x52   : > { %p3143_p13 = scmp.lt.u32.totalorder %s3571_s17, %s5227_s0  ;;  %p3144_p11 = scmp.lt.u32.totalorder %s3142_s7, %s3137_s1 }
  0x53   : > { %p3140_p2 = pnand %p3139_p12, %p3138_p10  ;;  %p3146_p6 = scmp.lt.u32.totalorder %s3137_s1, %s3571_s17 }
  0x54   : > { %p3145_p8 = por %p3144_p11, %p3143_p13 }
  0x55   : > { %p3141_p4 = pneg %p3140_p2 }
  0x56   : > { %p3147_p3 = por %p3146_p6, %p3145_p8 }
  0x58   : > { %p3148_p0 = pnand %p3147_p3, %p3141_p4 }
  0x5a   : > { %3151 = shalt.err (!%p3148_p0)
}
  0x5b   : > { %s3152_s22 = scalar_lea.vmem %s3581_s18, 4096  ;;  %s3329_s24 = smov [#allocation4]  }
  0x5c   : > { %p3153_p10 = scmp.ne.s32.totalorder %s3581_s18, %s3152_s22  ;;  %s3157_s20 = sshll.u32 %s3329_s24, 4  ;;  %s3158_s20 = int_to_ptr.vmem [resolvable:$false] %s3157_s20 }
  0x5d   : > { %s3159_s29 = scalar_lea.vmem %s3158_s20, 8192  ;;  %p3160_p5 = scmp.lt.s32.totalorder %s3581_s18, %s3158_s20 }
  0x5e   : > { %p3155_p2 = pnand %p3153_p10, %p3139_p12  ;;  %p3161_p13 = scmp.lt.s32.totalorder %s3159_s29, %s3152_s22 }
  0x60   : > { %p3156_p1 = pneg %p3155_p2  ;;  %p3162_p11 = por %p3161_p13, %p3160_p5 }
  0x62   : > { %p3163_p6 = pnand %p3162_p11, %p3156_p1 }
  0x64   : > { %3166 = shalt.err (!%p3163_p6)
}
  0x65   : > { %s5299_s8 = smov 8   ;;  %s5300_s1 = smov 128  }
  0x66   : > { %2759 = dma.hbm_to_vmem [thread:$0]  (!%p3577_p9), %s3571_s17, 4096, %s3581_s18, %s3583_s10, %s5300_s1, %s5300_s1, %s5299_s8  }
  0x67   : > { %s2634_s2 = sshll.u32 %s3315_s9, 11  ;;  %s312_s26 = scalar_lea.vmem [#allocation9], %s3458_s19 }
  0x68   : > { %s319_s7 = sshll.u32 %s312_s26, 4  ;;  %s3619_s20 = scalar_lea.hbm %s5232_s5, %s2634_s2  ;;  %s3621_s7 = int_to_ptr.vmem [resolvable:$true] %s319_s7 }
  0x69   : > { %s3167_s3 = scalar_lea.hbm %s3619_s20, 2048  ;;  %p5301_p1 = pneg %p3469_p7 }
  0x6a   : > { %p3168_p5 = scmp.ne.s32.totalorder %s3619_s20, %s3167_s3  ;;  %s3172_s17 = scalar_lea.hbm %s5232_s5, 4096 }
  0x6b   : > { %p3173_p9 = scmp.lt.u32.totalorder %s3619_s20, %s5232_s5  ;;  %p3174_p12 = scmp.lt.u32.totalorder %s3172_s17, %s3167_s3 }
  0x6c   : > { %p3170_p0 = pnand %p3168_p5, %p5301_p1  ;;  %p3176_p8 = scmp.lt.u32.totalorder %s3167_s3, %s3619_s20 }
  0x6d   : > { %p3175_p4 = por %p3174_p12, %p3173_p9 }
  0x6e   : > { %p3171_p3 = pneg %p3170_p0 }
  0x6f   : > { %p3177_p10 = por %p3176_p8, %p3175_p4 }
  0x71   : > { %p3178_p2 = pnand %p3177_p10, %p3171_p3 }
  0x73   : > { %3181 = shalt.err (!%p3178_p2)
}
  0x74   : > { %s3182_s8 = scalar_lea.vmem %s3621_s7, 2048  ;;  %p5302_p11 = pmov %p5301_p1 }
  0x75   : > { %p3183_p13 = scmp.ne.s32.totalorder %s3621_s7, %s3182_s8  ;;  %s3330_s1 = smov [#allocation9]  }
  0x76   : > { %s3187_s2 = sshll.u32 %s3330_s1, 4  ;;  %s3188_s2 = int_to_ptr.vmem [resolvable:$false] %s3187_s2 }
  0x77   : > { %p3185_p6 = pnand %p3183_p13, %p5302_p11  ;;  %s3189_s26 = scalar_lea.vmem %s3188_s2, 4096 }
  0x78   : > { %p3190_p1 = scmp.lt.s32.totalorder %s3621_s7, %s3188_s2  ;;  %p3191_p0 = scmp.lt.s32.totalorder %s3189_s26, %s3182_s8 }
  0x79   : > { %p3186_p5 = pneg %p3185_p6 }
  0x7a   : > { %p3192_p9 = por %p3191_p0, %p3190_p1 }
  0x7c   : > { %p3193_p12 = pnand %p3192_p9, %p3186_p5 }
  0x7e   : > { %3196 = shalt.err (!%p3193_p12)
}
  0x7f   : > { %s3331_s24 = smov 64   ;;  %s3332_s22 = smov 4  }
  0x80   : > { %2765 = dma.hbm_to_vmem [thread:$0]  (!%p3469_p7), %s3619_s20, 2048, %s3621_s7, %s3476_s15, %s3331_s24, %s3331_s24, %s3332_s22  }
  0x81   : > { %p5303_p3 = scmp.ne.s32.totalorder %s5287_s16, 0 }
  0x82   : > { %s3650_s3 = sand.u32 (!%p5303_p3), 1, %s3299_s28   ;;  %p5304_p4 = scmp.ne.s32.totalorder (!%p5303_p3), %s5291_s13, 0 }
  0x83   : > { %331 = sbr.rel (%p5303_p3) target bundleno = 1146 (0x47a), region = 48  ;;  %s2585_s10 = sshll.u32 (!%p5303_p3), %s3650_s3, 8 }
  0x84   : > { %s334_s19 = scalar_lea.sflag (!%p5303_p3), [#allocation5], %s3650_s3  ;;  %s3654_s17 = scalar_lea.vmem (!%p5303_p3), [#allocation4], %s2585_s10 }
  0x8a   : > { %3270 = dma.done.wait (%p5304_p4), %s334_s19, 4096  }
  0x8b   : > { %3272 = vsyncadd (%p5304_p4), %s334_s19, 4294963200  ;;  %s342_s14 = sand.u32 1, %s3514_s12   ;;  %s344_s15 = sand.u32 1, %s3287_s25  }
  0x8c   : > { %s2586_s16 = sshll.u32 %s344_s15, 7  ;;  %s343_s7 = scalar_lea.sflag [#allocation8], %s342_s14 }
  0x8d   : > { %s3662_s20 = scalar_lea.vmem [#allocation7], %s2586_s16  ;;  %p5305_p7 = scmp.ne.s32.totalorder %s5293_s23, 0 }
  0x8f   : > { %3274 = dma.done.wait (%p5305_p7), %s343_s7, 4096  }
  0x90   : > { %3276 = vsyncadd (%p5305_p7), %s343_s7, 4294963200  ;;  %s2589_s18 = sshll.u32 %s3307_s30, 1  ;;  %s3675_s8 = scalar_lea.vmem [#allocation9], %s2586_s16 }
  0x91   : > { %p403_p8 = scmp.lt.s32.totalorder %s2589_s18, 3  ;;  %s3677_s1 = scalar_lea.vmem [#allocation10], %s2585_s10 }
  0x92   : > { %p2590_p10 = scmp.ne.s32.totalorder %s3307_s30, 0 }
  0x93   : > { %s5411_s18 = smov (!%p403_p8, %s2589_s18), 3 }
  0x94   : > { %s405_s12 = scalar_lea.vmem %s5231_s4, %s5411_s18  ;;  %413 = sbr.rel (%p2590_p10) target bundleno = 454 (0x1c6), region = 64 }
  0x9b   : > { %v3681_v0 = vld [vmem:[%s3654_s17 + $0x10] sm:$0xff]  ;;  %v3684_v1 = vld [vmem:[%s3654_s17] sm:$0xff]  ;;  %v3689_v2 = vld [vmem:[%s3654_s17 + $0x18] sm:$0xff]  ;;  %s5333_s26 = sld [smem:[#allocation49_spill]]  ;;  %s5335_s10 = sld [smem:[#allocation50_spill]] }
  0x9c   : > { %450 = vadd.xlane.f32.xlu1 %v3681_v0  ;;  %446 = vadd.xlane.f32.xlu0 %v3684_v1  ;;  %v3692_v3 = vld [vmem:[%s3654_s17 + $0x8] sm:$0xff]  ;;  %v3700_v5 = vld [vmem:[%s3654_s17 + $0x20] sm:$0xff]  ;;  %v3705_v6 = vld [vmem:[%s3654_s17 + $0x38] sm:$0xff]  ;;  %v510_v33 = vmul.f32 %v3684_v1, %v3684_v1  ;;  %v513_v34 = vmul.f32 %v3689_v2, %v3689_v2  ;;  %v512_v35 = vmul.f32 %v3681_v0, %v3681_v0 }
  0x9d   : > { %v3697_v4 = vld [vmem:[%s3654_s17 + $0x28] sm:$0xff]  ;;  %v3708_v7 = vld [vmem:[%s3654_s17 + $0x30] sm:$0xff]  ;;  %v3716_v9 = vld [vmem:[%s3654_s17 + $0x40] sm:$0xff]  ;;  %v511_v32 = vmul.f32 %v3692_v3, %v3692_v3  ;;  %v514_v37 = vmul.f32 %v3700_v5, %v3700_v5  ;;  %v517_v38 = vmul.f32 %v3705_v6, %v3705_v6 }
  0x9e   : > { %5306 = vst [vmem:[#allocation22_spill] sm:$0xff] %v3708_v7  ;;  %v3713_v8 = vld [vmem:[%s3654_s17 + $0x48] sm:$0xff]  ;;  %5308 = vst [vmem:[#allocation24_spill] sm:$0xff] %v3716_v9  ;;  %v3721_v10 = vld [vmem:[%s3654_s17 + $0x58] sm:$0xff]  ;;  %v515_v36 = vmul.f32 %v3697_v4, %v3697_v4  ;;  %v516_v39 = vmul.f32 %v3708_v7, %v3708_v7  ;;  %v518_v41 = vmul.f32 %v3716_v9, %v3716_v9 }
  0x9f   : > { %5307 = vst [vmem:[#allocation23_spill] sm:$0xff] %v3713_v8  ;;  %5309 = vst [vmem:[#allocation25_spill] sm:$0xff] %v3721_v10  ;;  %v3724_v11 = vld [vmem:[%s3654_s17 + $0x50] sm:$0xff]  ;;  %v3729_v12 = vld [vmem:[%s3654_s17 + $0x68] sm:$0xff]  ;;  %v519_v40 = vmul.f32 %v3713_v8, %v3713_v8  ;;  %v521_v42 = vmul.f32 %v3721_v10, %v3721_v10 }
  0xa0   : > { %452 = vadd.xlane.f32.xlu1 %v3689_v2  ;;  %448 = vadd.xlane.f32.xlu0 %v3692_v3  ;;  %5310 = vst [vmem:[#allocation26_spill] sm:$0xff] %v3724_v11  ;;  %5311 = vst [vmem:[#allocation27_spill] sm:$0xff] %v3729_v12  ;;  %v3732_v13 = vld [vmem:[%s3654_s17 + $0x60] sm:$0xff]  ;;  %v3737_v14 = vld [vmem:[%s3654_s17 + $0x78] sm:$0xff]  ;;  %v520_v43 = vmul.f32 %v3724_v11, %v3724_v11  ;;  %v523_v44 = vmul.f32 %v3729_v12, %v3729_v12 }
  0xa1   : > { %v3740_v15 = vld [vmem:[%s3654_s17 + $0x70] sm:$0xff]  ;;  %v3745_v16 = vld [vmem:[%s3654_s17 + $0x88] sm:$0xff]  ;;  %v3748_v17 = vld [vmem:[%s3654_s17 + $0x80] sm:$0xff]  ;;  %v522_v45 = vmul.f32 %v3732_v13, %v3732_v13  ;;  %v525_v46 = vmul.f32 %v3737_v14, %v3737_v14 }
  0xa2   : > { %5312 = vst [vmem:[#allocation28_spill] sm:$0xff] %v3740_v15  ;;  %v3753_v18 = vld [vmem:[%s3654_s17 + $0x98] sm:$0xff]  ;;  %v3756_v19 = vld [vmem:[%s3654_s17 + $0x90] sm:$0xff]  ;;  %v3761_v20 = vld [vmem:[%s3654_s17 + $0xa8] sm:$0xff]  ;;  %v524_v47 = vmul.f32 %v3740_v15, %v3740_v15  ;;  %v527_v48 = vmul.f32 %v3745_v16, %v3745_v16  ;;  %v526_v49 = vmul.f32 %v3748_v17, %v3748_v17 }
  0xa3   : > { %v3764_v21 = vld [vmem:[%s3654_s17 + $0xa0] sm:$0xff]  ;;  %v3769_v22 = vld [vmem:[%s3654_s17 + $0xb8] sm:$0xff]  ;;  %v3772_v23 = vld [vmem:[%s3654_s17 + $0xb0] sm:$0xff]  ;;  %v529_v50 = vmul.f32 %v3753_v18, %v3753_v18  ;;  %v528_v51 = vmul.f32 %v3756_v19, %v3756_v19  ;;  %v531_v52 = vmul.f32 %v3761_v20, %v3761_v20 }
  0xa4   : > { %456 = vadd.xlane.f32.xlu1 %v3697_v4  ;;  %454 = vadd.xlane.f32.xlu0 %v3700_v5  ;;  %v3777_v24 = vld [vmem:[%s3654_s17 + $0xc8] sm:$0xff]  ;;  %v3780_v25 = vld [vmem:[%s3654_s17 + $0xc0] sm:$0xff]  ;;  %v3785_v26 = vld [vmem:[%s3654_s17 + $0xd8] sm:$0xff]  ;;  %v530_v53 = vmul.f32 %v3764_v21, %v3764_v21  ;;  %v533_v54 = vmul.f32 %v3769_v22, %v3769_v22  ;;  %v532_v55 = vmul.f32 %v3772_v23, %v3772_v23 }
  0xa5   : > { %5313 = vst [vmem:[#allocation29_spill] sm:$0xff] %v3777_v24  ;;  %5314 = vst [vmem:[#allocation30_spill] sm:$0xff] %v3780_v25  ;;  %v3788_v27 = vld [vmem:[%s3654_s17 + $0xd0] sm:$0xff]  ;;  %v3793_v28 = vld [vmem:[%s3654_s17 + $0xe8] sm:$0xff]  ;;  %v535_v56 = vmul.f32 %v3777_v24, %v3777_v24  ;;  %v534_v57 = vmul.f32 %v3780_v25, %v3780_v25  ;;  %v537_v58 = vmul.f32 %v3785_v26, %v3785_v26 }
  0xa6   : > { %v3796_v29 = vld [vmem:[%s3654_s17 + $0xe0] sm:$0xff]  ;;  %v3801_v30 = vld [vmem:[%s3654_s17 + $0xf8] sm:$0xff]  ;;  %v3804_v31 = vld [vmem:[%s3654_s17 + $0xf0] sm:$0xff]  ;;  %v536_v59 = vmul.f32 %v3788_v27, %v3788_v27  ;;  %v539_v60 = vmul.f32 %v3793_v28, %v3793_v28 }
  0xa7   : > { %v538_v61 = vmul.f32 %v3796_v29, %v3796_v29  ;;  %v541_v62 = vmul.f32 %v3801_v30, %v3801_v30  ;;  %v540_v63 = vmul.f32 %v3804_v31, %v3804_v31 }
  0xa8   : > { %460 = vadd.xlane.f32.xlu1 %v3705_v6  ;;  %458 = vadd.xlane.f32.xlu0 %v3708_v7 }
  0xac   : > { %464 = vadd.xlane.f32.xlu1 %v3713_v8  ;;  %462 = vadd.xlane.f32.xlu0 %v3716_v9 }
  0xb0   : > { %468 = vadd.xlane.f32.xlu1 %v3721_v10  ;;  %466 = vadd.xlane.f32.xlu0 %v3724_v11 }
  0xb4   : > { %472 = vadd.xlane.f32.xlu1 %v3729_v12  ;;  %470 = vadd.xlane.f32.xlu0 %v3732_v13 }
  0xb8   : > { %476 = vadd.xlane.f32.xlu1 %v3737_v14  ;;  %474 = vadd.xlane.f32.xlu0 %v3740_v15 }
  0xbc   : > { %480 = vadd.xlane.f32.xlu1 %v3745_v16  ;;  %478 = vadd.xlane.f32.xlu0 %v3748_v17 }
  0xc0   : > { %484 = vadd.xlane.f32.xlu1 %v3753_v18  ;;  %482 = vadd.xlane.f32.xlu0 %v3756_v19 }
  0xc4   : > { %488 = vadd.xlane.f32.xlu1 %v3761_v20  ;;  %486 = vadd.xlane.f32.xlu0 %v3764_v21 }
  0xc8   : > { %492 = vadd.xlane.f32.xlu1 %v3769_v22  ;;  %490 = vadd.xlane.f32.xlu0 %v3772_v23 }
  0xcc   : > { %496 = vadd.xlane.f32.xlu1 %v3777_v24  ;;  %494 = vadd.xlane.f32.xlu0 %v3780_v25 }
  0xd0   : > { %500 = vadd.xlane.f32.xlu1 %v3785_v26  ;;  %498 = vadd.xlane.f32.xlu0 %v3788_v27 }
  0xd4   : > { %504 = vadd.xlane.f32.xlu1 %v3793_v28  ;;  %502 = vadd.xlane.f32.xlu0 %v3796_v29 }
  0xd8   : > { %508 = vadd.xlane.f32.xlu1 %v3801_v30  ;;  %506 = vadd.xlane.f32.xlu0 %v3804_v31 }
  0xdc   : > { %544 = vadd.xlane.f32.xlu1 %v511_v32  ;;  %542 = vadd.xlane.f32.xlu0 %v510_v33 }
  0xe0   : > { %548 = vadd.xlane.f32.xlu1 %v513_v34  ;;  %546 = vadd.xlane.f32.xlu0 %v512_v35 }
  0xe4   : > { %552 = vadd.xlane.f32.xlu1 %v515_v36  ;;  %550 = vadd.xlane.f32.xlu0 %v514_v37 }
  0xe8   : > { %556 = vadd.xlane.f32.xlu1 %v517_v38  ;;  %554 = vadd.xlane.f32.xlu0 %v516_v39  ;;  %v3333_v38 = vmov 0.0  }
  0xe9   : > { %972 = vst [vmem:[#allocation3] sm:$0xff] %v3333_v38  ;;  %973 = vst [vmem:[#allocation3 + $0x8] sm:$0xff] %v3333_v38 }
  0xea   : > { %974 = vst [vmem:[#allocation3 + $0x10] sm:$0xff] %v3333_v38  ;;  %975 = vst [vmem:[#allocation3 + $0x18] sm:$0xff] %v3333_v38 }
  0xeb   : > { %976 = vst [vmem:[#allocation3 + $0x20] sm:$0xff] %v3333_v38  ;;  %977 = vst [vmem:[#allocation3 + $0x28] sm:$0xff] %v3333_v38 }
  0xec   : > { %560 = vadd.xlane.f32.xlu1 %v519_v40  ;;  %558 = vadd.xlane.f32.xlu0 %v518_v41  ;;  %978 = vst [vmem:[#allocation3 + $0x30] sm:$0xff] %v3333_v38  ;;  %979 = vst [vmem:[#allocation3 + $0x38] sm:$0xff] %v3333_v38 }
  0xed   : > { %980 = vst [vmem:[#allocation3 + $0x40] sm:$0xff] %v3333_v38  ;;  %981 = vst [vmem:[#allocation3 + $0x48] sm:$0xff] %v3333_v38 }
  0xee   : > { %982 = vst [vmem:[#allocation3 + $0x50] sm:$0xff] %v3333_v38  ;;  %983 = vst [vmem:[#allocation3 + $0x58] sm:$0xff] %v3333_v38 }
  0xef   : > { %984 = vst [vmem:[#allocation3 + $0x60] sm:$0xff] %v3333_v38  ;;  %985 = vst [vmem:[#allocation3 + $0x68] sm:$0xff] %v3333_v38 }
  0xf0   : > { %564 = vadd.xlane.f32.xlu1 %v521_v42  ;;  %562 = vadd.xlane.f32.xlu0 %v520_v43  ;;  %986 = vst [vmem:[#allocation3 + $0x70] sm:$0xff] %v3333_v38  ;;  %987 = vst [vmem:[#allocation3 + $0x78] sm:$0xff] %v3333_v38 }
  0xf1   : > { %988 = vst [vmem:[#allocation3 + $0x80] sm:$0xff] %v3333_v38  ;;  %989 = vst [vmem:[#allocation3 + $0x88] sm:$0xff] %v3333_v38 }
  0xf2   : > { %990 = vst [vmem:[#allocation3 + $0x90] sm:$0xff] %v3333_v38  ;;  %991 = vst [vmem:[#allocation3 + $0x98] sm:$0xff] %v3333_v38 }
  0xf3   : > { %992 = vst [vmem:[#allocation3 + $0xa0] sm:$0xff] %v3333_v38  ;;  %993 = vst [vmem:[#allocation3 + $0xa8] sm:$0xff] %v3333_v38 }
  0xf4   : > { %568 = vadd.xlane.f32.xlu1 %v523_v44  ;;  %566 = vadd.xlane.f32.xlu0 %v522_v45  ;;  %994 = vst [vmem:[#allocation3 + $0xb0] sm:$0xff] %v3333_v38  ;;  %995 = vst [vmem:[#allocation3 + $0xb8] sm:$0xff] %v3333_v38 }
  0xf5   : > { %996 = vst [vmem:[#allocation3 + $0xc0] sm:$0xff] %v3333_v38  ;;  %997 = vst [vmem:[#allocation3 + $0xc8] sm:$0xff] %v3333_v38 }
  0xf6   : > { %998 = vst [vmem:[#allocation3 + $0xd0] sm:$0xff] %v3333_v38  ;;  %999 = vst [vmem:[#allocation3 + $0xd8] sm:$0xff] %v3333_v38 }
  0xf7   : > { %1000 = vst [vmem:[#allocation3 + $0xe0] sm:$0xff] %v3333_v38  ;;  %1001 = vst [vmem:[#allocation3 + $0xe8] sm:$0xff] %v3333_v38 }
  0xf8   : > { %572 = vadd.xlane.f32.xlu1 %v525_v46  ;;  %570 = vadd.xlane.f32.xlu0 %v524_v47  ;;  %1002 = vst [vmem:[#allocation3 + $0xf0] sm:$0xff] %v3333_v38  ;;  %1003 = vst [vmem:[#allocation3 + $0xf8] sm:$0xff] %v3333_v38 }
  0xfc   : > { %576 = vadd.xlane.f32.xlu1 %v527_v48  ;;  %574 = vadd.xlane.f32.xlu0 %v526_v49 }
 0x100   : > { %580 = vadd.xlane.f32.xlu1 %v529_v50  ;;  %578 = vadd.xlane.f32.xlu0 %v528_v51 }
 0x104   : > { %584 = vadd.xlane.f32.xlu1 %v531_v52  ;;  %582 = vadd.xlane.f32.xlu0 %v530_v53 }
 0x108   : > { %588 = vadd.xlane.f32.xlu1 %v533_v54  ;;  %586 = vadd.xlane.f32.xlu0 %v532_v55 }
 0x10c   : > { %592 = vadd.xlane.f32.xlu1 %v535_v56  ;;  %590 = vadd.xlane.f32.xlu0 %v534_v57 }
 0x110   : > { %596 = vadd.xlane.f32.xlu1 %v537_v58  ;;  %594 = vadd.xlane.f32.xlu0 %v536_v59 }
 0x114   : > { %600 = vadd.xlane.f32.xlu1 %v539_v60  ;;  %598 = vadd.xlane.f32.xlu0 %v538_v61 }
 0x118   : > { %604 = vadd.xlane.f32.xlu1 %v541_v62  ;;  %602 = vadd.xlane.f32.xlu0 %v540_v63 }
 0x129   : > { %v451_v26 = vpop.xlane.xlu1 %450  ;;  %v447_v27 = vpop.xlane.xlu0 %446 }
 0x12a   : > { %v3908_v55 = vmul.f32 0.0078125, %v451_v26  ;;  %v3910_v56 = vmul.f32 0.0078125, %v447_v27 }
 0x12c   : > { %v3924_v62 = vmul.f32 %v3908_v55, %v3908_v55  ;;  %v670_v27 = vmul.f32 %v3910_v56, %v3910_v56 }
 0x12d   : > { %v453_v32 = vpop.xlane.xlu1 %452  ;;  %v449_v33 = vpop.xlane.xlu0 %448 }
 0x12e   : > { %v3912_v57 = vmul.f32 0.0078125, %v453_v32  ;;  %v3914_v58 = vmul.f32 0.0078125, %v449_v33 }
 0x130   : > { %v3943_v38 = vmul.f32 %v3912_v57, %v3912_v57  ;;  %v671_v63 = vmul.f32 %v3914_v58, %v3914_v58 }
 0x131   : > { %v457_v34 = vpop.xlane.xlu1 %456  ;;  %v3872_v35 = vpop.xlane.xlu0 %454 }
 0x132   : > { %v3916_v59 = vmul.f32 0.0078125, %v457_v34  ;;  %v3929_v26 = vmul.f32 0.0078125, %v3872_v35 }
 0x134   : > { %5315 = vst [vmem:[#allocation31_spill] sm:$0xff] %v3916_v59  ;;  %5318 = vst [vmem:[#allocation34_spill] sm:$0xff] %v3929_v26 }
 0x135   : > { %v3874_v28 = vpop.xlane.xlu1 %460  ;;  %v3876_v29 = vpop.xlane.xlu0 %458 }
 0x136   : > { %v3936_v33 = vmul.f32 0.0078125, %v3874_v28  ;;  %v3939_v34 = vmul.f32 0.0078125, %v3876_v29  ;;  %v3956_v29 = vmul.f32 %v3916_v59, %v3916_v59  ;;  %v3972_v28 = vmul.f32 %v3929_v26, %v3929_v26 }
 0x138   : > { %5319 = vst [vmem:[#allocation35_spill] sm:$0xff] %v3936_v33  ;;  %5320 = vst [vmem:[#allocation36_spill] sm:$0xff] %v3939_v34 }
 0x139   : > { %v3878_v36 = vpop.xlane.xlu1 %464  ;;  %v3880_v37 = vpop.xlane.xlu0 %462 }
 0x13a   : > { %v3950_v25 = vmul.f32 0.0078125, %v3878_v36  ;;  %v3959_v32 = vmul.f32 0.0078125, %v3880_v37  ;;  %v3987_v36 = vmul.f32 %v3939_v34, %v3939_v34 }
 0x13c   : > { %5321 = vst [vmem:[#allocation37_spill] sm:$0xff] %v3950_v25  ;;  %5322 = vst [vmem:[#allocation38_spill] sm:$0xff] %v3959_v32 }
 0x13d   : > { %v3882_v30 = vpop.xlane.xlu1 %468  ;;  %v3884_v31 = vpop.xlane.xlu0 %466 }
 0x13e   : > { %v3962_v24 = vmul.f32 0.0078125, %v3882_v30  ;;  %v3977_v37 = vmul.f32 0.0078125, %v3884_v31  ;;  %v3981_v30 = vmul.f32 %v3936_v33, %v3936_v33  ;;  %v3995_v31 = vmul.f32 %v3950_v25, %v3950_v25 }
 0x140   : > { %5323 = vst [vmem:[#allocation39_spill] sm:$0xff] %v3962_v24  ;;  %5326 = vst [vmem:[#allocation42_spill] sm:$0xff] %v3977_v37  ;;  %v4009_v33 = vmul.f32 %v3962_v24, %v3962_v24 }
 0x141   : > { %v473_v39 = vpop.xlane.xlu1 %472  ;;  %v471_v40 = vpop.xlane.xlu0 %470 }
 0x142   : > { %v3999_v26 = vmul.f32 0.0078125, %v471_v40  ;;  %v4017_v40 = vmul.f32 %v3977_v37, %v3977_v37 }
 0x144   : > { %v4033_v24 = vmul.f32 %v3999_v26, %v3999_v26 }
 0x145   : > { %v477_v41 = vpop.xlane.xlu1 %476  ;;  %v475_v42 = vpop.xlane.xlu0 %474 }
 0x146   : > { %v4011_v59 = vmul.f32 0.0078125, %v477_v41  ;;  %v4025_v41 = vmul.f32 0.0078125, %v475_v42 }
 0x148   : > { %5328 = vst [vmem:[#allocation44_spill] sm:$0xff] %v4025_v41  ;;  %v4039_v37 = vmul.f32 %v4011_v59, %v4011_v59 }
 0x149   : > { %v481_v43 = vpop.xlane.xlu1 %480  ;;  %v3886_v44 = vpop.xlane.xlu0 %478 }
 0x14a   : > { %v4027_v9 = vmul.f32 0.0078125, %v481_v43  ;;  %v4044_v43 = vmul.f32 0.0078125, %v3886_v44 }
 0x14d   : > { %v3888_v45 = vpop.xlane.xlu1 %484  ;;  %v3890_v46 = vpop.xlane.xlu0 %482 }
 0x14e   : > { %v4057_v44 = vmul.f32 0.0078125, %v3888_v45  ;;  %v4060_v42 = vmul.f32 0.0078125, %v3890_v46 }
 0x150   : > { %5329 = vst [vmem:[#allocation45_spill] sm:$0xff] %v4057_v44 }
 0x151   : > { %v3892_v47 = vpop.xlane.xlu1 %488  ;;  %v3894_v48 = vpop.xlane.xlu0 %486 }
 0x155   : > { %v3896_v49 = vpop.xlane.xlu1 %492  ;;  %v3898_v50 = vpop.xlane.xlu0 %490 }
 0x159   : > { %v3900_v51 = vpop.xlane.xlu1 %496  ;;  %v3902_v52 = vpop.xlane.xlu0 %494 }
 0x15d   : > { %v3904_v53 = vpop.xlane.xlu1 %500  ;;  %v3906_v54 = vpop.xlane.xlu0 %498 }
 0x161   : > { %v3918_v60 = vpop.xlane.xlu1 %504  ;;  %v3920_v61 = vpop.xlane.xlu0 %502 }
 0x162   : > { %5316 = vst [vmem:[#allocation32_spill] sm:$0xff] %v3918_v60  ;;  %5317 = vst [vmem:[#allocation33_spill] sm:$0xff] %v3920_v61 }
 0x165   : > { %v3964_v35 = vpop.xlane.xlu1 %508  ;;  %v3966_v61 = vpop.xlane.xlu0 %506 }
 0x166   : > { %5324 = vst [vmem:[#allocation40_spill] sm:$0xff] %v3964_v35  ;;  %5325 = vst [vmem:[#allocation41_spill] sm:$0xff] %v3966_v61  ;;  %v3989_v35 = vmul.f32 0.0078125, %v473_v39  ;;  %v4003_v61 = vmul.f32 %v3959_v32, %v3959_v32 }
 0x168   : > { %5327 = vst [vmem:[#allocation43_spill] sm:$0xff] %v3989_v35  ;;  %v4023_v32 = vmul.f32 %v3989_v35, %v3989_v35 }
 0x169   : > { %v545_v34 = vpop.xlane.xlu1 %544  ;;  %v543_v7 = vpop.xlane.xlu0 %542 }
 0x16a   : > { %v639_v25 = vmul.f32 0.0078125, %v545_v34  ;;  %v638_v8 = vmul.f32 0.0078125, %v543_v7 }
 0x16c   : > { %v703_v34 = vsub.f32 %v639_v25, %v671_v63  ;;  %v702_v7 = vsub.f32 %v638_v8, %v670_v27  ;;  %v4048_v8 = vmul.f32 %v4025_v41, %v4025_v41  ;;  %v4054_v27 = vmul.f32 %v4027_v9, %v4027_v9 }
 0x16d   : > { %v549_v60 = vpop.xlane.xlu1 %548  ;;  %v547_v35 = vpop.xlane.xlu0 %546  ;;  %v4071_v63 = vmul.f32 0.0078125, %v3892_v47  ;;  %v4082_v47 = vmul.f32 0.0078125, %v3894_v48 }
 0x16e   : > { %v767_v12 = vadd.f32 1e-05, %v703_v34  ;;  %v766_v11 = vadd.f32 1e-05, %v702_v7  ;;  %v641_v10 = vmul.f32 0.0078125, %v549_v60  ;;  %v640_v25 = vmul.f32 0.0078125, %v547_v35 }
 0x16f   : > { %v4068_v7 = vmul.f32 %v4044_v43, %v4044_v43 }
 0x170   : > { %2869 = vrsqrt.f32 %v767_v12  ;;  %v705_v60 = vsub.f32 %v641_v10, %v3943_v38  ;;  %v704_v35 = vsub.f32 %v640_v25, %v3924_v62  ;;  %v4077_v62 = vmul.f32 %v4057_v44, %v4057_v44 }
 0x171   : > { %2871 = vrsqrt.f32 %v766_v11  ;;  %v553_v45 = vpop.xlane.xlu1 %552  ;;  %v551_v39 = vpop.xlane.xlu0 %550  ;;  %v4086_v11 = vmul.f32 %v4060_v42, %v4060_v42 }
 0x172   : > { %v769_v46 = vadd.f32 1e-05, %v705_v60  ;;  %v768_v41 = vadd.f32 1e-05, %v704_v35  ;;  %v643_v12 = vmul.f32 0.0078125, %v553_v45  ;;  %v642_v15 = vmul.f32 0.0078125, %v551_v39 }
 0x173   : > { %v4094_v35 = vmul.f32 %v4071_v63, %v4071_v63  ;;  %v4097_v45 = vmul.f32 0.0078125, %v3896_v49  ;;  %v4109_v49 = vmul.f32 0.0078125, %v3900_v51  ;;  %v4127_v51 = vld [vmem:[%s5333_s26] ss:$0 sm:$0xff] }
 0x174   : > { %2873 = vrsqrt.f32 %v769_v46  ;;  %v707_v39 = vsub.f32 %v643_v12, %v3956_v29  ;;  %v706_v25 = vsub.f32 %v642_v15, %v3972_v28  ;;  %v4103_v28 = vmul.f32 %v4082_v47, %v4082_v47 }
 0x175   : > { %5330 = vst [vmem:[#allocation46_spill] sm:$0xff] %v4097_v45  ;;  %2875 = vrsqrt.f32 %v768_v41  ;;  %v557_v48 = vpop.xlane.xlu1 %556  ;;  %v555_v38 = vpop.xlane.xlu0 %554  ;;  %v4106_v29 = vmul.f32 0.0078125, %v3898_v50  ;;  %5332 = vst [vmem:[#allocation48_spill] sm:$0xff] %v4109_v49  ;;  %v4122_v50 = vmul.f32 0.0078125, %v3902_v52  ;;  %v4137_v60 = vmul.f32 %v4109_v49, %v4109_v49 }
 0x176   : > { %v771_v10 = vadd.f32 1e-05, %v707_v39  ;;  %v770_v34 = vadd.f32 1e-05, %v706_v25  ;;  %v645_v46 = vmul.f32 0.0078125, %v557_v48  ;;  %v644_v44 = vmul.f32 0.0078125, %v555_v38 }
 0x177   : > { %5331 = vst [vmem:[#allocation47_spill] sm:$0xff] %v4106_v29  ;;  %v4117_v39 = vmul.f32 %v4097_v45, %v4097_v45  ;;  %v4131_v25 = vmul.f32 %v4106_v29, %v4106_v29  ;;  %v4154_v49 = vmul.f32 %v4122_v50, %v4122_v50 }
 0x178   : > { %2877 = vrsqrt.f32 %v771_v10  ;;  %v709_v12 = vsub.f32 %v645_v46, %v3981_v30  ;;  %v708_v38 = vsub.f32 %v644_v44, %v3987_v36 }
 0x179   : > { %2879 = vrsqrt.f32 %v770_v34  ;;  %v561_v10 = vpop.xlane.xlu1 %560  ;;  %v559_v30 = vpop.xlane.xlu0 %558  ;;  %v5334_v34 = vsub.f32 %v3692_v3, %v3914_v58  ;;  %v4157_v3 = vmul.f32 0.0078125, %v3904_v53  ;;  %v5337_v53 = vsub.f32 %v3689_v2, %v3912_v57 }
 0x17a   : > { %v2870_v48 = vpop.eup %2869  ;;  %v773_v36 = vadd.f32 1e-05, %v709_v12  ;;  %v772_v44 = vadd.f32 1e-05, %v708_v38  ;;  %v647_v46 = vmul.f32 0.0078125, %v561_v10  ;;  %v646_v41 = vmul.f32 0.0078125, %v559_v30 }
 0x17b   : > { %v2872_v15 = vpop.eup %2871  ;;  %v831_v45 = vmul.f32 %v2870_v48, %v5334_v34  ;;  %v4145_v12 = vld [vmem:[%s5335_s10] ss:$0 sm:$0xff]  ;;  %v5336_v38 = vsub.f32 %v3684_v1, %v3910_v56 }
 0x17c   : > { %2881 = vrsqrt.f32 %v773_v36  ;;  %v711_v30 = vsub.f32 %v647_v46, %v3995_v31  ;;  %v710_v52 = vsub.f32 %v646_v41, %v4003_v61  ;;  %v4162_v61 = vmul.f32 0.0078125, %v3906_v54 }
 0x17d   : > { %v830_v10 = vmul.f32 %v2872_v15, %v5336_v38  ;;  %v870_v58 = vmul.f32 %v4127_v51, %v831_v45  ;;  %2883 = vrsqrt.f32 %v772_v44  ;;  %v565_v48 = vpop.xlane.xlu1 %564  ;;  %v563_v34 = vpop.xlane.xlu0 %562  ;;  %v5338_v38 = vsub.f32 %v3681_v0, %v3908_v55 }
 0x17e   : > { %v2874_v29 = vpop.eup %2873  ;;  %v775_v56 = vadd.f32 1e-05, %v711_v30  ;;  %v774_v15 = vadd.f32 1e-05, %v710_v52  ;;  %v649_v31 = vmul.f32 0.0078125, %v565_v48  ;;  %v648_v45 = vmul.f32 0.0078125, %v563_v34 }
 0x17f   : > { %v869_v1 = vmul.f32 %v4127_v51, %v830_v10  ;;  %v2876_v36 = vpop.eup %2875  ;;  %v909_v41 = vadd.f32 %v4145_v12, %v870_v58  ;;  %v833_v46 = vmul.f32 %v2874_v29, %v5337_v53  ;;  %v4175_v54 = vmul.f32 %v4157_v3, %v4157_v3 }
 0x180   : > { %v832_v10 = vmul.f32 %v2876_v36, %v5338_v38  ;;  %2885 = vrsqrt.f32 %v775_v56  ;;  %v713_v52 = vsub.f32 %v649_v31, %v4009_v33  ;;  %v712_v2 = vsub.f32 %v648_v45, %v4017_v40  ;;  %v5339_v56 = vld [vmem:[#allocation31_spill] sm:$0xff] }
 0x181   : > { %v908_v44 = vadd.f32 %v4145_v12, %v869_v1  ;;  %v872_v30 = vmul.f32 %v4127_v51, %v833_v46  ;;  %2887 = vrsqrt.f32 %v774_v15  ;;  %v569_v57 = vpop.xlane.xlu1 %568  ;;  %v567_v29 = vpop.xlane.xlu0 %566  ;;  %v5340_v31 = vsub.f32 %v3697_v4, %v5339_v56  ;;  %v5341_v15 = vld [vmem:[#allocation34_spill] sm:$0xff] }
 0x182   : > { %v2878_v58 = vpop.eup %2877  ;;  %v871_v34 = vmul.f32 %v4127_v51, %v832_v10  ;;  %v777_v0 = vadd.f32 1e-05, %v713_v52  ;;  %v651_v55 = vmul.f32 0.0078125, %v569_v57  ;;  %v776_v53 = vadd.f32 1e-05, %v712_v2 }
 0x183   : > { %v940_v48 = vpack.c.bf16 %v909_v41, %v908_v44  ;;  %v2880_v1 = vpop.eup %2879  ;;  %v911_v33 = vadd.f32 %v4145_v12, %v872_v30  ;;  %v835_v36 = vmul.f32 %v2878_v58, %v5340_v31  ;;  %v650_v46 = vmul.f32 0.0078125, %v567_v29  ;;  %v5345_v31 = vld [vmem:[#allocation22_spill] sm:$0xff] }
 0x184   : > { %v910_v40 = vadd.f32 %v4145_v12, %v871_v34  ;;  %v5342_v45 = vsub.f32 %v3700_v5, %v5341_v15  ;;  %2889 = vrsqrt.f32 %v777_v0  ;;  %v715_v44 = vsub.f32 %v651_v55, %v4023_v32  ;;  %v5343_v34 = vld [vmem:[#allocation35_spill] sm:$0xff] }
 0x185   : > { %956 = vst [vmem:[#allocation2] sm:$0xff] %v940_v48  ;;  %v4191_v38 = vmul.f32 %v4162_v61, %v4162_v61  ;;  %v874_v10 = vmul.f32 %v4127_v51, %v835_v36  ;;  %2891 = vrsqrt.f32 %v776_v53  ;;  %v714_v4 = vsub.f32 %v650_v46, %v4033_v24  ;;  %v573_v52 = vpop.xlane.xlu1 %572  ;;  %v571_v30 = vpop.xlane.xlu0 %570  ;;  %v5346_v36 = vld [vmem:[#allocation36_spill] sm:$0xff] }
 0x186   : > { %v834_v41 = vmul.f32 %v2880_v1, %v5342_v45  ;;  %v2882_v2 = vpop.eup %2881  ;;  %v941_v57 = vpack.c.bf16 %v911_v33, %v910_v40  ;;  %v779_v5 = vadd.f32 1e-05, %v715_v44  ;;  %v653_v58 = vmul.f32 0.0078125, %v573_v52  ;;  %v5348_v40 = vld [vmem:[#allocation32_spill] sm:$0xff] }
 0x187   : > { %v2884_v48 = vpop.eup %2883  ;;  %v913_v32 = vadd.f32 %v4145_v12, %v874_v10  ;;  %v5344_v0 = vsub.f32 %v3705_v6, %v5343_v34  ;;  %v778_v1 = vadd.f32 1e-05, %v714_v4  ;;  %v652_v56 = vmul.f32 0.0078125, %v571_v30 }
 0x188   : > { %v873_v29 = vmul.f32 %v4127_v51, %v834_v41  ;;  %957 = vst [vmem:[#allocation2 + $0x8] sm:$0xff] %v941_v57  ;;  %v5347_v53 = vsub.f32 %v5345_v31, %v5346_v36  ;;  %2893 = vrsqrt.f32 %v779_v5  ;;  %v717_v46 = vsub.f32 %v653_v58, %v4039_v37  ;;  %v5349_v37 = vld [vmem:[#allocation23_spill] sm:$0xff]  ;;  %v5350_v5 = vld [vmem:[#allocation37_spill] sm:$0xff] }
 0x189   : > { %v837_v55 = vmul.f32 %v2882_v2, %v5344_v0  ;;  %v4206_v15 = vmul.f32 0.0078125, %v5348_v40  ;;  %2895 = vrsqrt.f32 %v778_v1  ;;  %v716_v6 = vsub.f32 %v652_v56, %v4048_v8  ;;  %v577_v41 = vpop.xlane.xlu1 %576  ;;  %v575_v44 = vpop.xlane.xlu0 %574  ;;  %v5353_v1 = vld [vmem:[#allocation38_spill] sm:$0xff]  ;;  %v5355_v31 = vld [vmem:[#allocation33_spill] sm:$0xff] }
 0x18a   : > { %v912_v24 = vadd.f32 %v4145_v12, %v873_v29  ;;  %v836_v33 = vmul.f32 %v2884_v48, %v5347_v53  ;;  %v2886_v10 = vpop.eup %2885  ;;  %v781_v30 = vadd.f32 1e-05, %v717_v46  ;;  %v655_v2 = vmul.f32 0.0078125, %v577_v41 }
 0x18b   : > { %v876_v45 = vmul.f32 %v4127_v51, %v837_v55  ;;  %v2888_v57 = vpop.eup %2887  ;;  %v5351_v58 = vsub.f32 %v5349_v37, %v5350_v5  ;;  %v780_v34 = vadd.f32 1e-05, %v716_v6  ;;  %v654_v0 = vmul.f32 0.0078125, %v575_v44  ;;  %v5352_v55 = vld [vmem:[#allocation24_spill] sm:$0xff] }
 0x18c   : > { %v942_v4 = vpack.c.bf16 %v913_v32, %v912_v24  ;;  %v875_v52 = vmul.f32 %v4127_v51, %v836_v33  ;;  %v5354_v56 = vsub.f32 %v5352_v55, %v5353_v1  ;;  %2897 = vrsqrt.f32 %v781_v30  ;;  %v5357_v30 = vld [vmem:[#allocation39_spill] sm:$0xff] }
 0x18d   : > { %v915_v29 = vadd.f32 %v4145_v12, %v876_v45  ;;  %v839_v48 = vmul.f32 %v2886_v10, %v5351_v58  ;;  %v719_v24 = vsub.f32 %v655_v2, %v4054_v27  ;;  %v4221_v36 = vmul.f32 0.0078125, %v5355_v31  ;;  %v581_v46 = vpop.xlane.xlu1 %580  ;;  %v579_v40 = vpop.xlane.xlu0 %578  ;;  %v5356_v27 = vld [vmem:[#allocation25_spill] sm:$0xff]  ;;  %v5359_v58 = vld [vmem:[#allocation26_spill] sm:$0xff] }
 0x18e   : > { %958 = vst [vmem:[#allocation2 + $0x10] sm:$0xff] %v942_v4  ;;  %v914_v8 = vadd.f32 %v4145_v12, %v875_v52  ;;  %v838_v32 = vmul.f32 %v2888_v57, %v5354_v56  ;;  %2899 = vrsqrt.f32 %v780_v34  ;;  %v718_v33 = vsub.f32 %v654_v0, %v4068_v7  ;;  %v2890_v45 = vpop.eup %2889 }
 0x18f   : > { %v878_v53 = vmul.f32 %v4127_v51, %v839_v48  ;;  %v783_v44 = vadd.f32 1e-05, %v719_v24  ;;  %v657_v10 = vmul.f32 0.0078125, %v581_v46  ;;  %v2892_v4 = vpop.eup %2891  ;;  %v5358_v2 = vsub.f32 %v5356_v27, %v5357_v30  ;;  %v5360_v48 = vld [vmem:[#allocation42_spill] sm:$0xff] }
 0x190   : > { %v943_v6 = vpack.c.bf16 %v915_v29, %v914_v8  ;;  %v877_v41 = vmul.f32 %v4127_v51, %v838_v32  ;;  %v782_v37 = vadd.f32 1e-05, %v718_v33  ;;  %v656_v5 = vmul.f32 0.0078125, %v579_v40 }
 0x191   : > { %v917_v52 = vadd.f32 %v4145_v12, %v878_v53  ;;  %v841_v57 = vmul.f32 %v2890_v45, %v5358_v2  ;;  %v5361_v34 = vsub.f32 %v5359_v58, %v5360_v48  ;;  %2901 = vrsqrt.f32 %v783_v44  ;;  %v585_v56 = vpop.xlane.xlu1 %584  ;;  %v583_v32 = vpop.xlane.xlu0 %582  ;;  %v5362_v45 = vld [vmem:[#allocation27_spill] sm:$0xff] }
 0x192   : > { %959 = vst [vmem:[#allocation2 + $0x18] sm:$0xff] %v943_v6  ;;  %v916_v7 = vadd.f32 %v4145_v12, %v877_v41  ;;  %v721_v0 = vsub.f32 %v657_v10, %v4077_v62  ;;  %v4237_v8 = vmul.f32 %v4206_v15, %v4206_v15  ;;  %2903 = vrsqrt.f32 %v782_v37  ;;  %v2894_v24 = vpop.eup %2893  ;;  %v5363_v6 = vld [vmem:[#allocation43_spill] sm:$0xff] }
 0x193   : > { %v840_v29 = vmul.f32 %v2892_v4, %v5361_v34  ;;  %v880_v55 = vmul.f32 %v4127_v51, %v841_v57  ;;  %v720_v1 = vsub.f32 %v656_v5, %v4086_v11  ;;  %v659_v46 = vmul.f32 0.0078125, %v585_v56  ;;  %v2896_v40 = vpop.eup %2895 }
 0x194   : > { %v944_v31 = vpack.c.bf16 %v917_v52, %v916_v7  ;;  %v785_v33 = vadd.f32 1e-05, %v721_v0  ;;  %v5364_v41 = vsub.f32 %v5362_v45, %v5363_v6  ;;  %v658_v4 = vmul.f32 0.0078125, %v583_v32  ;;  %v5367_v32 = vld [vmem:[#allocation28_spill] sm:$0xff] }
 0x195   : > { %v879_v53 = vmul.f32 %v4127_v51, %v840_v29  ;;  %v919_v62 = vadd.f32 %v4145_v12, %v880_v55  ;;  %v784_v10 = vadd.f32 1e-05, %v720_v1  ;;  %v5365_v27 = vsub.f32 %v3732_v13, %v3999_v26  ;;  %v589_v5 = vpop.xlane.xlu1 %588  ;;  %v587_v7 = vpop.xlane.xlu0 %586 }
 0x196   : > { %v843_v44 = vmul.f32 %v2894_v24, %v5364_v41  ;;  %960 = vst [vmem:[#allocation2 + $0x20] sm:$0xff] %v944_v31  ;;  %2905 = vrsqrt.f32 %v785_v33  ;;  %v723_v30 = vsub.f32 %v659_v46, %v4094_v35  ;;  %v4253_v2 = vmul.f32 %v4221_v36, %v4221_v36  ;;  %v2898_v58 = vpop.eup %2897  ;;  %v5368_v24 = vld [vmem:[#allocation44_spill] sm:$0xff] }
 0x197   : > { %v918_v11 = vadd.f32 %v4145_v12, %v879_v53  ;;  %v842_v52 = vmul.f32 %v2896_v40, %v5365_v27  ;;  %2907 = vrsqrt.f32 %v784_v10  ;;  %v722_v37 = vsub.f32 %v658_v4, %v4103_v28  ;;  %v5370_v46 = vld [vmem:[#allocation40_spill] sm:$0xff] }
 0x198   : > { %v882_v57 = vmul.f32 %v4127_v51, %v843_v44  ;;  %v787_v13 = vadd.f32 1e-05, %v723_v30  ;;  %v661_v26 = vmul.f32 0.0078125, %v589_v5  ;;  %v2900_v29 = vpop.eup %2899  ;;  %v5366_v0 = vsub.f32 %v3737_v14, %v4011_v59 }
 0x199   : > { %v945_v48 = vpack.c.bf16 %v919_v62, %v918_v11  ;;  %v881_v34 = vmul.f32 %v4127_v51, %v842_v52  ;;  %v786_v1 = vadd.f32 1e-05, %v722_v37  ;;  %v660_v56 = vmul.f32 0.0078125, %v587_v7  ;;  %v593_v59 = vpop.xlane.xlu1 %592  ;;  %v591_v45 = vpop.xlane.xlu0 %590 }
 0x19a   : > { %v921_v35 = vadd.f32 %v4145_v12, %v882_v57  ;;  %v845_v55 = vmul.f32 %v2898_v58, %v5366_v0  ;;  %v5369_v31 = vsub.f32 %v5367_v32, %v5368_v24  ;;  %2909 = vrsqrt.f32 %v787_v13  ;;  %v5373_v58 = vld [vmem:[#allocation41_spill] sm:$0xff] }
 0x19b   : > { %961 = vst [vmem:[#allocation2 + $0x28] sm:$0xff] %v945_v48  ;;  %v920_v28 = vadd.f32 %v4145_v12, %v881_v34  ;;  %v725_v33 = vsub.f32 %v661_v26, %v4117_v39  ;;  %v4268_v40 = vmul.f32 0.0078125, %v5370_v46  ;;  %2911 = vrsqrt.f32 %v786_v1  ;;  %v2902_v6 = vpop.eup %2901 }
 0x19c   : > { %v844_v53 = vmul.f32 %v2900_v29, %v5369_v31  ;;  %v884_v62 = vmul.f32 %v4127_v51, %v845_v55  ;;  %v724_v14 = vsub.f32 %v660_v56, %v4131_v25  ;;  %v663_v4 = vmul.f32 0.0078125, %v593_v59  ;;  %v2904_v11 = vpop.eup %2903 }
 0x19d   : > { %v946_v41 = vpack.c.bf16 %v921_v35, %v920_v28  ;;  %v789_v10 = vadd.f32 1e-05, %v725_v33  ;;  %v5371_v39 = vsub.f32 %v3745_v16, %v4027_v9  ;;  %v662_v57 = vmul.f32 0.0078125, %v591_v45  ;;  %v597_v16 = vpop.xlane.xlu1 %596  ;;  %v595_v13 = vpop.xlane.xlu0 %594 }
 0x19e   : > { %v883_v44 = vmul.f32 %v4127_v51, %v844_v53  ;;  %v923_v27 = vadd.f32 %v4145_v12, %v884_v62  ;;  %v788_v30 = vadd.f32 1e-05, %v724_v14  ;;  %v5372_v37 = vsub.f32 %v3748_v17, %v4044_v43 }
 0x19f   : > { %v847_v52 = vmul.f32 %v2902_v6, %v5371_v39  ;;  %962 = vst [vmem:[#allocation2 + $0x30] sm:$0xff] %v946_v41  ;;  %2913 = vrsqrt.f32 %v789_v10  ;;  %v727_v7 = vsub.f32 %v663_v4, %v4137_v60  ;;  %v4283_v48 = vmul.f32 0.0078125, %v5373_v58  ;;  %v5374_v60 = vld [vmem:[#allocation45_spill] sm:$0xff] }
 0x1a0   : > { %v922_v25 = vadd.f32 %v4145_v12, %v883_v44  ;;  %v846_v5 = vmul.f32 %v2904_v11, %v5372_v37  ;;  %2915 = vrsqrt.f32 %v788_v30  ;;  %v726_v9 = vsub.f32 %v662_v57, %v4154_v49  ;;  %v2906_v26 = vpop.eup %2905 }
 0x1a1   : > { %v886_v34 = vmul.f32 %v4127_v51, %v847_v52  ;;  %v791_v0 = vadd.f32 1e-05, %v727_v7  ;;  %v665_v17 = vmul.f32 0.0078125, %v597_v16  ;;  %v2908_v43 = vpop.eup %2907  ;;  %v5375_v1 = vsub.f32 %v3753_v18, %v5374_v60  ;;  %v601_v62 = vpop.xlane.xlu1 %600 }
 0x1a2   : > { %v947_v29 = vpack.c.bf16 %v923_v27, %v922_v25  ;;  %v885_v35 = vmul.f32 %v4127_v51, %v846_v5  ;;  %v790_v28 = vadd.f32 1e-05, %v726_v9  ;;  %v664_v32 = vmul.f32 0.0078125, %v595_v13  ;;  %v599_v14 = vpop.xlane.xlu0 %598 }
 0x1a3   : > { %v925_v55 = vadd.f32 %v4145_v12, %v886_v34  ;;  %v849_v56 = vmul.f32 %v2906_v26, %v5375_v1  ;;  %v5376_v24 = vsub.f32 %v3756_v19, %v4060_v42  ;;  %2917 = vrsqrt.f32 %v791_v0 }
 0x1a4   : > { %963 = vst [vmem:[#allocation2 + $0x38] sm:$0xff] %v947_v29  ;;  %v924_v49 = vadd.f32 %v4145_v12, %v885_v35  ;;  %v729_v53 = vsub.f32 %v665_v17, %v4175_v54  ;;  %v701_v33 = vmul.f32 %v4268_v40, %v4268_v40  ;;  %2919 = vrsqrt.f32 %v790_v28  ;;  %v2910_v59 = vpop.eup %2909  ;;  %v5381_v29 = vld [vmem:[#allocation47_spill] sm:$0xff]  ;;  %v5385_v28 = vld [vmem:[#allocation30_spill] sm:$0xff] }
 0x1a5   : > { %v848_v31 = vmul.f32 %v2908_v43, %v5376_v24  ;;  %v888_v46 = vmul.f32 %v4127_v51, %v849_v56  ;;  %v728_v18 = vsub.f32 %v664_v32, %v4191_v38  ;;  %v667_v19 = vmul.f32 0.0078125, %v601_v62  ;;  %v2912_v42 = vpop.eup %2911  ;;  %v5383_v43 = vld [vmem:[#allocation48_spill] sm:$0xff] }
 0x1a6   : > { %v948_v45 = vpack.c.bf16 %v925_v55, %v924_v49  ;;  %v793_v41 = vadd.f32 1e-05, %v729_v53  ;;  %v5377_v54 = vsub.f32 %v3761_v20, %v4071_v63  ;;  %v666_v11 = vmul.f32 0.0078125, %v599_v14  ;;  %v605_v63 = vpop.xlane.xlu1 %604  ;;  %v603_v25 = vpop.xlane.xlu0 %602  ;;  %v5384_v55 = vld [vmem:[#allocation29_spill] sm:$0xff] }
 0x1a7   : > { %v887_v6 = vmul.f32 %v4127_v51, %v848_v31  ;;  %v927_v44 = vadd.f32 %v4145_v12, %v888_v46  ;;  %v792_v4 = vadd.f32 1e-05, %v728_v18  ;;  %v5378_v27 = vsub.f32 %v3764_v21, %v4082_v47  ;;  %v2933_v14 = vld [vmem:[%s3654_s17 + $0xd8] sm:$0xff] }
 0x1a8   : > { %v851_v10 = vmul.f32 %v2910_v59, %v5377_v54  ;;  %964 = vst [vmem:[#allocation2 + $0x40] sm:$0xff] %v948_v45  ;;  %2921 = vrsqrt.f32 %v793_v41  ;;  %v731_v52 = vsub.f32 %v667_v19, %v4237_v8  ;;  %v700_v30 = vmul.f32 %v4283_v48, %v4283_v48  ;;  %v5379_v8 = vld [vmem:[#allocation46_spill] sm:$0xff] }
 0x1a9   : > { %v926_v38 = vadd.f32 %v4145_v12, %v887_v6  ;;  %v850_v39 = vmul.f32 %v2912_v42, %v5378_v27  ;;  %2923 = vrsqrt.f32 %v792_v4  ;;  %v730_v20 = vsub.f32 %v666_v11, %v4253_v2  ;;  %v2914_v37 = vpop.eup %2913  ;;  %v2934_v6 = vld [vmem:[%s3654_s17 + $0xd0] sm:$0xff]  ;;  %v2935_v11 = vld [vmem:[%s3654_s17 + $0xe8] sm:$0xff] }
 0x1aa   : > { %v890_v57 = vmul.f32 %v4127_v51, %v851_v10  ;;  %v795_v58 = vadd.f32 1e-05, %v731_v52  ;;  %v669_v21 = vmul.f32 0.0078125, %v605_v63  ;;  %v2916_v47 = vpop.eup %2915  ;;  %v5380_v9 = vsub.f32 %v3769_v22, %v5379_v8 }
 0x1ab   : > { %v949_v5 = vpack.c.bf16 %v927_v44, %v926_v38  ;;  %v889_v7 = vmul.f32 %v4127_v51, %v850_v39  ;;  %v794_v13 = vadd.f32 1e-05, %v730_v20  ;;  %v668_v26 = vmul.f32 0.0078125, %v603_v25 }
 0x1ac   : > { %v929_v34 = vadd.f32 %v4145_v12, %v890_v57  ;;  %v853_v16 = vmul.f32 %v2914_v37, %v5380_v9  ;;  %v5382_v35 = vsub.f32 %v3772_v23, %v5381_v29  ;;  %2925 = vrsqrt.f32 %v795_v58 }
 0x1ad   : > { %965 = vst [vmem:[#allocation2 + $0x48] sm:$0xff] %v949_v5  ;;  %v928_v2 = vadd.f32 %v4145_v12, %v889_v7  ;;  %v733_v17 = vsub.f32 %v669_v21, %v701_v33  ;;  %v759_v60 = vsub.f32 %v5384_v55, %v5383_v43  ;;  %2927 = vrsqrt.f32 %v794_v13  ;;  %v2918_v56 = vpop.eup %2917  ;;  %v2937_v7 = vld [vmem:[%s3654_s17 + $0xf8] sm:$0xff] }
 0x1ae   : > { %v852_v0 = vmul.f32 %v2916_v47, %v5382_v35  ;;  %v892_v1 = vmul.f32 %v4127_v51, %v853_v16  ;;  %v732_v22 = vsub.f32 %v668_v26, %v700_v30  ;;  %v758_v32 = vsub.f32 %v5385_v28, %v4122_v50  ;;  %v2920_v31 = vpop.eup %2919  ;;  %v2938_v47 = vld [vmem:[%s3654_s17 + $0xf0] sm:$0xff] }
 0x1af   : > { %v950_v49 = vpack.c.bf16 %v929_v34, %v928_v2  ;;  %v797_v23 = vadd.f32 1e-05, %v733_v17  ;;  %v855_v33 = vmul.f32 %v2918_v56, %v759_v60  ;;  %v761_v59 = vsub.f32 %v2933_v14, %v4157_v3 }
 0x1b0   : > { %v891_v24 = vmul.f32 %v4127_v51, %v852_v0  ;;  %v931_v53 = vadd.f32 %v4145_v12, %v892_v1  ;;  %v796_v46 = vadd.f32 1e-05, %v732_v22  ;;  %v854_v62 = vmul.f32 %v2920_v31, %v758_v32 }
 0x1b1   : > { %966 = vst [vmem:[#allocation2 + $0x50] sm:$0xff] %v950_v49  ;;  %2929 = vrsqrt.f32 %v797_v23  ;;  %v894_v50 = vmul.f32 %v4127_v51, %v855_v33  ;;  %v760_v41 = vsub.f32 %v2934_v6, %v4162_v61  ;;  %v763_v38 = vsub.f32 %v2935_v11, %v4206_v15  ;;  %v2936_v61 = vld [vmem:[%s3654_s17 + $0xe0] sm:$0xff] }
 0x1b2   : > { %v930_v18 = vadd.f32 %v4145_v12, %v891_v24  ;;  %2931 = vrsqrt.f32 %v796_v46  ;;  %v2922_v45 = vpop.eup %2921  ;;  %v893_v42 = vmul.f32 %v4127_v51, %v854_v62  ;;  %v762_v52 = vsub.f32 %v2936_v61, %v4221_v36 }
 0x1b3   : > { %v2924_v44 = vpop.eup %2923  ;;  %v933_v54 = vadd.f32 %v4145_v12, %v894_v50  ;;  %v857_v10 = vmul.f32 %v2922_v45, %v761_v59  ;;  %v765_v15 = vsub.f32 %v2937_v7, %v4268_v40  ;;  %v764_v36 = vsub.f32 %v2938_v47, %v4283_v48 }
 0x1b4   : > { %v951_v19 = vpack.c.bf16 %v931_v53, %v930_v18  ;;  %v932_v4 = vadd.f32 %v4145_v12, %v893_v42  ;;  %v856_v3 = vmul.f32 %v2924_v44, %v760_v41 }
 0x1b5   : > { %v896_v27 = vmul.f32 %v4127_v51, %v857_v10 }
 0x1b6   : > { %967 = vst [vmem:[#allocation2 + $0x58] sm:$0xff] %v951_v19  ;;  %v2926_v39 = vpop.eup %2925  ;;  %v952_v30 = vpack.c.bf16 %v933_v54, %v932_v4  ;;  %v895_v57 = vmul.f32 %v4127_v51, %v856_v3 }
 0x1b7   : > { %v2928_v20 = vpop.eup %2927  ;;  %v935_v63 = vadd.f32 %v4145_v12, %v896_v27  ;;  %v859_v25 = vmul.f32 %v2926_v39, %v763_v38 }
 0x1b8   : > { %968 = vst [vmem:[#allocation2 + $0x60] sm:$0xff] %v952_v30  ;;  %v934_v37 = vadd.f32 %v4145_v12, %v895_v57  ;;  %v858_v5 = vmul.f32 %v2928_v20, %v762_v52 }
 0x1b9   : > { %v898_v58 = vmul.f32 %v4127_v51, %v859_v25 }
 0x1ba   : > { %v953_v34 = vpack.c.bf16 %v935_v63, %v934_v37  ;;  %v897_v8 = vmul.f32 %v4127_v51, %v858_v5 }
 0x1bb   : > { %v2930_v21 = vpop.eup %2929  ;;  %v937_v16 = vadd.f32 %v4145_v12, %v898_v58 }
 0x1bc   : > { %v2932_v9 = vpop.eup %2931  ;;  %v861_v13 = vmul.f32 %v2930_v21, %v765_v15  ;;  %969 = vst [vmem:[#allocation2 + $0x68] sm:$0xff] %v953_v34  ;;  %v936_v26 = vadd.f32 %v4145_v12, %v897_v8 }
 0x1bd   : > { %v860_v2 = vmul.f32 %v2932_v9, %v764_v36 }
 0x1be   : > { %v900_v29 = vmul.f32 %v4127_v51, %v861_v13  ;;  %v954_v40 = vpack.c.bf16 %v937_v16, %v936_v26 }
 0x1bf   : > { %v899_v35 = vmul.f32 %v4127_v51, %v860_v2 }
 0x1c0   : > { %v939_v0 = vadd.f32 %v4145_v12, %v900_v29  ;;  %970 = vst [vmem:[#allocation2 + $0x70] sm:$0xff] %v954_v40 }
 0x1c1   : > { %v938_v48 = vadd.f32 %v4145_v12, %v899_v35 }
 0x1c3   : > { %v955_v17 = vpack.c.bf16 %v939_v0, %v938_v48 }
 0x1c5   : > { %971 = vst [vmem:[#allocation2 + $0x78] sm:$0xff] %v955_v17 }
 0x1c6 PF: > { %v2939_v43 = vld [vmem:[%s3662_s20 + $0x4] ss:$8 sps:$4 sm:$0xff]   ;;  %v2941_v55 = vld [vmem:[%s3662_s20] ss:$8 sps:$4 sm:$0xff]   ;;  %v3334_v51 = vmov 0   ;;  %v1006_v14 = vld [vmem:[#allocation2 + $0x10] sm:$0xff]  ;;  %v1038_v47 = vlaneseq }
 0x1c7   : > { %1160 = vmatprep.mubr.bf16.mxu0 %v3334_v51  ;;  %1128 = vmatprep.subr.bf16.mxu0 %v2939_v43  ;;  %v2942_v12 = vld [vmem:[%s3662_s20 + $0x14] ss:$8 sps:$4 sm:$0xff]   ;;  %v2944_v60 = vld [vmem:[%s3662_s20 + $0x10] ss:$8 sps:$4 sm:$0xff]   ;;  %v2945_v1 = vld [vmem:[%s3662_s20 + $0x24] ss:$8 sps:$4 sm:$0xff]  }
 0x1c8   : > { %1129 = vmatpush1.bf16.msra.mxu0 %v2941_v55  ;;  %v2947_v22 = vld [vmem:[%s3662_s20 + $0x20] ss:$8 sps:$4 sm:$0xff]   ;;  %v2948_v56 = vld [vmem:[%s3662_s20 + $0x34] ss:$8 sps:$4 sm:$0xff]   ;;  %v2950_v28 = vld [vmem:[%s3662_s20 + $0x30] ss:$8 sps:$4 sm:$0xff]  }
 0x1c9   : > { %1130 = vmatprep.subr.bf16.mxu0 %v2942_v12  ;;  %v2951_v32 = vld [vmem:[%s3662_s20 + $0x44] ss:$8 sps:$4 sm:$0xff]   ;;  %v2953_v49 = vld [vmem:[%s3662_s20 + $0x40] ss:$8 sps:$4 sm:$0xff]   ;;  %v2954_v24 = vld [vmem:[%s3662_s20 + $0x54] ss:$8 sps:$4 sm:$0xff]  }
 0x1ca   : > { %v2956_v23 = vld [vmem:[%s3662_s20 + $0x50] ss:$8 sps:$4 sm:$0xff]   ;;  %v2957_v31 = vld [vmem:[%s3662_s20 + $0x64] ss:$8 sps:$4 sm:$0xff]   ;;  %v2959_v53 = vld [vmem:[%s3662_s20 + $0x60] ss:$8 sps:$4 sm:$0xff]  }
 0x1cb   : > { %v2960_v33 = vld [vmem:[%s3662_s20 + $0x74] ss:$8 sps:$4 sm:$0xff]   ;;  %v2962_v46 = vld [vmem:[%s3662_s20 + $0x70] ss:$8 sps:$4 sm:$0xff]   ;;  %v1004_v18 = vld [vmem:[#allocation2] sm:$0xff]  ;;  %v1039_v36 = vshrl.u32 %v1038_v47, 7 }
 0x1cc   : > { %1131 = vmatpush1.bf16.msra.mxu0 %v2944_v60  ;;  %v1005_v62 = vld [vmem:[#allocation2 + $0x8] sm:$0xff]  ;;  %v1007_v59 = vld [vmem:[#allocation2 + $0x18] sm:$0xff]  ;;  %v1008_v50 = vld [vmem:[#allocation2 + $0x20] sm:$0xff]  ;;  %p2625_p2 = scmp.ne.s32.totalorder %s3307_s30, 1 }
 0x1cd   : > { %1132 = vmatprep.subr.bf16.mxu0 %v2945_v1  ;;  %v1009_v45 = vld [vmem:[#allocation2 + $0x28] sm:$0xff]  ;;  %v1010_v6 = vld [vmem:[#allocation2 + $0x30] sm:$0xff]  ;;  %v1011_v41 = vld [vmem:[#allocation2 + $0x38] sm:$0xff]  ;;  %v1040_v34 = vsub.s32 0, %v1039_v36  ;;  %v1044_v9 = vsub.s32 1, %v1039_v36  ;;  %s5386_s16 = sld [smem:[#allocation52_spill]] (!%p2625_p2) }
 0x1ce   : > { %v1012_v19 = vld [vmem:[#allocation2 + $0x40] sm:$0xff]  ;;  %v1013_v42 = vld [vmem:[#allocation2 + $0x48] sm:$0xff]  ;;  %v1014_v44 = vld [vmem:[#allocation2 + $0x50] sm:$0xff] }
 0x1cf   : > { %v2963_v54 = vld [vmem:[%s3675_s8 + $0x40] sm:$0xff]   ;;  %v1015_v4 = vld [vmem:[#allocation2 + $0x58] sm:$0xff]  ;;  %v2965_v3 = vld [vmem:[%s3675_s8 + $0x48] sm:$0xff]  }
 0x1d0   : > { %1133 = vmatpush1.bf16.msra.mxu0 %v2947_v22  ;;  %v2964_v10 = vld [vmem:[%s3675_s8] sm:$0xff]   ;;  %2636 = vmatprep.subr.bf16.mxu1 %v2963_v54  ;;  %v2966_v11 = vld [vmem:[%s3675_s8 + $0x8] sm:$0xff]   ;;  %v2967_v38 = vld [vmem:[%s3675_s8 + $0x50] sm:$0xff]  }
 0x1d1   : > { %1134 = vmatprep.subr.bf16.mxu0 %v2948_v56  ;;  %2637 = vmatpush3.bf16.msra.mxu1 %v2964_v10  ;;  %v2968_v27 = vld [vmem:[%s3675_s8 + $0x10] sm:$0xff]   ;;  %v1016_v39 = vld [vmem:[#allocation2 + $0x60] sm:$0xff]  ;;  %v2969_v61 = vld [vmem:[%s3675_s8 + $0x58] sm:$0xff]  }
 0x1d2   : > { %2638 = vmatprep.subr.bf16.mxu1 %v2965_v3  ;;  %v2970_v52 = vld [vmem:[%s3675_s8 + $0x18] sm:$0xff]   ;;  %v2971_v30 = vld [vmem:[%s3675_s8 + $0x60] sm:$0xff]   ;;  %v1017_v20 = vld [vmem:[#allocation2 + $0x68] sm:$0xff] }
 0x1d3   : > { %v2972_v57 = vld [vmem:[%s3675_s8 + $0x20] sm:$0xff]   ;;  %v2973_v63 = vld [vmem:[%s3675_s8 + $0x68] sm:$0xff]   ;;  %v2975_v37 = vld [vmem:[%s3675_s8 + $0x70] sm:$0xff]  }
 0x1d4   : > { %1135 = vmatpush1.bf16.msra.mxu0 %v2950_v28  ;;  %v2974_v25 = vld [vmem:[%s3675_s8 + $0x28] sm:$0xff]   ;;  %v2976_v5 = vld [vmem:[%s3675_s8 + $0x30] sm:$0xff]   ;;  %v2977_v15 = vld [vmem:[%s3675_s8 + $0x78] sm:$0xff]  }
 0x1d5   : > { %1136 = vmatprep.subr.bf16.mxu0 %v2951_v32  ;;  %2639 = vmatpush3.bf16.msra.mxu1 %v2966_v11  ;;  %v1018_v7 = vld [vmem:[#allocation2 + $0x70] sm:$0xff]  ;;  %v2978_v58 = vld [vmem:[%s3675_s8 + $0x38] sm:$0xff]   ;;  %v1036_v8 = vld [vmem:[%s405_s12] sm:$0x3] }
 0x1d6   : > { %2640 = vmatprep.subr.bf16.mxu1 %v2967_v38  ;;  %v1019_v21 = vld [vmem:[#allocation2 + $0x78] sm:$0xff]  ;;  %v4413_v16 = vrot.slane %v1036_v8, %v1040_v34  ;;  %v4415_v13 = vrot.slane %v1036_v8, %v1044_v9 }
 0x1d8   : > { %1137 = vmatpush1.bf16.msra.mxu0 %v2953_v49 }
 0x1d9   : > { %1138 = vmatprep.subr.bf16.mxu0 %v2954_v24  ;;  %2641 = vmatpush3.bf16.msra.mxu1 %v2968_v27 }
 0x1da   : > { %2642 = vmatprep.subr.bf16.mxu1 %v2969_v61 }
 0x1dc   : > { %1139 = vmatpush1.bf16.msra.mxu0 %v2956_v23 }
 0x1dd   : > { %1140 = vmatprep.subr.bf16.mxu0 %v2957_v31  ;;  %2643 = vmatpush3.bf16.msra.mxu1 %v2970_v52 }
 0x1de   : > { %2644 = vmatprep.subr.bf16.mxu1 %v2971_v30 }
 0x1e0   : > { %1141 = vmatpush1.bf16.msra.mxu0 %v2959_v53 }
 0x1e1   : > { %1142 = vmatprep.subr.bf16.mxu0 %v2960_v33  ;;  %2645 = vmatpush3.bf16.msra.mxu1 %v2972_v57 }
 0x1e2   : > { %2646 = vmatprep.subr.bf16.mxu1 %v2973_v63 }
 0x1e4   : > { %1143 = vmatpush1.bf16.msra.mxu0 %v2962_v46 }
 0x1e5   : > { %2647 = vmatpush3.bf16.msra.mxu1 %v2974_v25 }
 0x1e6   : > { %2648 = vmatprep.subr.bf16.mxu1 %v2975_v37 }
 0x1e7   : > { %1161 = vmatmul.mubr.bf16.vlgmr.msra.gmra.mrb[0].mxu0 %v1004_v18 }
 0x1e8   : > { %1170 = vmatprep.mubr.bf16.mxu0 %v3334_v51 }
 0x1e9   : > { %2649 = vmatpush3.bf16.msra.mxu1 %v2976_v5 }
 0x1ea   : > { %2650 = vmatprep.subr.bf16.mxu1 %v2977_v15 }
 0x1ed   : > { %2651 = vmatpush3.bf16.msra.mxu1 %v2978_v58 }
 0x1ef   : > { %1171 = vmatmul.mubr.bf16.gmra.mrb[4].mxu0 %v1005_v62 }
 0x1f0   : > { %1180 = vmatprep.mubr.bf16.mxu0 %v3334_v51 }
 0x1f7   : > { %1181 = vmatmul.mubr.bf16.gmra.mrb[8].mxu0 %v1006_v14 }
 0x1f8   : > { %1190 = vmatprep.mubr.bf16.mxu0 %v3334_v51 }
 0x1ff   : > { %1191 = vmatmul.mubr.bf16.gmra.mrb[12].mxu0 %v1007_v59 }
 0x200   : > { %1200 = vmatprep.mubr.bf16.mxu0 %v3334_v51 }
 0x207   : > { %1201 = vmatmul.mubr.bf16.gmra.mrb[16].mxu0 %v1008_v50 }
 0x208   : > { %1210 = vmatprep.mubr.bf16.mxu0 %v3334_v51 }
 0x20f   : > { %1211 = vmatmul.mubr.bf16.gmra.mrb[20].mxu0 %v1009_v45 }
 0x210   : > { %1220 = vmatprep.mubr.bf16.mxu0 %v3334_v51 }
 0x217   : > { %1221 = vmatmul.mubr.bf16.gmra.mrb[24].mxu0 %v1010_v6 }
 0x218   : > { %1230 = vmatprep.mubr.bf16.mxu0 %v3334_v51 }
 0x21f   : > { %1231 = vmatmul.mubr.bf16.gmra.mrb[28].mxu0 %v1011_v41 }
 0x220   : > { %1240 = vmatprep.mubr.bf16.mxu0 %v3334_v51 }
 0x227   : > { %1241 = vmatmul.mubr.bf16.gmra.mrb[32].mxu0 %v1012_v19 }
 0x228   : > { %1250 = vmatprep.mubr.bf16.mxu0 %v3334_v51 }
 0x22f   : > { %1251 = vmatmul.mubr.bf16.gmra.mrb[36].mxu0 %v1013_v42 }
 0x230   : > { %1260 = vmatprep.mubr.bf16.mxu0 %v3334_v51 }
 0x237   : > { %1261 = vmatmul.mubr.bf16.gmra.mrb[40].mxu0 %v1014_v44 }
 0x238   : > { %1270 = vmatprep.mubr.bf16.mxu0 %v3334_v51 }
 0x23f   : > { %1271 = vmatmul.mubr.bf16.gmra.mrb[44].mxu0 %v1015_v4 }
 0x240   : > { %1280 = vmatprep.mubr.bf16.mxu0 %v3334_v51 }
 0x247   : > { %1281 = vmatmul.mubr.bf16.gmra.mrb[48].mxu0 %v1016_v39 }
 0x248   : > { %1290 = vmatprep.mubr.bf16.mxu0 %v3334_v51 }
 0x24f   : > { %1291 = vmatmul.mubr.bf16.gmra.mrb[52].mxu0 %v1017_v20 }
 0x250   : > { %1300 = vmatprep.mubr.bf16.mxu0 %v3334_v51 }
 0x257   : > { %1301 = vmatmul.mubr.bf16.gmra.mrb[56].mxu0 %v1018_v7 }
 0x258   : > { %1310 = vmatprep.mubr.bf16.mxu0 %v3334_v51 }
 0x25f   : > { %1311 = vmatmul.mubr.bf16.gmra.mrb[60].mxu0 %v1019_v21 }
 0x2ba   : > { %v1162_v26 = vpop.f32.mrb[0].mxu0 }
 0x2bb   : > { %v1163_v2 = vadd.f32 %v1162_v26, %v4413_v16  ;;  %v1164_v29 = vpop.f32.mrb[1].mxu0 }
 0x2bc   : > { %v1165_v40 = vadd.f32 %v1164_v29, %v4415_v13  ;;  %v1166_v35 = vpop.f32.mrb[2].mxu0 }
 0x2bd   : > { %v1385_v0 = vmul.f32 0.044715, %v1163_v2  ;;  %v4420_v48 = vadd.f32 %v1166_v35, %v4413_v16  ;;  %v1168_v17 = vpop.f32.mrb[3].mxu0  ;;  %v1321_v36 = vmul.f32 0.5, %v1163_v2 }
 0x2be   : > { %v1386_v43 = vmul.f32 0.044715, %v1165_v40  ;;  %v4423_v55 = vadd.f32 %v1168_v17, %v4415_v13  ;;  %v1322_v47 = vmul.f32 0.5, %v1165_v40 }
 0x2bf   : > { %v1449_v51 = vmul.f32 %v1385_v0, %v1163_v2  ;;  %v1387_v12 = vmul.f32 0.044715, %v4420_v48 }
 0x2c0   : > { %v1388_v60 = vmul.f32 0.044715, %v4423_v55  ;;  %v1450_v1 = vmul.f32 %v1386_v43, %v1165_v40 }
 0x2c1   : > { %v1513_v22 = vmul.f32 %v1449_v51, %v1163_v2  ;;  %v1451_v56 = vmul.f32 %v1387_v12, %v4420_v48 }
 0x2c2   : > { %v1172_v28 = vpop.f32.mrb[4].mxu0  ;;  %v1452_v32 = vmul.f32 %v1388_v60, %v4423_v55  ;;  %v1514_v49 = vmul.f32 %v1450_v1, %v1165_v40  ;;  %v1323_v60 = vmul.f32 0.5, %v4420_v48 }
 0x2c3   : > { %v1515_v24 = vmul.f32 %v1451_v56, %v4420_v48  ;;  %v4431_v23 = vadd.f32 %v1172_v28, %v4413_v16  ;;  %v1174_v31 = vpop.f32.mrb[5].mxu0  ;;  %v1577_v53 = vadd.f32 %v1513_v22, %v1163_v2 }
 0x2c4   : > { %v1175_v33 = vadd.f32 %v1174_v31, %v4415_v13  ;;  %v1176_v46 = vpop.f32.mrb[6].mxu0  ;;  %v1516_v18 = vmul.f32 %v1452_v32, %v4423_v55  ;;  %v1578_v62 = vadd.f32 %v1514_v49, %v1165_v40  ;;  %v1324_v40 = vmul.f32 0.5, %v4423_v55 }
 0x2c5   : > { %v1389_v14 = vmul.f32 0.044715, %v4431_v23  ;;  %v4437_v59 = vadd.f32 %v1176_v46, %v4413_v16  ;;  %v1178_v50 = vpop.f32.mrb[7].mxu0  ;;  %v1579_v45 = vadd.f32 %v1515_v24, %v4420_v48  ;;  %v1641_v6 = vmul.f32 0.7978846, %v1577_v53 }
 0x2c6   : > { %v1390_v41 = vmul.f32 0.044715, %v1175_v33  ;;  %v1179_v19 = vadd.f32 %v1178_v50, %v4415_v13  ;;  %v1580_v42 = vadd.f32 %v1516_v18, %v4423_v55  ;;  %v1642_v44 = vmul.f32 0.7978846, %v1578_v62 }
 0x2c7   : > { %v1453_v54 = vmul.f32 %v1389_v14, %v4431_v23  ;;  %v1391_v10 = vmul.f32 0.044715, %v4437_v59  ;;  %v1643_v4 = vmul.f32 0.7978846, %v1579_v45  ;;  %2979 = vtanh.f32 %v1641_v6 }
 0x2c8   : > { %v1454_v3 = vmul.f32 %v1390_v41, %v1175_v33  ;;  %v1392_v11 = vmul.f32 0.044715, %v1179_v19  ;;  %v1644_v38 = vmul.f32 0.7978846, %v1580_v42  ;;  %2981 = vtanh.f32 %v1642_v44 }
 0x2c9   : > { %v1517_v27 = vmul.f32 %v1453_v54, %v4431_v23  ;;  %v1455_v39 = vmul.f32 %v1391_v10, %v4437_v59  ;;  %2983 = vtanh.f32 %v1643_v4  ;;  %v4467_v1 = vmul.f32 0.5, %v1175_v33 }
 0x2ca   : > { %v1518_v61 = vmul.f32 %v1454_v3, %v1175_v33  ;;  %v1456_v52 = vmul.f32 %v1392_v11, %v1179_v19  ;;  %v1182_v30 = vpop.f32.mrb[8].mxu0  ;;  %2985 = vtanh.f32 %v1644_v38  ;;  %v1328_v18 = vmul.f32 0.5, %v1179_v19 }
 0x2cb   : > { %v1519_v57 = vmul.f32 %v1455_v39, %v4437_v59  ;;  %v4448_v20 = vadd.f32 %v1182_v30, %v4413_v16  ;;  %v1184_v63 = vpop.f32.mrb[9].mxu0  ;;  %v1581_v15 = vadd.f32 %v1517_v27, %v4431_v23  ;;  %v1325_v42 = vmul.f32 0.5, %v4431_v23 }
 0x2cc   : > { %v1520_v25 = vmul.f32 %v1456_v52, %v1179_v19  ;;  %v4451_v37 = vadd.f32 %v1184_v63, %v4415_v13  ;;  %v1186_v5 = vpop.f32.mrb[10].mxu0  ;;  %v1582_v7 = vadd.f32 %v1518_v61, %v1175_v33 }
 0x2cd   : > { %v4455_v58 = vadd.f32 %v1186_v5, %v4413_v16  ;;  %v1188_v21 = vpop.f32.mrb[11].mxu0  ;;  %v1583_v34 = vadd.f32 %v1519_v57, %v4437_v59  ;;  %v1393_v35 = vmul.f32 0.044715, %v4448_v20  ;;  %v1645_v0 = vmul.f32 0.7978846, %v1581_v15 }
 0x2ce   : > { %v1394_v8 = vmul.f32 0.044715, %v4451_v37  ;;  %v4460_v9 = vadd.f32 %v1188_v21, %v4415_v13  ;;  %v1584_v26 = vadd.f32 %v1520_v25, %v1179_v19  ;;  %v1646_v29 = vmul.f32 0.7978846, %v1582_v7 }
 0x2cf   : > { %v1647_v17 = vmul.f32 0.7978846, %v1583_v34  ;;  %v1395_v56 = vmul.f32 0.044715, %v4455_v58  ;;  %v1457_v48 = vmul.f32 %v1393_v35, %v4448_v20  ;;  %v1327_v19 = vmul.f32 0.5, %v4437_v59 }
 0x2d0   : > { %v1458_v43 = vmul.f32 %v1394_v8, %v4451_v37  ;;  %v1396_v51 = vmul.f32 0.044715, %v4460_v9  ;;  %v1648_v12 = vmul.f32 0.7978846, %v1584_v26  ;;  %2987 = vtanh.f32 %v1646_v29 }
 0x2d1   : > { %v2980_v2 = vpop.eup %2979  ;;  %2989 = vtanh.f32 %v1645_v0  ;;  %v1459_v44 = vmul.f32 %v1395_v56, %v4455_v58  ;;  %v4488_v27 = vmul.f32 0.5, %v4448_v20  ;;  %v1521_v39 = vmul.f32 %v1457_v48, %v4448_v20 }
 0x2d2   : > { %v2982_v22 = vpop.eup %2981  ;;  %v1460_v28 = vmul.f32 %v1396_v51, %v4460_v9  ;;  %v1192_v32 = vpop.f32.mrb[12].mxu0  ;;  %v1769_v49 = vadd.f32 1.0, %v2980_v2  ;;  %2991 = vtanh.f32 %v1648_v12  ;;  %v1522_v31 = vmul.f32 %v1458_v43, %v4451_v37 }
 0x2d3   : > { %v2984_v24 = vpop.eup %2983  ;;  %v1194_v53 = vpop.f32.mrb[13].mxu0  ;;  %v1770_v46 = vadd.f32 1.0, %v2982_v22  ;;  %2993 = vtanh.f32 %v1647_v17  ;;  %v4475_v62 = vadd.f32 %v1192_v32, %v4413_v16  ;;  %v1523_v5 = vmul.f32 %v1459_v44, %v4455_v58 }
 0x2d4   : > { %v2986_v55 = vpop.eup %2985  ;;  %v1524_v33 = vmul.f32 %v1460_v28, %v4460_v9  ;;  %v1196_v14 = vpop.f32.mrb[14].mxu0  ;;  %v1771_v50 = vadd.f32 1.0, %v2984_v24  ;;  %v4478_v45 = vadd.f32 %v1194_v53, %v4415_v13  ;;  %v1833_v10 = vmul.f32 %v1769_v49, %v1321_v36 }
 0x2d5   : > { %v1198_v6 = vpop.f32.mrb[15].mxu0  ;;  %v1772_v41 = vadd.f32 1.0, %v2986_v55  ;;  %v1834_v3 = vmul.f32 %v1770_v46, %v1322_v47  ;;  %v1586_v38 = vadd.f32 %v1522_v31, %v4451_v37  ;;  %v1397_v23 = vmul.f32 0.044715, %v4475_v62 }
 0x2d6   : > { %v4484_v54 = vadd.f32 %v1198_v6, %v4415_v13  ;;  %v1835_v4 = vmul.f32 %v1771_v50, %v1323_v60  ;;  %v1588_v59 = vadd.f32 %v1524_v33, %v4460_v9  ;;  %v1398_v52 = vmul.f32 0.044715, %v4478_v45 }
 0x2d7   : > { %v1836_v11 = vmul.f32 %v1772_v41, %v1324_v40  ;;  %v1650_v63 = vmul.f32 0.7978846, %v1586_v38  ;;  %v4497_v7 = vadd.f32 %v1196_v14, %v4413_v16  ;;  %v4500_v21 = vmul.f32 0.5, %v4451_v37 }
 0x2d8   : > { %v1929_v61 = vpack.c.bf16 %v1835_v4, %v1833_v10  ;;  %v1400_v30 = vmul.f32 0.044715, %v4484_v54  ;;  %v1652_v47 = vmul.f32 0.7978846, %v1588_v59  ;;  %v4506_v29 = vmul.f32 0.5, %v4460_v9 }
 0x2d9   : > { %v1930_v57 = vpack.c.bf16 %v1836_v11, %v1834_v3  ;;  %2995 = vtanh.f32 %v1650_v63  ;;  %v1461_v0 = vmul.f32 %v1397_v23, %v4475_v62  ;;  %v1462_v12 = vmul.f32 %v1398_v52, %v4478_v45 }
 0x2da   : > { %v2988_v25 = vpop.eup %2987  ;;  %v1202_v15 = vpop.f32.mrb[16].mxu0  ;;  %2997 = vtanh.f32 %v1652_v47  ;;  %v1464_v2 = vmul.f32 %v1400_v30, %v4484_v54  ;;  %v1399_v22 = vmul.f32 0.044715, %v4497_v7  ;;  %v1585_v53 = vadd.f32 %v1521_v39, %v4448_v20 }
 0x2db   : > { %v2990_v36 = vpop.eup %2989  ;;  %v4503_v34 = vadd.f32 %v1202_v15, %v4413_v16  ;;  %v1204_v8 = vpop.f32.mrb[17].mxu0  ;;  %2121 = vmatprep.mubr.bf16.mxu1 %v1930_v57  ;;  %v1774_v26 = vadd.f32 1.0, %v2988_v25  ;;  %v1587_v33 = vadd.f32 %v1523_v5, %v4455_v58  ;;  %v1526_v14 = vmul.f32 %v1462_v12, %v4478_v45 }
 0x2dc   : > { %v2992_v35 = vpop.eup %2991  ;;  %v4510_v17 = vadd.f32 %v1204_v8, %v4415_v13  ;;  %v1206_v37 = vpop.f32.mrb[18].mxu0  ;;  %2122 = vmatmul.mubr.bf16.vlgmr.msra.gmra.mrb[0].mxu1 %v1929_v61  ;;  %v1773_v43 = vadd.f32 1.0, %v2990_v36  ;;  %v1528_v50 = vmul.f32 %v1464_v2, %v4484_v54  ;;  %v1649_v41 = vmul.f32 0.7978846, %v1585_v53 }
 0x2dd   : > { %v2994_v51 = vpop.eup %2993  ;;  %v4515_v40 = vadd.f32 %v1206_v37, %v4413_v16  ;;  %v1208_v9 = vpop.f32.mrb[19].mxu0  ;;  %v1776_v60 = vadd.f32 1.0, %v2992_v35  ;;  %v1401_v56 = vmul.f32 0.044715, %v4503_v34  ;;  %v1838_v24 = vmul.f32 %v1774_v26, %v4467_v1 }
 0x2de   : > { %v4520_v28 = vadd.f32 %v1208_v9, %v4415_v13  ;;  %v1775_v32 = vadd.f32 1.0, %v2994_v51  ;;  %v1402_v49 = vmul.f32 0.044715, %v4510_v17  ;;  %v1837_v55 = vmul.f32 %v1773_v43, %v1325_v42 }
 0x2df   : > { %v1840_v31 = vmul.f32 %v1776_v60, %v1328_v18  ;;  %v1403_v46 = vmul.f32 0.044715, %v4515_v40  ;;  %v1463_v44 = vmul.f32 %v1399_v22, %v4497_v7  ;;  %v1651_v4 = vmul.f32 0.7978846, %v1587_v33 }
 0x2e0   : > { %v1839_v48 = vmul.f32 %v1775_v32, %v1327_v19  ;;  %v1404_v10 = vmul.f32 0.044715, %v4520_v28  ;;  %v1525_v20 = vmul.f32 %v1461_v0, %v4475_v62  ;;  %v1465_v42 = vmul.f32 %v1401_v56, %v4503_v34 }
 0x2e1   : > { %v1932_v6 = vpack.c.bf16 %v1840_v31, %v1838_v24  ;;  %2999 = vtanh.f32 %v1649_v41  ;;  %v1466_v11 = vmul.f32 %v1402_v49, %v4510_v17  ;;  %v1467_v38 = vmul.f32 %v1403_v46, %v4515_v40 }
 0x2e2   : > { %v1212_v1 = vpop.f32.mrb[20].mxu0  ;;  %v1931_v18 = vpack.c.bf16 %v1839_v48, %v1837_v55  ;;  %3001 = vtanh.f32 %v1651_v4  ;;  %v1331_v30 = vmul.f32 0.5, %v4455_v58  ;;  %v1590_v57 = vadd.f32 %v1526_v14, %v4478_v45 }
 0x2e3   : > { %v4534_v19 = vadd.f32 %v1212_v1, %v4413_v16  ;;  %v1214_v3 = vpop.f32.mrb[21].mxu0  ;;  %2129 = vmatprep.mubr.bf16.mxu1 %v1932_v6  ;;  %v2996_v61 = vpop.eup %2995  ;;  %v1592_v63 = vadd.f32 %v1528_v50, %v4484_v54  ;;  %v1527_v5 = vmul.f32 %v1463_v44, %v4497_v7  ;;  %v1468_v15 = vmul.f32 %v1404_v10, %v4520_v28 }
 0x2e4   : > { %v4539_v39 = vadd.f32 %v1214_v3, %v4415_v13  ;;  %v1216_v23 = vpop.f32.mrb[22].mxu0  ;;  %2130 = vmatmul.mubr.bf16.gmra.mrb[4].mxu1 %v1931_v18  ;;  %v2998_v25 = vpop.eup %2997  ;;  %v1778_v36 = vadd.f32 1.0, %v2996_v61  ;;  %v4553_v8 = vmul.f32 %v1465_v42, %v4503_v34  ;;  %v1654_v58 = vmul.f32 0.7978846, %v1590_v57 }
 0x2e5   : > { %v4542_v59 = vadd.f32 %v1216_v23, %v4413_v16  ;;  %v1218_v52 = vpop.f32.mrb[23].mxu0  ;;  %v1405_v26 = vmul.f32 0.044715, %v4534_v19  ;;  %v1780_v35 = vadd.f32 1.0, %v2998_v25  ;;  %v1530_v0 = vmul.f32 %v1466_v11, %v4510_v17 }
 0x2e6   : > { %v4550_v47 = vadd.f32 %v1218_v52, %v4415_v13  ;;  %v4558_v37 = vmul.f32 %v1467_v38, %v4515_v40  ;;  %v1406_v43 = vmul.f32 0.044715, %v4539_v39  ;;  %v1656_v51 = vmul.f32 0.7978846, %v1592_v63 }
 0x2e7   : > { %v1407_v12 = vmul.f32 0.044715, %v4542_v59  ;;  %v1842_v2 = vmul.f32 %v1778_v36, %v4500_v21  ;;  %v1844_v9 = vmul.f32 %v1780_v35, %v4506_v29  ;;  %3003 = vtanh.f32 %v1654_v58 }
 0x2e8   : > { %v1532_v60 = vmul.f32 %v1468_v15, %v4520_v28  ;;  %v1408_v22 = vmul.f32 0.044715, %v4550_v47  ;;  %v4567_v32 = vmul.f32 0.5, %v4478_v45  ;;  %3005 = vtanh.f32 %v1656_v51 }
 0x2e9   : > { %v1469_v49 = vmul.f32 %v1405_v26, %v4534_v19  ;;  %v1934_v53 = vpack.c.bf16 %v1844_v9, %v1842_v2  ;;  %v1589_v21 = vadd.f32 %v1525_v20, %v4475_v62  ;;  %v1470_v29 = vmul.f32 %v1406_v43, %v4539_v39 }
 0x2ea   : > { %v1222_v56 = vpop.f32.mrb[24].mxu0  ;;  %v1336_v48 = vmul.f32 0.5, %v4484_v54  ;;  %v1591_v45 = vadd.f32 %v1527_v5, %v4497_v7  ;;  %v1471_v14 = vmul.f32 %v1407_v12, %v4542_v59  ;;  %v4585_v41 = vmul.f32 0.5, %v4475_v62 }
 0x2eb   : > { %v4571_v24 = vadd.f32 %v1222_v56, %v4413_v16  ;;  %v1224_v31 = vpop.f32.mrb[25].mxu0  ;;  %v3000_v33 = vpop.eup %2999  ;;  %2137 = vmatprep.mubr.bf16.mxu1 %v1934_v53  ;;  %v1653_v44 = vmul.f32 0.7978846, %v1589_v21  ;;  %v1472_v1 = vmul.f32 %v1408_v22, %v4550_v47  ;;  %v4592_v20 = vmul.f32 %v1469_v49, %v4534_v19 }
 0x2ec   : > { %v4576_v46 = vadd.f32 %v1224_v31, %v4415_v13  ;;  %v1226_v55 = vpop.f32.mrb[26].mxu0  ;;  %v3002_v10 = vpop.eup %3001  ;;  %v1777_v18 = vadd.f32 1.0, %v3000_v33  ;;  %v1655_v4 = vmul.f32 0.7978846, %v1591_v45  ;;  %v4596_v11 = vmul.f32 %v1470_v29, %v4539_v39 }
 0x2ed   : > { %v4582_v50 = vadd.f32 %v1226_v55, %v4413_v16  ;;  %v1228_v6 = vpop.f32.mrb[27].mxu0  ;;  %v1409_v42 = vmul.f32 0.044715, %v4571_v24  ;;  %v1779_v3 = vadd.f32 1.0, %v3002_v10  ;;  %3007 = vtanh.f32 %v1653_v44 }
 0x2ee   : > { %v4589_v54 = vadd.f32 %v1228_v6, %v4415_v13  ;;  %v1410_v62 = vmul.f32 0.044715, %v4576_v46  ;;  %3009 = vtanh.f32 %v1655_v4  ;;  %v1841_v23 = vmul.f32 %v1777_v18, %v4488_v27 }
 0x2ef   : > { %v1411_v38 = vmul.f32 0.044715, %v4582_v50  ;;  %v1843_v61 = vmul.f32 %v1779_v3, %v1331_v30  ;;  %v1594_v57 = vadd.f32 %v1530_v0, %v4510_v17  ;;  %v4604_v63 = vmul.f32 %v1471_v14, %v4542_v59 }
 0x2f0   : > { %v1412_v52 = vmul.f32 0.044715, %v4589_v54  ;;  %v4607_v25 = vmul.f32 %v1472_v1, %v4550_v47  ;;  %v1335_v15 = vmul.f32 0.5, %v4497_v7  ;;  %v1596_v36 = vadd.f32 %v1532_v60, %v4520_v28 }
 0x2f1   : > { %v3004_v26 = vpop.eup %3003  ;;  %v1473_v35 = vmul.f32 %v1409_v42, %v4571_v24  ;;  %v1933_v27 = vpack.c.bf16 %v1843_v61, %v1841_v23  ;;  %v1658_v0 = vmul.f32 0.7978846, %v1594_v57  ;;  %v1474_v51 = vmul.f32 %v1410_v62, %v4576_v46 }
 0x2f2   : > { %v1232_v5 = vpop.f32.mrb[28].mxu0  ;;  %v3006_v43 = vpop.eup %3005  ;;  %v1782_v2 = vadd.f32 1.0, %v3004_v26  ;;  %v1660_v7 = vmul.f32 0.7978846, %v1596_v36  ;;  %v1475_v60 = vmul.f32 %v1411_v38, %v4582_v50  ;;  %v1476_v22 = vmul.f32 %v1412_v52, %v4589_v54 }
 0x2f3   : > { %v4613_v30 = vadd.f32 %v1232_v5, %v4413_v16  ;;  %v1234_v58 = vpop.f32.mrb[29].mxu0  ;;  %2138 = vmatmul.mubr.bf16.gmra.mrb[8].mxu1 %v1933_v27  ;;  %v1784_v56 = vadd.f32 1.0, %v3006_v43  ;;  %3011 = vtanh.f32 %v1658_v0  ;;  %v1338_v53 = vmul.f32 0.5, %v4510_v17 }
 0x2f4   : > { %v4617_v12 = vadd.f32 %v1234_v58, %v4415_v13  ;;  %v1236_v9 = vpop.f32.mrb[30].mxu0  ;;  %v1340_v21 = vmul.f32 0.5, %v4520_v28  ;;  %3013 = vtanh.f32 %v1660_v7  ;;  %v4625_v29 = vmul.f32 %v1473_v35, %v4571_v24 }
 0x2f5   : > { %v1238_v49 = vpop.f32.mrb[31].mxu0  ;;  %v1413_v31 = vmul.f32 0.044715, %v4613_v30  ;;  %v1846_v55 = vmul.f32 %v1782_v2, %v4567_v32  ;;  %v1848_v45 = vmul.f32 %v1784_v56, %v1336_v48  ;;  %v4629_v33 = vadd.f32 %v1236_v9, %v4413_v16 }
 0x2f6   : > { %v4632_v14 = vmul.f32 %v1474_v51, %v4576_v46  ;;  %v1414_v6 = vmul.f32 0.044715, %v4617_v12  ;;  %v1593_v17 = vadd.f32 %v4553_v8, %v4503_v34  ;;  %v1595_v28 = vadd.f32 %v4558_v37, %v4515_v40 }
 0x2f7   : > { %v3008_v44 = vpop.eup %3007  ;;  %v4640_v10 = vmul.f32 %v1475_v60, %v4582_v50  ;;  %v4643_v32 = vmul.f32 %v1476_v22, %v4589_v54  ;;  %v1936_v48 = vpack.c.bf16 %v1848_v45, %v1846_v55  ;;  %v4646_v1 = vmul.f32 0.5, %v4503_v34 }
 0x2f8   : > { %v3010_v18 = vpop.eup %3009  ;;  %v1477_v4 = vmul.f32 %v1413_v31, %v4613_v30  ;;  %v1781_v42 = vadd.f32 1.0, %v3008_v44  ;;  %v4650_v8 = vadd.f32 %v1238_v49, %v4415_v13  ;;  %v1657_v37 = vmul.f32 0.7978846, %v1593_v17 }
 0x2f9   : > { %2145 = vmatprep.mubr.bf16.mxu1 %v1936_v48  ;;  %v1415_v62 = vmul.f32 0.044715, %v4629_v33  ;;  %v1783_v38 = vadd.f32 1.0, %v3010_v18  ;;  %v1659_v52 = vmul.f32 0.7978846, %v1595_v28  ;;  %v1478_v34 = vmul.f32 %v1414_v6, %v4617_v12 }
 0x2fa   : > { %v1242_v3 = vpop.f32.mrb[32].mxu0  ;;  %v4661_v36 = vmul.f32 0.5, %v4515_v40  ;;  %3015 = vtanh.f32 %v1657_v37  ;;  %v1845_v26 = vmul.f32 %v1781_v42, %v4585_v41  ;;  %v1416_v0 = vmul.f32 0.044715, %v4650_v8 }
 0x2fb   : > { %v4654_v23 = vadd.f32 %v1242_v3, %v4413_v16  ;;  %v1244_v61 = vpop.f32.mrb[33].mxu0  ;;  %v1847_v35 = vmul.f32 %v1783_v38, %v1335_v15  ;;  %3017 = vtanh.f32 %v1659_v52  ;;  %v1598_v40 = vadd.f32 %v4596_v11, %v4539_v39 }
 0x2fc   : > { %v4658_v57 = vadd.f32 %v1244_v61, %v4415_v13  ;;  %v1246_v5 = vpop.f32.mrb[34].mxu0  ;;  %v1600_v7 = vadd.f32 %v4607_v25, %v4550_v47  ;;  %v1479_v22 = vmul.f32 %v1415_v62, %v4629_v33  ;;  %v4681_v55 = vmul.f32 %v1477_v4, %v4613_v30 }
 0x2fd   : > { %v4665_v27 = vadd.f32 %v1246_v5, %v4413_v16  ;;  %v1248_v58 = vpop.f32.mrb[35].mxu0  ;;  %v1417_v43 = vmul.f32 0.044715, %v4654_v23  ;;  %v3012_v2 = vpop.eup %3011  ;;  %v1935_v9 = vpack.c.bf16 %v1847_v35, %v1845_v26  ;;  %v1662_v31 = vmul.f32 0.7978846, %v1598_v40 }
 0x2fe   : > { %v4670_v51 = vadd.f32 %v1248_v58, %v4415_v13  ;;  %v1418_v41 = vmul.f32 0.044715, %v4658_v57  ;;  %v3014_v60 = vpop.eup %3013  ;;  %v1786_v56 = vadd.f32 1.0, %v3012_v2  ;;  %v4684_v45 = vmul.f32 0.5, %v4539_v39 }
 0x2ff   : > { %v1419_v15 = vmul.f32 0.044715, %v4665_v27  ;;  %2146 = vmatmul.mubr.bf16.gmra.mrb[12].mxu1 %v1935_v9  ;;  %v1788_v11 = vadd.f32 1.0, %v3014_v60  ;;  %v1664_v6 = vmul.f32 0.7978846, %v1600_v7  ;;  %v4687_v17 = vmul.f32 %v1478_v34, %v4617_v12 }
 0x300   : > { %v1420_v49 = vmul.f32 0.044715, %v4670_v51  ;;  %v1480_v25 = vmul.f32 %v1416_v0, %v4650_v8  ;;  %v1481_v28 = vmul.f32 %v1417_v43, %v4654_v23  ;;  %3019 = vtanh.f32 %v1662_v31 }
 0x301   : > { %v1850_v48 = vmul.f32 %v1786_v56, %v1338_v53  ;;  %v1852_v18 = vmul.f32 %v1788_v11, %v1340_v21  ;;  %3021 = vtanh.f32 %v1664_v6  ;;  %v4695_v39 = vmul.f32 %v1479_v22, %v4629_v33 }
 0x302   : > { %v1252_v44 = vpop.f32.mrb[36].mxu0  ;;  %v1482_v3 = vmul.f32 %v1418_v41, %v4658_v57  ;;  %v1483_v37 = vmul.f32 %v1419_v15, %v4665_v27  ;;  %v1484_v62 = vmul.f32 %v1420_v49, %v4670_v51  ;;  %v1597_v21 = vadd.f32 %v4592_v20, %v4534_v19 }
 0x303   : > { %v4692_v4 = vadd.f32 %v1252_v44, %v4413_v16  ;;  %v1254_v42 = vpop.f32.mrb[37].mxu0  ;;  %v1938_v61 = vpack.c.bf16 %v1852_v18, %v1850_v48  ;;  %v4709_v26 = vmul.f32 %v1480_v25, %v4650_v8  ;;  %v1344_v35 = vmul.f32 0.5, %v4550_v47 }
 0x304   : > { %v1256_v38 = vpop.f32.mrb[38].mxu0  ;;  %v4701_v52 = vadd.f32 %v1254_v42, %v4415_v13  ;;  %v3016_v5 = vpop.eup %3015  ;;  %v1599_v58 = vadd.f32 %v4604_v63, %v4542_v59  ;;  %v4718_v40 = vmul.f32 %v1481_v28, %v4654_v23  ;;  %v1661_v9 = vmul.f32 0.7978846, %v1597_v21 }
 0x305   : > { %v4704_v53 = vadd.f32 %v1256_v38, %v4413_v16  ;;  %v1258_v34 = vpop.f32.mrb[39].mxu0  ;;  %v3018_v43 = vpop.eup %3017  ;;  %2153 = vmatprep.mubr.bf16.mxu1 %v1938_v61  ;;  %v1785_v2 = vadd.f32 1.0, %v3016_v5  ;;  %v1421_v20 = vmul.f32 0.044715, %v4692_v4  ;;  %v4722_v41 = vmul.f32 %v1482_v3, %v4658_v57 }
 0x306   : > { %v4715_v0 = vadd.f32 %v1258_v34, %v4415_v13  ;;  %v4725_v47 = vmul.f32 %v1483_v37, %v4665_v27  ;;  %v1787_v15 = vadd.f32 1.0, %v3018_v43  ;;  %v1663_v63 = vmul.f32 0.7978846, %v1599_v58 }
 0x307   : > { %v4728_v7 = vmul.f32 %v1484_v62, %v4670_v51  ;;  %v1422_v60 = vmul.f32 0.044715, %v4701_v52  ;;  %v1423_v22 = vmul.f32 0.044715, %v4704_v53  ;;  %3023 = vtanh.f32 %v1661_v9 }
 0x308   : > { %v1849_v56 = vmul.f32 %v1785_v2, %v4646_v1  ;;  %v1851_v49 = vmul.f32 %v1787_v15, %v4661_v36  ;;  %3025 = vtanh.f32 %v1663_v63  ;;  %v1424_v31 = vmul.f32 0.044715, %v4715_v0 }
 0x309   : > { %v1485_v6 = vmul.f32 %v1421_v20, %v4692_v4  ;;  %v1341_v25 = vmul.f32 0.5, %v4534_v19  ;;  %v1602_v48 = vadd.f32 %v4632_v14, %v4576_v46  ;;  %v1343_v1 = vmul.f32 0.5, %v4542_v59 }
 0x30a   : > { %v1262_v11 = vpop.f32.mrb[40].mxu0  ;;  %v3020_v18 = vpop.eup %3019  ;;  %v1937_v42 = vpack.c.bf16 %v1851_v49, %v1849_v56  ;;  %v1604_v3 = vadd.f32 %v4643_v32, %v4589_v54  ;;  %v1486_v19 = vmul.f32 %v1422_v60, %v4701_v52  ;;  %v1487_v61 = vmul.f32 %v1423_v22, %v4704_v53 }
 0x30b   : > { %v4738_v28 = vadd.f32 %v1262_v11, %v4413_v16  ;;  %v1264_v44 = vpop.f32.mrb[41].mxu0  ;;  %v3022_v62 = vpop.eup %3021  ;;  %v1790_v38 = vadd.f32 1.0, %v3020_v18  ;;  %v1666_v21 = vmul.f32 0.7978846, %v1602_v48  ;;  %v1488_v5 = vmul.f32 %v1424_v31, %v4715_v0 }
 0x30c   : > { %v4744_v36 = vadd.f32 %v1264_v44, %v4415_v13  ;;  %v1266_v37 = vpop.f32.mrb[42].mxu0  ;;  %2154 = vmatmul.mubr.bf16.gmra.mrb[16].mxu1 %v1937_v42  ;;  %v1792_v14 = vadd.f32 1.0, %v3022_v62  ;;  %v4752_v59 = vmul.f32 0.5, %v4576_v46  ;;  %v1668_v58 = vmul.f32 0.7978846, %v1604_v3 }
 0x30d   : > { %v1268_v34 = vpop.f32.mrb[43].mxu0  ;;  %v4755_v43 = vmul.f32 %v1485_v6, %v4692_v4  ;;  %v1425_v32 = vmul.f32 0.044715, %v4738_v28  ;;  %3027 = vtanh.f32 %v1666_v21  ;;  %v4759_v2 = vadd.f32 %v1266_v37, %v4413_v16 }
 0x30e   : > { %v1854_v20 = vmul.f32 %v1790_v38, %v4684_v45  ;;  %v1856_v9 = vmul.f32 %v1792_v14, %v1344_v35  ;;  %v1426_v15 = vmul.f32 0.044715, %v4744_v36  ;;  %3029 = vtanh.f32 %v1668_v58 }
 0x30f   : > { %v4764_v63 = vmul.f32 %v1486_v19, %v4701_v52  ;;  %v4767_v46 = vmul.f32 %v1487_v61, %v4704_v53  ;;  %v1601_v60 = vadd.f32 %v4625_v29, %v4571_v24  ;;  %v1603_v22 = vadd.f32 %v4640_v10, %v4582_v50 }
 0x310   : > { %v1940_v56 = vpack.c.bf16 %v1856_v9, %v1854_v20  ;;  %v4774_v49 = vmul.f32 %v1488_v5, %v4715_v0  ;;  %v1348_v45 = vmul.f32 0.5, %v4589_v54  ;;  %v4778_v35 = vadd.f32 %v1268_v34, %v4415_v13 }
 0x311   : > { %v3024_v11 = vpop.eup %3023  ;;  %v1489_v6 = vmul.f32 %v1425_v32, %v4738_v28  ;;  %v1665_v44 = vmul.f32 0.7978846, %v1601_v60  ;;  %v1667_v48 = vmul.f32 0.7978846, %v1603_v22  ;;  %v1490_v3 = vmul.f32 %v1426_v15, %v4744_v36 }
 0x312   : > { %v1272_v31 = vpop.f32.mrb[44].mxu0  ;;  %v3026_v10 = vpop.eup %3025  ;;  %2161 = vmatprep.mubr.bf16.mxu1 %v1940_v56  ;;  %v1789_v42 = vadd.f32 1.0, %v3024_v11  ;;  %v1427_v54 = vmul.f32 0.044715, %v4759_v2  ;;  %v4790_v38 = vmul.f32 0.5, %v4571_v24  ;;  %v1606_v61 = vadd.f32 %v4687_v17, %v4617_v12 }
 0x313   : > { %v4782_v29 = vadd.f32 %v1272_v31, %v4413_v16  ;;  %v1274_v18 = vpop.f32.mrb[45].mxu0  ;;  %v1791_v19 = vadd.f32 1.0, %v3026_v10  ;;  %3031 = vtanh.f32 %v1665_v44  ;;  %v4795_v34 = vmul.f32 0.5, %v4582_v50 }
 0x314   : > { %v4787_v37 = vadd.f32 %v1274_v18, %v4415_v13  ;;  %v1276_v62 = vpop.f32.mrb[46].mxu0  ;;  %3033 = vtanh.f32 %v1667_v48  ;;  %v1428_v14 = vmul.f32 0.044715, %v4778_v35  ;;  %v1853_v58 = vmul.f32 %v1789_v42, %v1341_v25 }
 0x315   : > { %v1278_v21 = vpop.f32.mrb[47].mxu0  ;;  %v1429_v5 = vmul.f32 0.044715, %v4782_v29  ;;  %v1855_v32 = vmul.f32 %v1791_v19, %v1343_v1  ;;  %v1608_v20 = vadd.f32 %v4709_v26, %v4650_v8  ;;  %v1670_v24 = vmul.f32 0.7978846, %v1606_v61 }
 0x316   : > { %v4802_v9 = vmul.f32 %v1489_v6, %v4738_v28  ;;  %v4805_v17 = vmul.f32 %v1490_v3, %v4744_v36  ;;  %v1491_v50 = vmul.f32 %v1427_v54, %v4759_v2  ;;  %v1430_v15 = vmul.f32 0.044715, %v4787_v37 }
 0x317   : > { %v3028_v60 = vpop.eup %3027  ;;  %v1939_v22 = vpack.c.bf16 %v1855_v32, %v1853_v58  ;;  %v4810_v56 = vmul.f32 0.5, %v4617_v12  ;;  %v1672_v25 = vmul.f32 0.7978846, %v1608_v20  ;;  %3035 = vtanh.f32 %v1670_v24 }
 0x318   : > { %v3030_v1 = vpop.eup %3029  ;;  %v1794_v26 = vadd.f32 1.0, %v3028_v60  ;;  %v1492_v31 = vmul.f32 %v1428_v14, %v4778_v35  ;;  %v1493_v11 = vmul.f32 %v1429_v5, %v4782_v29  ;;  %v4815_v6 = vadd.f32 %v1276_v62, %v4413_v16 }
 0x319   : > { %2162 = vmatmul.mubr.bf16.gmra.mrb[20].mxu1 %v1939_v22  ;;  %v1796_v48 = vadd.f32 1.0, %v3030_v1  ;;  %3037 = vtanh.f32 %v1672_v25  ;;  %v1605_v18 = vadd.f32 %v4681_v55, %v4613_v30  ;;  %v1607_v12 = vadd.f32 %v4695_v39, %v4629_v33 }
 0x31a   : > { %v1282_v44 = vpop.f32.mrb[48].mxu0  ;;  %v4822_v42 = vmul.f32 %v1491_v50, %v4759_v2  ;;  %v1494_v3 = vmul.f32 %v1430_v15, %v4787_v37  ;;  %v4826_v54 = vadd.f32 %v1278_v21, %v4415_v13  ;;  %v1858_v61 = vmul.f32 %v1794_v26, %v4752_v59 }
 0x31b   : > { %v1284_v10 = vpop.f32.mrb[49].mxu0  ;;  %v4829_v62 = vadd.f32 %v1282_v44, %v4413_v16  ;;  %v1860_v14 = vmul.f32 %v1796_v48, %v1348_v45  ;;  %v1669_v55 = vmul.f32 0.7978846, %v1605_v18  ;;  %v1671_v5 = vmul.f32 0.7978846, %v1607_v12 }
 0x31c   : > { %v1286_v19 = vpop.f32.mrb[50].mxu0  ;;  %v4833_v39 = vmul.f32 %v1492_v31, %v4778_v35  ;;  %v1352_v32 = vmul.f32 0.5, %v4650_v8  ;;  %v1431_v20 = vmul.f32 0.044715, %v4815_v6  ;;  %v4838_v21 = vadd.f32 %v1284_v10, %v4415_v13 }
 0x31d   : > { %v1288_v58 = vpop.f32.mrb[51].mxu0  ;;  %v3032_v24 = vpop.eup %3031  ;;  %v1942_v50 = vpack.c.bf16 %v1860_v14, %v1858_v61  ;;  %v4841_v15 = vmul.f32 %v1493_v11, %v4782_v29  ;;  %v4844_v59 = vmul.f32 0.5, %v4613_v30  ;;  %3039 = vtanh.f32 %v1669_v55 }
 0x31e   : > { %v3034_v45 = vpop.eup %3033  ;;  %v1793_v60 = vadd.f32 1.0, %v3032_v24  ;;  %3041 = vtanh.f32 %v1671_v5  ;;  %v1432_v22 = vmul.f32 0.044715, %v4826_v54  ;;  %v1433_v8 = vmul.f32 0.044715, %v4829_v62 }
 0x31f   : > { %2169 = vmatprep.mubr.bf16.mxu1 %v1942_v50  ;;  %v1795_v25 = vadd.f32 1.0, %v3034_v45  ;;  %v4849_v1 = vmul.f32 %v1494_v3, %v4787_v37  ;;  %v1610_v26 = vadd.f32 %v4722_v41, %v4658_v57  ;;  %v1612_v30 = vadd.f32 %v4728_v7, %v4670_v51 }
 0x320   : > { %v1495_v31 = vmul.f32 %v1431_v20, %v4815_v6  ;;  %v1351_v11 = vmul.f32 0.5, %v4629_v33  ;;  %v1434_v44 = vmul.f32 0.044715, %v4838_v21  ;;  %v4859_v48 = vadd.f32 %v1286_v19, %v4413_v16 }
 0x321   : > { %v3036_v12 = vpop.eup %3035  ;;  %v1857_v10 = vmul.f32 %v1793_v60, %v4790_v38  ;;  %v1859_v3 = vmul.f32 %v1795_v25, %v4795_v34  ;;  %v1674_v61 = vmul.f32 0.7978846, %v1610_v26  ;;  %v1676_v41 = vmul.f32 0.7978846, %v1612_v30 }
 0x322   : > { %v1292_v18 = vpop.f32.mrb[52].mxu0  ;;  %v1798_v55 = vadd.f32 1.0, %v3036_v12  ;;  %v1496_v7 = vmul.f32 %v1432_v22, %v4826_v54  ;;  %v1497_v5 = vmul.f32 %v1433_v8, %v4829_v62  ;;  %v1435_v33 = vmul.f32 0.044715, %v4859_v48 }
 0x323   : > { %v1294_v14 = vpop.f32.mrb[53].mxu0  ;;  %v3038_v24 = vpop.eup %3037  ;;  %v1941_v19 = vpack.c.bf16 %v1859_v3, %v1857_v10  ;;  %3043 = vtanh.f32 %v1674_v61  ;;  %v1609_v50 = vadd.f32 %v4718_v40, %v4654_v23  ;;  %v1611_v38 = vadd.f32 %v4725_v47, %v4665_v27 }
 0x324   : > { %v1296_v20 = vpop.f32.mrb[54].mxu0  ;;  %v1800_v45 = vadd.f32 1.0, %v3038_v24  ;;  %v4871_v60 = vmul.f32 %v1495_v31, %v4815_v6  ;;  %v4874_v22 = vmul.f32 0.5, %v4658_v57  ;;  %3045 = vtanh.f32 %v1676_v41 }
 0x325   : > { %v1298_v34 = vpop.f32.mrb[55].mxu0  ;;  %2170 = vmatmul.mubr.bf16.gmra.mrb[24].mxu1 %v1941_v19  ;;  %v1498_v8 = vmul.f32 %v1434_v44, %v4838_v21  ;;  %v1673_v25 = vmul.f32 0.7978846, %v1609_v50  ;;  %v1675_v26 = vmul.f32 0.7978846, %v1611_v38  ;;  %v4878_v30 = vadd.f32 %v1288_v58, %v4415_v13 }
 0x326   : > { %v1862_v40 = vmul.f32 %v1798_v55, %v4810_v56  ;;  %v1864_v47 = vmul.f32 %v1800_v45, %v1352_v32  ;;  %v4882_v12 = vmul.f32 %v1496_v7, %v4826_v54  ;;  %v1356_v31 = vmul.f32 0.5, %v4670_v51 }
 0x327   : > { %v3040_v10 = vpop.eup %3039  ;;  %v4886_v57 = vmul.f32 %v1497_v5, %v4829_v62  ;;  %v1499_v3 = vmul.f32 %v1435_v33, %v4859_v48  ;;  %3047 = vtanh.f32 %v1673_v25  ;;  %v4890_v44 = vadd.f32 %v1292_v18, %v4413_v16 }
 0x328   : > { %v3042_v58 = vpop.eup %3041  ;;  %v1944_v61 = vpack.c.bf16 %v1864_v47, %v1862_v40  ;;  %v1797_v41 = vadd.f32 1.0, %v3040_v10  ;;  %3049 = vtanh.f32 %v1675_v26  ;;  %v4893_v56 = vadd.f32 %v1294_v14, %v4415_v13 }
 0x329   : > { %v1799_v55 = vadd.f32 1.0, %v3042_v58  ;;  %v4896_v51 = vmul.f32 %v1498_v8, %v4838_v21  ;;  %v1436_v7 = vmul.f32 0.044715, %v4878_v30  ;;  %v1614_v5 = vadd.f32 %v4764_v63, %v4701_v52 }
 0x32a   : > { %v1302_v32 = vpop.f32.mrb[56].mxu0  ;;  %2177 = vmatprep.mubr.bf16.mxu1 %v1944_v61  ;;  %v1353_v18 = vmul.f32 0.5, %v4654_v23  ;;  %v1355_v24 = vmul.f32 0.5, %v4665_v27  ;;  %v1616_v14 = vadd.f32 %v4774_v49, %v4715_v0  ;;  %v4906_v19 = vadd.f32 %v1296_v20, %v4413_v16 }
 0x32b   : > { %v1304_v33 = vpop.f32.mrb[57].mxu0  ;;  %v1861_v38 = vmul.f32 %v1797_v41, %v4844_v59  ;;  %v1863_v45 = vmul.f32 %v1799_v55, %v1351_v11  ;;  %v1437_v8 = vmul.f32 0.044715, %v4890_v44  ;;  %v1678_v25 = vmul.f32 0.7978846, %v1614_v5 }
 0x32c   : > { %v1306_v50 = vpop.f32.mrb[58].mxu0  ;;  %v4913_v26 = vmul.f32 %v1499_v3, %v4859_v48  ;;  %v1438_v23 = vmul.f32 0.044715, %v4893_v56  ;;  %v4917_v27 = vmul.f32 0.5, %v4701_v52  ;;  %v1680_v49 = vmul.f32 0.7978846, %v1616_v14 }
 0x32d   : > { %v4910_v63 = vpop.f32.mrb[59].mxu0  ;;  %v3044_v20 = vpop.eup %3043  ;;  %v1943_v40 = vpack.c.bf16 %v1863_v45, %v1861_v38  ;;  %v1500_v47 = vmul.f32 %v1436_v7, %v4878_v30  ;;  %3051 = vtanh.f32 %v1678_v25  ;;  %v1613_v59 = vadd.f32 %v4755_v43, %v4692_v4 }
 0x32e   : > { %v3046_v11 = vpop.eup %3045  ;;  %v1802_v10 = vadd.f32 1.0, %v3044_v20  ;;  %3053 = vtanh.f32 %v1680_v49  ;;  %v1439_v3 = vmul.f32 0.044715, %v4906_v19  ;;  %v1615_v58 = vadd.f32 %v4767_v46, %v4704_v53 }
 0x32f   : > { %2178 = vmatmul.mubr.bf16.gmra.mrb[28].mxu1 %v1943_v40  ;;  %v1804_v52 = vadd.f32 1.0, %v3046_v11  ;;  %v1501_v61 = vmul.f32 %v1437_v8, %v4890_v44  ;;  %v1677_v41 = vmul.f32 0.7978846, %v1613_v59  ;;  %v4927_v55 = vadd.f32 %v1298_v34, %v4415_v13 }
 0x330   : > { %v1502_v7 = vmul.f32 %v1438_v23, %v4893_v56  ;;  %v1360_v43 = vmul.f32 0.5, %v4715_v0  ;;  %v1679_v5 = vmul.f32 0.7978846, %v1615_v58  ;;  %v4932_v14 = vadd.f32 %v1302_v32, %v4413_v16 }
 0x331   : > { %v3048_v45 = vpop.eup %3047  ;;  %v1866_v46 = vmul.f32 %v1802_v10, %v4874_v22  ;;  %v1868_v25 = vmul.f32 %v1804_v52, %v1356_v31  ;;  %v4936_v49 = vmul.f32 %v1500_v47, %v4878_v30  ;;  %3055 = vtanh.f32 %v1677_v41 }
 0x332   : > { %v1312_v38 = vpop.f32.mrb[60].mxu0  ;;  %v3050_v34 = vpop.eup %3049  ;;  %v1801_v20 = vadd.f32 1.0, %v3048_v45  ;;  %v1503_v23 = vmul.f32 %v1439_v3, %v4906_v19  ;;  %3057 = vtanh.f32 %v1679_v5  ;;  %v4940_v0 = vadd.f32 %v1304_v33, %v4415_v13 }
 0x333   : > { %v1314_v8 = vpop.f32.mrb[61].mxu0  ;;  %v1946_v40 = vpack.c.bf16 %v1868_v25, %v1866_v46  ;;  %v1803_v59 = vadd.f32 1.0, %v3050_v34  ;;  %v4945_v22 = vmul.f32 %v1501_v61, %v4890_v44  ;;  %v1440_v31 = vmul.f32 0.044715, %v4927_v55 }
 0x334   : > { %v4942_v32 = vpop.f32.mrb[62].mxu0  ;;  %v4951_v11 = vmul.f32 %v1502_v7, %v4893_v56  ;;  %v1357_v10 = vmul.f32 0.5, %v4692_v4  ;;  %v1441_v3 = vmul.f32 0.044715, %v4932_v14  ;;  %v1618_v33 = vadd.f32 %v4805_v17, %v4744_v36 }
 0x335   : > { %v4948_v47 = vpop.f32.mrb[63].mxu0  ;;  %2185 = vmatprep.mubr.bf16.mxu1 %v1946_v40  ;;  %v1865_v58 = vmul.f32 %v1801_v20, %v1353_v18  ;;  %v1867_v52 = vmul.f32 %v1803_v59, %v1355_v24  ;;  %v1359_v61 = vmul.f32 0.5, %v4704_v53  ;;  %v1620_v41 = vadd.f32 %v4833_v39, %v4778_v35 }
 0x336   : > { %v4961_v5 = vmul.f32 %v1503_v23, %v4906_v19  ;;  %v1442_v7 = vmul.f32 0.044715, %v4940_v0  ;;  %v1682_v45 = vmul.f32 0.7978846, %v1618_v33  ;;  %v4965_v4 = vadd.f32 %v1306_v50, %v4413_v16 }
 0x337   : > { %v3052_v46 = vpop.eup %3051  ;;  %v1945_v25 = vpack.c.bf16 %v1867_v52, %v1865_v58  ;;  %v1504_v17 = vmul.f32 %v1440_v31, %v4927_v55  ;;  %v1684_v18 = vmul.f32 0.7978846, %v1620_v41  ;;  %v1617_v53 = vadd.f32 %v4802_v9, %v4738_v28 }
 0x338   : > { %v3054_v24 = vpop.eup %3053  ;;  %v1806_v34 = vadd.f32 1.0, %v3052_v46  ;;  %v1505_v39 = vmul.f32 %v1441_v3, %v4932_v14  ;;  %3059 = vtanh.f32 %v1682_v45  ;;  %v1619_v20 = vadd.f32 %v4822_v42, %v4759_v2 }
 0x339   : > { %2186 = vmatmul.mubr.bf16.gmra.mrb[32].mxu1 %v1945_v25  ;;  %v1808_v23 = vadd.f32 1.0, %v3054_v24  ;;  %3061 = vtanh.f32 %v1684_v18  ;;  %v1681_v50 = vmul.f32 0.7978846, %v1617_v53  ;;  %v4975_v40 = vadd.f32 %v4910_v63, %v4415_v13 }
 0x33a   : > { %v1506_v59 = vmul.f32 %v1442_v7, %v4940_v0  ;;  %v1443_v9 = vmul.f32 0.044715, %v4965_v4  ;;  %v1683_v31 = vmul.f32 0.7978846, %v1619_v20  ;;  %v4980_v33 = vadd.f32 %v1312_v38, %v4413_v16 }
 0x33b   : > { %v3056_v3 = vpop.eup %3055  ;;  %v1870_v58 = vmul.f32 %v1806_v34, %v4917_v27  ;;  %v1872_v42 = vmul.f32 %v1808_v23, %v1360_v43  ;;  %v1362_v52 = vmul.f32 0.5, %v4744_v36  ;;  %3063 = vtanh.f32 %v1681_v50 }
 0x33c   : > { %v3058_v41 = vpop.eup %3057  ;;  %v1805_v45 = vadd.f32 1.0, %v3056_v3  ;;  %3065 = vtanh.f32 %v1683_v31  ;;  %v1444_v63 = vmul.f32 0.044715, %v4975_v40  ;;  %v4986_v7 = vadd.f32 %v1314_v8, %v4415_v13 }
 0x33d   : > { %v1948_v46 = vpack.c.bf16 %v1872_v42, %v1870_v58  ;;  %v1807_v25 = vadd.f32 1.0, %v3058_v41  ;;  %v1364_v38 = vmul.f32 0.5, %v4778_v35  ;;  %v1445_v18 = vmul.f32 0.044715, %v4980_v33 }
 0x33e   : > { %v4991_v27 = vmul.f32 %v1504_v17, %v4927_v55  ;;  %v4994_v36 = vmul.f32 %v1505_v39, %v4932_v14  ;;  %v4997_v43 = vmul.f32 %v1506_v59, %v4940_v0  ;;  %v1507_v53 = vmul.f32 %v1443_v9, %v4965_v4 }
 0x33f   : > { %2193 = vmatprep.mubr.bf16.mxu1 %v1948_v46  ;;  %v1869_v8 = vmul.f32 %v1805_v45, %v1357_v10  ;;  %v1871_v24 = vmul.f32 %v1807_v25, %v1359_v61  ;;  %v1361_v34 = vmul.f32 0.5, %v4738_v28  ;;  %v1622_v35 = vadd.f32 %v4849_v1, %v4787_v37 }
 0x340   : > { %v1363_v20 = vmul.f32 0.5, %v4759_v2  ;;  %v1508_v17 = vmul.f32 %v1444_v63, %v4975_v40  ;;  %v1446_v39 = vmul.f32 0.044715, %v4986_v7  ;;  %v1624_v23 = vadd.f32 %v4882_v12, %v4826_v54 }
 0x341   : > { %v1947_v50 = vpack.c.bf16 %v1871_v24, %v1869_v8  ;;  %v1509_v59 = vmul.f32 %v1445_v18, %v4980_v33  ;;  %v1686_v9 = vmul.f32 0.7978846, %v1622_v35  ;;  %v5011_v10 = vadd.f32 %v4942_v32, %v4413_v16 }
 0x342   : > { %v3060_v28 = vpop.eup %3059  ;;  %v5014_v1 = vmul.f32 %v1507_v53, %v4965_v4  ;;  %v1688_v2 = vmul.f32 0.7978846, %v1624_v23  ;;  %v1621_v61 = vadd.f32 %v4841_v15, %v4782_v29  ;;  %v1623_v31 = vadd.f32 %v4871_v60, %v4815_v6 }
 0x343   : > { %v3062_v12 = vpop.eup %3061  ;;  %2194 = vmatmul.mubr.bf16.gmra.mrb[36].mxu1 %v1947_v50  ;;  %v1810_v3 = vadd.f32 1.0, %v3060_v28  ;;  %v1366_v58 = vmul.f32 0.5, %v4787_v37  ;;  %v1368_v42 = vmul.f32 0.5, %v4826_v54  ;;  %3067 = vtanh.f32 %v1686_v9 }
 0x344   : > { %v1812_v16 = vadd.f32 1.0, %v3062_v12  ;;  %v1510_v32 = vmul.f32 %v1446_v39, %v4986_v7  ;;  %3069 = vtanh.f32 %v1688_v2  ;;  %v1685_v41 = vmul.f32 0.7978846, %v1621_v61 }
 0x345   : > { %v3064_v45 = vpop.eup %3063  ;;  %v1572_v63 = vmul.f32 %v1508_v17, %v4975_v40  ;;  %v5025_v15 = vmul.f32 %v1509_v59, %v4980_v33  ;;  %v1447_v60 = vmul.f32 0.044715, %v5011_v10  ;;  %v1687_v46 = vmul.f32 0.7978846, %v1623_v31 }
 0x346   : > { %v3066_v25 = vpop.eup %3065  ;;  %v1874_v18 = vmul.f32 %v1810_v3, %v1362_v52  ;;  %v1876_v37 = vmul.f32 %v1812_v16, %v1364_v38  ;;  %v1809_v53 = vadd.f32 1.0, %v3064_v45  ;;  %3071 = vtanh.f32 %v1685_v41 }
 0x347   : > { %v1811_v54 = vadd.f32 1.0, %v3066_v25  ;;  %3073 = vtanh.f32 %v1687_v46  ;;  %v5030_v8 = vadd.f32 %v4948_v47, %v4415_v13  ;;  %v1626_v24 = vadd.f32 %v4896_v51, %v4838_v21 }
 0x348   : > { %v1950_v35 = vpack.c.bf16 %v1876_v37, %v1874_v18  ;;  %v5035_v17 = vmul.f32 %v1510_v32, %v4986_v7  ;;  %v1365_v39 = vmul.f32 0.5, %v4782_v29  ;;  %v1628_v52 = vadd.f32 %v4936_v49, %v4878_v30 }
 0x349   : > { %v1873_v38 = vmul.f32 %v1809_v53, %v1361_v34  ;;  %v1875_v23 = vmul.f32 %v1811_v54, %v1363_v20  ;;  %v1367_v50 = vmul.f32 0.5, %v4815_v6  ;;  %v1690_v59 = vmul.f32 0.7978846, %v1626_v24 }
 0x34a   : > { %2201 = vmatprep.mubr.bf16.mxu1 %v1950_v35  ;;  %v1511_v13 = vmul.f32 %v1447_v60, %v5011_v10  ;;  %v1692_v47 = vmul.f32 0.7978846, %v1628_v52  ;;  %v1625_v51 = vadd.f32 %v4886_v57, %v4829_v62  ;;  %v1627_v9 = vadd.f32 %v4913_v26, %v4859_v48 }
 0x34b   : > { %v1949_v28 = vpack.c.bf16 %v1875_v23, %v1873_v38  ;;  %v1448_v29 = vmul.f32 0.044715, %v5030_v8  ;;  %3075 = vtanh.f32 %v1690_v59  ;;  %v1630_v49 = vadd.f32 %v4951_v11, %v4893_v56 }
 0x34c   : > { %3077 = vtanh.f32 %v1692_v47  ;;  %v1689_v6 = vmul.f32 0.7978846, %v1625_v51  ;;  %v1691_v34 = vmul.f32 0.7978846, %v1627_v9  ;;  %v1632_v20 = vadd.f32 %v4991_v27, %v4927_v55 }
 0x34d   : > { %v3068_v2 = vpop.eup %3067  ;;  %2202 = vmatmul.mubr.bf16.gmra.mrb[40].mxu1 %v1949_v28  ;;  %v1370_v57 = vmul.f32 0.5, %v4838_v21  ;;  %v1372_v61 = vmul.f32 0.5, %v4878_v30  ;;  %v1694_v26 = vmul.f32 0.7978846, %v1630_v49  ;;  %v1629_v31 = vadd.f32 %v4945_v22, %v4890_v44 }
 0x34e   : > { %v3070_v12 = vpop.eup %3069  ;;  %v1814_v3 = vadd.f32 1.0, %v3068_v2  ;;  %3079 = vtanh.f32 %v1689_v6  ;;  %v1696_v11 = vmul.f32 0.7978846, %v1632_v20  ;;  %v1631_v16 = vadd.f32 %v4961_v5, %v4906_v19 }
 0x34f   : > { %v1816_v32 = vadd.f32 1.0, %v3070_v12  ;;  %v1512_v27 = vmul.f32 %v1448_v29, %v5030_v8  ;;  %3081 = vtanh.f32 %v1691_v34  ;;  %v1693_v41 = vmul.f32 0.7978846, %v1629_v31 }
 0x350   : > { %v3072_v45 = vpop.eup %3071  ;;  %v1878_v21 = vmul.f32 %v1814_v3, %v1366_v58  ;;  %v1575_v30 = vmul.f32 %v1511_v13, %v5011_v10  ;;  %3083 = vtanh.f32 %v1694_v26  ;;  %v1695_v60 = vmul.f32 0.7978846, %v1631_v16 }
 0x351   : > { %v3074_v46 = vpop.eup %3073  ;;  %v1880_v22 = vmul.f32 %v1816_v32, %v1368_v42  ;;  %v1813_v25 = vadd.f32 1.0, %v3072_v45  ;;  %3085 = vtanh.f32 %v1696_v11  ;;  %v1634_v18 = vadd.f32 %v4997_v43, %v4940_v0 }
 0x352   : > { %v1815_v37 = vadd.f32 1.0, %v3074_v46  ;;  %v1369_v5 = vmul.f32 0.5, %v4829_v62  ;;  %3087 = vtanh.f32 %v1693_v41  ;;  %v1636_v53 = vadd.f32 %v1572_v63, %v4975_v40 }
 0x353   : > { %v1952_v54 = vpack.c.bf16 %v1880_v22, %v1878_v21  ;;  %v1576_v58 = vmul.f32 %v1512_v27, %v5030_v8  ;;  %3089 = vtanh.f32 %v1695_v60  ;;  %v1698_v24 = vmul.f32 0.7978846, %v1634_v18 }
 0x354   : > { %v1877_v35 = vmul.f32 %v1813_v25, %v1365_v39  ;;  %v1879_v52 = vmul.f32 %v1815_v37, %v1367_v50  ;;  %v1700_v38 = vmul.f32 0.7978846, %v1636_v53  ;;  %v1633_v42 = vadd.f32 %v4994_v36, %v4932_v14 }
 0x355   : > { %v3076_v23 = vpop.eup %3075  ;;  %2209 = vmatprep.mubr.bf16.mxu1 %v1952_v54  ;;  %v1371_v43 = vmul.f32 0.5, %v4859_v48  ;;  %v1374_v62 = vmul.f32 0.5, %v4893_v56  ;;  %3091 = vtanh.f32 %v1698_v24  ;;  %v1635_v63 = vadd.f32 %v5014_v1, %v4965_v4 }
 0x356   : > { %v3078_v59 = vpop.eup %3077  ;;  %v1951_v13 = vpack.c.bf16 %v1879_v52, %v1877_v35  ;;  %v1818_v47 = vadd.f32 1.0, %v3076_v23  ;;  %3093 = vtanh.f32 %v1700_v38  ;;  %v1697_v39 = vmul.f32 0.7978846, %v1633_v42 }
 0x357   : > { %v1820_v50 = vadd.f32 1.0, %v3078_v59  ;;  %v1699_v51 = vmul.f32 0.7978846, %v1635_v63  ;;  %v1638_v36 = vadd.f32 %v5035_v17, %v4986_v7  ;;  %v1640_v9 = vadd.f32 %v1576_v58, %v5030_v8 }
 0x358   : > { %v3080_v28 = vpop.eup %3079  ;;  %2210 = vmatmul.mubr.bf16.gmra.mrb[44].mxu1 %v1951_v13  ;;  %v1882_v48 = vmul.f32 %v1818_v47, %v1370_v57  ;;  %v1376_v56 = vmul.f32 0.5, %v4927_v55  ;;  %v1373_v29 = vmul.f32 0.5, %v4890_v44  ;;  %3095 = vtanh.f32 %v1697_v39 }
 0x359   : > { %v3082_v1 = vpop.eup %3081  ;;  %v1884_v49 = vmul.f32 %v1820_v50, %v1372_v61  ;;  %v1817_v6 = vadd.f32 1.0, %v3080_v28  ;;  %3097 = vtanh.f32 %v1699_v51  ;;  %v1702_v34 = vmul.f32 0.7978846, %v1638_v36 }
 0x35a   : > { %v3084_v20 = vpop.eup %3083  ;;  %v1819_v2 = vadd.f32 1.0, %v3082_v1  ;;  %v1704_v26 = vmul.f32 0.7978846, %v1640_v9  ;;  %v1637_v17 = vadd.f32 %v5025_v15, %v4980_v33  ;;  %v1639_v31 = vadd.f32 %v1575_v30, %v5011_v10 }
 0x35b   : > { %v3086_v12 = vpop.eup %3085  ;;  %v1954_v57 = vpack.c.bf16 %v1884_v49, %v1882_v48  ;;  %v1881_v3 = vmul.f32 %v1817_v6, %v1369_v5  ;;  %v1822_v55 = vadd.f32 1.0, %v3084_v20  ;;  %3099 = vtanh.f32 %v1702_v34  ;;  %v1897_v20 = vld [vmem:[#allocation3] sm:$0xff] }
 0x35c   : > { %v3088_v44 = vpop.eup %3087  ;;  %v1883_v11 = vmul.f32 %v1819_v2, %v1371_v43  ;;  %v1824_v16 = vadd.f32 1.0, %v3086_v12  ;;  %3101 = vtanh.f32 %v1704_v26  ;;  %v1701_v61 = vmul.f32 0.7978846, %v1637_v17 }
 0x35d   : > { %v3090_v32 = vpop.eup %3089  ;;  %2217 = vmatprep.mubr.bf16.mxu1 %v1954_v57  ;;  %v1886_v27 = vmul.f32 %v1822_v55, %v1374_v62  ;;  %v1375_v41 = vmul.f32 0.5, %v4906_v19  ;;  %v1821_v45 = vadd.f32 1.0, %v3088_v44  ;;  %v1703_v21 = vmul.f32 0.7978846, %v1639_v31  ;;  %v1898_v31 = vld [vmem:[#allocation3 + $0x8] sm:$0xff]  ;;  %v1899_v55 = vld [vmem:[#allocation3 + $0x10] sm:$0xff] }
 0x35e   : > { %v1953_v15 = vpack.c.bf16 %v1883_v11, %v1881_v3  ;;  %v1888_v60 = vmul.f32 %v1824_v16, %v1376_v56  ;;  %v1823_v30 = vadd.f32 1.0, %v3090_v32  ;;  %3103 = vtanh.f32 %v1701_v61  ;;  %v1900_v61 = vld [vmem:[#allocation3 + $0x18] sm:$0xff] }
 0x35f   : > { %v3092_v46 = vpop.eup %3091  ;;  %3105 = vtanh.f32 %v1703_v21  ;;  %v1885_v18 = vmul.f32 %v1821_v45, %v1373_v29  ;;  %v1378_v53 = vmul.f32 0.5, %v4940_v0  ;;  %v1380_v54 = vmul.f32 0.5, %v4975_v40 }
 0x360   : > { %v3094_v22 = vpop.eup %3093  ;;  %2218 = vmatmul.mubr.bf16.gmra.mrb[48].mxu1 %v1953_v15  ;;  %v1956_v25 = vpack.c.bf16 %v1888_v60, %v1886_v27  ;;  %v1887_v37 = vmul.f32 %v1823_v30, %v1375_v41  ;;  %v1826_v5 = vadd.f32 1.0, %v3092_v46  ;;  %v1377_v23 = vmul.f32 0.5, %v4932_v14  ;;  %v1901_v15 = vld [vmem:[#allocation3 + $0x20] sm:$0xff] }
 0x361   : > { %v1828_v58 = vadd.f32 1.0, %v3094_v22  ;;  %v1379_v43 = vmul.f32 0.5, %v4965_v4  ;;  %v1382_v40 = vmul.f32 0.5, %v4986_v7  ;;  %v1384_v50 = vmul.f32 0.5, %v5030_v8  ;;  %v1902_v22 = vld [vmem:[#allocation3 + $0x28] sm:$0xff] }
 0x362   : > { %v3096_v19 = vpop.eup %3095  ;;  %2225 = vmatprep.mubr.bf16.mxu1 %v1956_v25  ;;  %v1955_v24 = vpack.c.bf16 %v1887_v37, %v1885_v18  ;;  %v1890_v52 = vmul.f32 %v1826_v5, %v1378_v53  ;;  %v1381_v56 = vmul.f32 0.5, %v4980_v33  ;;  %v1383_v29 = vmul.f32 0.5, %v5011_v10 }
 0x363   : > { %v3098_v35 = vpop.eup %3097  ;;  %v1892_v38 = vmul.f32 %v1828_v58, %v1380_v54  ;;  %v1825_v42 = vadd.f32 1.0, %v3096_v19  ;;  %v1903_v54 = vld [vmem:[#allocation3 + $0x30] sm:$0xff] }
 0x364   : > { %v1827_v62 = vadd.f32 1.0, %v3098_v35  ;;  %v1904_v35 = vld [vmem:[#allocation3 + $0x38] sm:$0xff] }
 0x365   : > { %v3100_v63 = vpop.eup %3099  ;;  %v1958_v59 = vpack.c.bf16 %v1892_v38, %v1890_v52  ;;  %v1889_v47 = vmul.f32 %v1825_v42, %v1377_v23 }
 0x366   : > { %v3102_v13 = vpop.eup %3101  ;;  %v1891_v0 = vmul.f32 %v1827_v62, %v1379_v43  ;;  %v1830_v39 = vadd.f32 1.0, %v3100_v63  ;;  %v1905_v62 = vld [vmem:[#allocation3 + $0x40] sm:$0xff] }
 0x367   : > { %v1832_v51 = vadd.f32 1.0, %v3102_v13 }
 0x368   : > { %v3104_v36 = vpop.eup %3103  ;;  %2226 = vmatmul.mubr.bf16.gmra.mrb[52].mxu1 %v1955_v24  ;;  %v1957_v9 = vpack.c.bf16 %v1891_v0, %v1889_v47  ;;  %v1894_v14 = vmul.f32 %v1830_v39, %v1382_v40  ;;  %v1906_v47 = vld [vmem:[#allocation3 + $0x48] sm:$0xff] }
 0x369   : > { %v3106_v28 = vpop.eup %3105  ;;  %2233 = vmatprep.mubr.bf16.mxu1 %v1958_v59  ;;  %v1896_v48 = vmul.f32 %v1832_v51, %v1384_v50  ;;  %v1829_v4 = vadd.f32 1.0, %v3104_v36  ;;  %v1907_v36 = vld [vmem:[#allocation3 + $0x50] sm:$0xff] }
 0x36a   : > { %v1831_v1 = vadd.f32 1.0, %v3106_v28 }
 0x36b   : > { %v1960_v49 = vpack.c.bf16 %v1896_v48, %v1894_v14  ;;  %v1893_v6 = vmul.f32 %v1829_v4, %v1381_v56  ;;  %v1908_v48 = vld [vmem:[#allocation3 + $0x58] sm:$0xff] }
 0x36c   : > { %v1895_v34 = vmul.f32 %v1831_v1, %v1383_v29 }
 0x36e   : > { %v1959_v7 = vpack.c.bf16 %v1895_v34, %v1893_v6  ;;  %v1909_v6 = vld [vmem:[#allocation3 + $0x60] sm:$0xff] }
 0x370   : > { %2234 = vmatmul.mubr.bf16.gmra.mrb[56].mxu1 %v1957_v9 }
 0x371   : > { %2241 = vmatprep.mubr.bf16.mxu1 %v1960_v49 }
 0x378   : > { %2242 = vmatmul.mubr.bf16.gmra.mrb[60].mxu1 %v1959_v7 }
 0x3af   : > { %v2652_v8 = vpop.f32.mrb[0].mxu1 }
 0x3b0   : > { %v2653_v2 = vpop.f32.mrb[1].mxu1 }
 0x3b1   : > { %v2654_v26 = vadd.f32 %v2653_v2, %v2652_v8  ;;  %v2655_v17 = vpop.f32.mrb[2].mxu1 }
 0x3b2   : > { %v2656_v12 = vpop.f32.mrb[3].mxu1 }
 0x3b3   : > { %v2250_v57 = vadd.f32 %v2654_v26, %v1897_v20  ;;  %v2657_v3 = vadd.f32 %v2656_v12, %v2655_v17  ;;  %v1910_v20 = vld [vmem:[#allocation3 + $0x68] sm:$0xff] }
 0x3b5   : > { %2282 = vst [vmem:[#allocation3] sm:$0xff] %v2250_v57  ;;  %v2251_v33 = vadd.f32 %v2657_v3, %v1898_v31  ;;  %v1911_v57 = vld [vmem:[#allocation3 + $0x70] sm:$0xff] }
 0x3b7   : > { %2283 = vst [vmem:[#allocation3 + $0x8] sm:$0xff] %v2251_v33  ;;  %v2658_v10 = vpop.f32.mrb[4].mxu1 }
 0x3b8   : > { %v2659_v44 = vpop.f32.mrb[5].mxu1 }
 0x3b9   : > { %v2660_v11 = vadd.f32 %v2659_v44, %v2658_v10  ;;  %v2661_v16 = vpop.f32.mrb[6].mxu1 }
 0x3ba   : > { %v2662_v32 = vpop.f32.mrb[7].mxu1 }
 0x3bb   : > { %v2252_v27 = vadd.f32 %v2660_v11, %v1899_v55  ;;  %v2663_v41 = vadd.f32 %v2662_v32, %v2661_v16  ;;  %v1912_v55 = vld [vmem:[#allocation3 + $0x78] sm:$0xff] }
 0x3bd   : > { %2284 = vst [vmem:[#allocation3 + $0x10] sm:$0xff] %v2252_v27  ;;  %v2253_v45 = vadd.f32 %v2663_v41, %v1900_v61  ;;  %v1913_v27 = vld [vmem:[#allocation3 + $0x80] sm:$0xff] }
 0x3bf   : > { %2285 = vst [vmem:[#allocation3 + $0x18] sm:$0xff] %v2253_v45 }
 0x3c6   : > { %v2664_v21 = vpop.f32.mrb[8].mxu1 }
 0x3c7   : > { %v2665_v60 = vpop.f32.mrb[9].mxu1 }
 0x3c8   : > { %v2666_v30 = vadd.f32 %v2665_v60, %v2664_v21  ;;  %v2667_v46 = vpop.f32.mrb[10].mxu1 }
 0x3c9   : > { %v2668_v25 = vpop.f32.mrb[11].mxu1 }
 0x3ca   : > { %v2254_v18 = vadd.f32 %v2666_v30, %v1901_v15  ;;  %v2669_v37 = vadd.f32 %v2668_v25, %v2667_v46  ;;  %v1914_v15 = vld [vmem:[#allocation3 + $0x88] sm:$0xff] }
 0x3cc   : > { %2286 = vst [vmem:[#allocation3 + $0x20] sm:$0xff] %v2254_v18  ;;  %v2255_v5 = vadd.f32 %v2669_v37, %v1902_v22  ;;  %v1915_v18 = vld [vmem:[#allocation3 + $0x90] sm:$0xff] }
 0x3ce   : > { %2287 = vst [vmem:[#allocation3 + $0x28] sm:$0xff] %v2255_v5 }
 0x3d2   : > { %v2670_v53 = vpop.f32.mrb[12].mxu1 }
 0x3d3   : > { %v2671_v58 = vpop.f32.mrb[13].mxu1 }
 0x3d4   : > { %v2672_v19 = vadd.f32 %v2671_v58, %v2670_v53  ;;  %v2673_v24 = vpop.f32.mrb[14].mxu1 }
 0x3d5   : > { %v2674_v52 = vpop.f32.mrb[15].mxu1 }
 0x3d6   : > { %v2256_v38 = vadd.f32 %v2672_v19, %v1903_v54  ;;  %v2675_v42 = vadd.f32 %v2674_v52, %v2673_v24  ;;  %v1916_v54 = vld [vmem:[#allocation3 + $0x98] sm:$0xff] }
 0x3d8   : > { %2288 = vst [vmem:[#allocation3 + $0x30] sm:$0xff] %v2256_v38  ;;  %v2257_v23 = vadd.f32 %v2675_v42, %v1904_v35  ;;  %v1917_v38 = vld [vmem:[#allocation3 + $0xa0] sm:$0xff] }
 0x3da   : > { %2289 = vst [vmem:[#allocation3 + $0x38] sm:$0xff] %v2257_v23 }
 0x3df   : > { %v2676_v43 = vpop.f32.mrb[16].mxu1 }
 0x3e0   : > { %v2677_v63 = vpop.f32.mrb[17].mxu1 }
 0x3e1   : > { %v2678_v59 = vadd.f32 %v2677_v63, %v2676_v43  ;;  %v2679_v13 = vpop.f32.mrb[18].mxu1 }
 0x3e2   : > { %v2680_v0 = vpop.f32.mrb[19].mxu1 }
 0x3e3   : > { %v2258_v39 = vadd.f32 %v2678_v59, %v1905_v62  ;;  %v2681_v40 = vadd.f32 %v2680_v0, %v2679_v13  ;;  %v1918_v62 = vld [vmem:[#allocation3 + $0xa8] sm:$0xff] }
 0x3e5   : > { %2290 = vst [vmem:[#allocation3 + $0x40] sm:$0xff] %v2258_v39  ;;  %v2259_v50 = vadd.f32 %v2681_v40, %v1906_v47  ;;  %v1919_v39 = vld [vmem:[#allocation3 + $0xb0] sm:$0xff] }
 0x3e7   : > { %2291 = vst [vmem:[#allocation3 + $0x48] sm:$0xff] %v2259_v50 }
 0x3ec   : > { %v2682_v51 = vpop.f32.mrb[20].mxu1 }
 0x3ed   : > { %v2683_v9 = vpop.f32.mrb[21].mxu1 }
 0x3ee   : > { %v2684_v28 = vadd.f32 %v2683_v9, %v2682_v51  ;;  %v2685_v14 = vpop.f32.mrb[22].mxu1 }
 0x3ef   : > { %v2686_v4 = vpop.f32.mrb[23].mxu1 }
 0x3f0   : > { %v2260_v56 = vadd.f32 %v2684_v28, %v1907_v36  ;;  %v2687_v29 = vadd.f32 %v2686_v4, %v2685_v14  ;;  %v1920_v36 = vld [vmem:[#allocation3 + $0xb8] sm:$0xff] }
 0x3f2   : > { %2292 = vst [vmem:[#allocation3 + $0x50] sm:$0xff] %v2260_v56  ;;  %v2261_v1 = vadd.f32 %v2687_v29, %v1908_v48  ;;  %v1921_v56 = vld [vmem:[#allocation3 + $0xc0] sm:$0xff] }
 0x3f4   : > { %2293 = vst [vmem:[#allocation3 + $0x58] sm:$0xff] %v2261_v1 }
 0x3f8   : > { %v2688_v49 = vpop.f32.mrb[24].mxu1 }
 0x3f9   : > { %v2689_v34 = vpop.f32.mrb[25].mxu1 }
 0x3fa   : > { %v2690_v7 = vadd.f32 %v2689_v34, %v2688_v49  ;;  %v2691_v8 = vpop.f32.mrb[26].mxu1 }
 0x3fb   : > { %v2692_v2 = vpop.f32.mrb[27].mxu1 }
 0x3fc   : > { %v2262_v26 = vadd.f32 %v2690_v7, %v1909_v6  ;;  %v2693_v17 = vadd.f32 %v2692_v2, %v2691_v8  ;;  %v1922_v6 = vld [vmem:[#allocation3 + $0xc8] sm:$0xff] }
 0x3fe   : > { %2294 = vst [vmem:[#allocation3 + $0x60] sm:$0xff] %v2262_v26  ;;  %v2263_v31 = vadd.f32 %v2693_v17, %v1910_v20  ;;  %v1923_v26 = vld [vmem:[#allocation3 + $0xd0] sm:$0xff] }
 0x400   : > { %2295 = vst [vmem:[#allocation3 + $0x68] sm:$0xff] %v2263_v31 }
 0x402   : > { %v2694_v12 = vpop.f32.mrb[28].mxu1 }
 0x403   : > { %v2695_v3 = vpop.f32.mrb[29].mxu1 }
 0x404   : > { %v2696_v33 = vadd.f32 %v2695_v3, %v2694_v12  ;;  %v2697_v10 = vpop.f32.mrb[30].mxu1 }
 0x405   : > { %v2698_v44 = vpop.f32.mrb[31].mxu1 }
 0x406   : > { %v2264_v11 = vadd.f32 %v2696_v33, %v1911_v57  ;;  %v2699_v16 = vadd.f32 %v2698_v44, %v2697_v10  ;;  %v1924_v57 = vld [vmem:[#allocation3 + $0xd8] sm:$0xff] }
 0x408   : > { %2296 = vst [vmem:[#allocation3 + $0x70] sm:$0xff] %v2264_v11  ;;  %v2265_v61 = vadd.f32 %v2699_v16, %v1912_v55  ;;  %v1925_v11 = vld [vmem:[#allocation3 + $0xe0] sm:$0xff] }
 0x40a   : > { %2297 = vst [vmem:[#allocation3 + $0x78] sm:$0xff] %v2265_v61 }
 0x40c   : > { %v2700_v32 = vpop.f32.mrb[32].mxu1 }
 0x40d   : > { %v2701_v41 = vpop.f32.mrb[33].mxu1 }
 0x40e   : > { %v2702_v45 = vadd.f32 %v2701_v41, %v2700_v32  ;;  %v2703_v21 = vpop.f32.mrb[34].mxu1 }
 0x40f   : > { %v2704_v60 = vpop.f32.mrb[35].mxu1 }
 0x410   : > { %v2266_v30 = vadd.f32 %v2702_v45, %v1913_v27  ;;  %v2705_v46 = vadd.f32 %v2704_v60, %v2703_v21  ;;  %v1926_v27 = vld [vmem:[#allocation3 + $0xe8] sm:$0xff] }
 0x412   : > { %2298 = vst [vmem:[#allocation3 + $0x80] sm:$0xff] %v2266_v30  ;;  %v2267_v22 = vadd.f32 %v2705_v46, %v1914_v15  ;;  %v1927_v30 = vld [vmem:[#allocation3 + $0xf0] sm:$0xff] }
 0x414   : > { %2299 = vst [vmem:[#allocation3 + $0x88] sm:$0xff] %v2267_v22 }
 0x416   : > { %v2706_v25 = vpop.f32.mrb[36].mxu1 }
 0x417   : > { %v2707_v37 = vpop.f32.mrb[37].mxu1 }
 0x418   : > { %v2708_v5 = vadd.f32 %v2707_v37, %v2706_v25  ;;  %v2709_v53 = vpop.f32.mrb[38].mxu1 }
 0x419   : > { %v2710_v58 = vpop.f32.mrb[39].mxu1 }
 0x41a   : > { %v2268_v19 = vadd.f32 %v2708_v5, %v1915_v18  ;;  %v2711_v24 = vadd.f32 %v2710_v58, %v2709_v53  ;;  %v1928_v18 = vld [vmem:[#allocation3 + $0xf8] sm:$0xff]  ;;  %v2318_v58 = vld [vmem:[#allocation3] sm:$0xff] (!%p2625_p2) }
 0x41c   : > { %2300 = vst [vmem:[#allocation3 + $0x90] sm:$0xff] %v2268_v19  ;;  %v2269_v35 = vadd.f32 %v2711_v24, %v1916_v54  ;;  %v5091_v19 = vld [vmem:[%s5386_s16] ss:$0 sm:$0xff] (!%p2625_p2)  ;;  %v2319_v24 = vld [vmem:[#allocation3 + $0x8] sm:$0xff] (!%p2625_p2) }
 0x41e   : > { %2301 = vst [vmem:[#allocation3 + $0x98] sm:$0xff] %v2269_v35  ;;  %v2357_v35 = vadd.f32 (!%p2625_p2), %v5091_v19, %v2318_v58 }
 0x420   : > { %v2712_v52 = vpop.f32.mrb[40].mxu1  ;;  %2389 = vst [vmem:[%s3677_s1] sm:$0xff] (!%p2625_p2), %v2357_v35 }
 0x421   : > { %v2713_v42 = vpop.f32.mrb[41].mxu1 }
 0x422   : > { %v2714_v23 = vadd.f32 %v2713_v42, %v2712_v52  ;;  %v2715_v43 = vpop.f32.mrb[42].mxu1  ;;  %v2358_v52 = vadd.f32 (!%p2625_p2), %v5091_v19, %v2319_v24  ;;  %v2321_v42 = vld [vmem:[#allocation3 + $0x18] sm:$0xff] (!%p2625_p2) }
 0x423   : > { %v2716_v63 = vpop.f32.mrb[43].mxu1 }
 0x424   : > { %v2270_v59 = vadd.f32 %v2714_v23, %v1917_v38  ;;  %v2717_v13 = vadd.f32 %v2716_v63, %v2715_v43  ;;  %v2320_v38 = vld [vmem:[#allocation3 + $0x10] sm:$0xff] (!%p2625_p2)  ;;  %v2322_v23 = vld [vmem:[#allocation3 + $0x20] sm:$0xff] (!%p2625_p2)  ;;  %2390 = vst [vmem:[%s3677_s1 + $0x8] sm:$0xff] (!%p2625_p2), %v2358_v52 }
 0x425   : > { %v2359_v43 = vadd.f32 (!%p2625_p2), %v5091_v19, %v2320_v38  ;;  %v2361_v63 = vadd.f32 (!%p2625_p2), %v5091_v19, %v2322_v23 }
 0x426   : > { %2302 = vst [vmem:[#allocation3 + $0xa0] sm:$0xff] %v2270_v59  ;;  %v2271_v47 = vadd.f32 %v2717_v13, %v1918_v62  ;;  %v2360_v62 = vadd.f32 (!%p2625_p2), %v5091_v19, %v2321_v42  ;;  %v2323_v59 = vld [vmem:[#allocation3 + $0x28] sm:$0xff] (!%p2625_p2)  ;;  %v2324_v13 = vld [vmem:[#allocation3 + $0x30] sm:$0xff] (!%p2625_p2) }
 0x427   : > { %2391 = vst [vmem:[%s3677_s1 + $0x10] sm:$0xff] (!%p2625_p2), %v2359_v43  ;;  %2393 = vst [vmem:[%s3677_s1 + $0x20] sm:$0xff] (!%p2625_p2), %v2361_v63 }
 0x428   : > { %2303 = vst [vmem:[#allocation3 + $0xa8] sm:$0xff] %v2271_v47  ;;  %v2325_v47 = vld [vmem:[#allocation3 + $0x38] sm:$0xff] (!%p2625_p2)  ;;  %2392 = vst [vmem:[%s3677_s1 + $0x18] sm:$0xff] (!%p2625_p2), %v2360_v62 }
 0x42b   : > { %v2718_v0 = vpop.f32.mrb[44].mxu1 }
 0x42c   : > { %v2719_v40 = vpop.f32.mrb[45].mxu1 }
 0x42d   : > { %v2720_v50 = vadd.f32 %v2719_v40, %v2718_v0  ;;  %v2721_v51 = vpop.f32.mrb[46].mxu1  ;;  %v2362_v0 = vadd.f32 (!%p2625_p2), %v5091_v19, %v2323_v59  ;;  %v2364_v40 = vadd.f32 (!%p2625_p2), %v5091_v19, %v2325_v47 }
 0x42e   : > { %v2722_v9 = vpop.f32.mrb[47].mxu1 }
 0x42f   : > { %v2272_v28 = vadd.f32 %v2720_v50, %v1919_v39  ;;  %v2723_v14 = vadd.f32 %v2722_v9, %v2721_v51  ;;  %v2363_v39 = vadd.f32 (!%p2625_p2), %v5091_v19, %v2324_v13  ;;  %v2326_v50 = vld [vmem:[#allocation3 + $0x40] sm:$0xff] (!%p2625_p2)  ;;  %v2327_v51 = vld [vmem:[#allocation3 + $0x48] sm:$0xff] (!%p2625_p2)  ;;  %2394 = vst [vmem:[%s3677_s1 + $0x28] sm:$0xff] (!%p2625_p2), %v2362_v0  ;;  %2396 = vst [vmem:[%s3677_s1 + $0x38] sm:$0xff] (!%p2625_p2), %v2364_v40 }
 0x430   : > { %v2365_v9 = vadd.f32 (!%p2625_p2), %v5091_v19, %v2326_v50 }
 0x431   : > { %2304 = vst [vmem:[#allocation3 + $0xb0] sm:$0xff] %v2272_v28  ;;  %v2273_v48 = vadd.f32 %v2723_v14, %v1920_v36  ;;  %v2328_v36 = vld [vmem:[#allocation3 + $0x50] sm:$0xff] (!%p2625_p2)  ;;  %v2366_v28 = vadd.f32 (!%p2625_p2), %v5091_v19, %v2327_v51  ;;  %2395 = vst [vmem:[%s3677_s1 + $0x30] sm:$0xff] (!%p2625_p2), %v2363_v39 }
 0x432   : > { %v2367_v14 = vadd.f32 (!%p2625_p2), %v5091_v19, %v2328_v36  ;;  %2397 = vst [vmem:[%s3677_s1 + $0x40] sm:$0xff] (!%p2625_p2), %v2365_v9 }
 0x433   : > { %2305 = vst [vmem:[#allocation3 + $0xb8] sm:$0xff] %v2273_v48  ;;  %v2724_v4 = vpop.f32.mrb[48].mxu1  ;;  %v2329_v48 = vld [vmem:[#allocation3 + $0x58] sm:$0xff] (!%p2625_p2)  ;;  %2398 = vst [vmem:[%s3677_s1 + $0x48] sm:$0xff] (!%p2625_p2), %v2366_v28 }
 0x434   : > { %v2725_v29 = vpop.f32.mrb[49].mxu1  ;;  %2399 = vst [vmem:[%s3677_s1 + $0x50] sm:$0xff] (!%p2625_p2), %v2367_v14 }
 0x435   : > { %v2726_v1 = vadd.f32 %v2725_v29, %v2724_v4  ;;  %v2727_v49 = vpop.f32.mrb[50].mxu1  ;;  %v2330_v4 = vld [vmem:[#allocation3 + $0x60] sm:$0xff] (!%p2625_p2)  ;;  %v2368_v29 = vadd.f32 (!%p2625_p2), %v5091_v19, %v2329_v48 }
 0x436   : > { %v2728_v34 = vpop.f32.mrb[51].mxu1 }
 0x437   : > { %v2274_v7 = vadd.f32 %v2726_v1, %v1921_v56  ;;  %v2729_v8 = vadd.f32 %v2728_v34, %v2727_v49  ;;  %v2331_v56 = vld [vmem:[#allocation3 + $0x68] sm:$0xff] (!%p2625_p2)  ;;  %v2369_v1 = vadd.f32 (!%p2625_p2), %v5091_v19, %v2330_v4  ;;  %v2333_v34 = vld [vmem:[#allocation3 + $0x78] sm:$0xff] (!%p2625_p2)  ;;  %2400 = vst [vmem:[%s3677_s1 + $0x58] sm:$0xff] (!%p2625_p2), %v2368_v29 }
 0x438   : > { %v2370_v49 = vadd.f32 (!%p2625_p2), %v5091_v19, %v2331_v56 }
 0x439   : > { %2306 = vst [vmem:[#allocation3 + $0xc0] sm:$0xff] %v2274_v7  ;;  %v2275_v20 = vadd.f32 %v2729_v8, %v1922_v6  ;;  %v2332_v6 = vld [vmem:[#allocation3 + $0x70] sm:$0xff] (!%p2625_p2)  ;;  %v2334_v7 = vld [vmem:[#allocation3 + $0x80] sm:$0xff] (!%p2625_p2)  ;;  %2401 = vst [vmem:[%s3677_s1 + $0x60] sm:$0xff] (!%p2625_p2), %v2369_v1 }
 0x43a   : > { %v2371_v8 = vadd.f32 (!%p2625_p2), %v5091_v19, %v2332_v6  ;;  %2402 = vst [vmem:[%s3677_s1 + $0x68] sm:$0xff] (!%p2625_p2), %v2370_v49 }
 0x43b   : > { %2307 = vst [vmem:[#allocation3 + $0xc8] sm:$0xff] %v2275_v20  ;;  %v2730_v2 = vpop.f32.mrb[52].mxu1  ;;  %v2372_v20 = vadd.f32 (!%p2625_p2), %v5091_v19, %v2333_v34 }
 0x43c   : > { %v2731_v17 = vpop.f32.mrb[53].mxu1  ;;  %2403 = vst [vmem:[%s3677_s1 + $0x70] sm:$0xff] (!%p2625_p2), %v2371_v8 }
 0x43d   : > { %v2732_v31 = vadd.f32 %v2731_v17, %v2730_v2  ;;  %v2733_v12 = vpop.f32.mrb[54].mxu1  ;;  %v2373_v2 = vadd.f32 (!%p2625_p2), %v5091_v19, %v2334_v7  ;;  %v2336_v17 = vld [vmem:[#allocation3 + $0x90] sm:$0xff] (!%p2625_p2)  ;;  %2404 = vst [vmem:[%s3677_s1 + $0x78] sm:$0xff] (!%p2625_p2), %v2372_v20 }
 0x43e   : > { %v2734_v3 = vpop.f32.mrb[55].mxu1 }
 0x43f   : > { %v2276_v33 = vadd.f32 %v2732_v31, %v1923_v26  ;;  %v2735_v10 = vadd.f32 %v2734_v3, %v2733_v12  ;;  %v2335_v26 = vld [vmem:[#allocation3 + $0x88] sm:$0xff] (!%p2625_p2)  ;;  %v2337_v31 = vld [vmem:[#allocation3 + $0x98] sm:$0xff] (!%p2625_p2)  ;;  %2405 = vst [vmem:[%s3677_s1 + $0x80] sm:$0xff] (!%p2625_p2), %v2373_v2 }
 0x440   : > { %v2374_v12 = vadd.f32 (!%p2625_p2), %v5091_v19, %v2335_v26  ;;  %v2376_v3 = vadd.f32 (!%p2625_p2), %v5091_v19, %v2337_v31 }
 0x441   : > { %2308 = vst [vmem:[#allocation3 + $0xd0] sm:$0xff] %v2276_v33  ;;  %v2277_v55 = vadd.f32 %v2735_v10, %v1924_v57  ;;  %v2375_v57 = vadd.f32 (!%p2625_p2), %v5091_v19, %v2336_v17  ;;  %v2338_v33 = vld [vmem:[#allocation3 + $0xa0] sm:$0xff] (!%p2625_p2)  ;;  %v2339_v10 = vld [vmem:[#allocation3 + $0xa8] sm:$0xff] (!%p2625_p2) }
 0x442   : > { %2406 = vst [vmem:[%s3677_s1 + $0x88] sm:$0xff] (!%p2625_p2), %v2374_v12  ;;  %2408 = vst [vmem:[%s3677_s1 + $0x98] sm:$0xff] (!%p2625_p2), %v2376_v3 }
 0x443   : > { %2309 = vst [vmem:[#allocation3 + $0xd8] sm:$0xff] %v2277_v55  ;;  %v2736_v44 = vpop.f32.mrb[56].mxu1  ;;  %v2340_v55 = vld [vmem:[#allocation3 + $0xb0] sm:$0xff] (!%p2625_p2)  ;;  %2407 = vst [vmem:[%s3677_s1 + $0x90] sm:$0xff] (!%p2625_p2), %v2375_v57 }
 0x444   : > { %v2737_v16 = vpop.f32.mrb[57].mxu1 }
 0x445   : > { %v2738_v61 = vadd.f32 %v2737_v16, %v2736_v44  ;;  %v2739_v32 = vpop.f32.mrb[58].mxu1  ;;  %v2377_v44 = vadd.f32 (!%p2625_p2), %v5091_v19, %v2338_v33  ;;  %v2379_v16 = vadd.f32 (!%p2625_p2), %v5091_v19, %v2340_v55 }
 0x446   : > { %v2740_v41 = vpop.f32.mrb[59].mxu1 }
 0x447   : > { %v2278_v45 = vadd.f32 %v2738_v61, %v1925_v11  ;;  %v2741_v21 = vadd.f32 %v2740_v41, %v2739_v32  ;;  %v2378_v11 = vadd.f32 (!%p2625_p2), %v5091_v19, %v2339_v10  ;;  %v2341_v61 = vld [vmem:[#allocation3 + $0xb8] sm:$0xff] (!%p2625_p2)  ;;  %v2342_v32 = vld [vmem:[#allocation3 + $0xc0] sm:$0xff] (!%p2625_p2)  ;;  %2409 = vst [vmem:[%s3677_s1 + $0xa0] sm:$0xff] (!%p2625_p2), %v2377_v44  ;;  %2411 = vst [vmem:[%s3677_s1 + $0xb0] sm:$0xff] (!%p2625_p2), %v2379_v16 }
 0x448   : > { %v2380_v41 = vadd.f32 (!%p2625_p2), %v5091_v19, %v2341_v61 }
 0x449   : > { %2310 = vst [vmem:[#allocation3 + $0xe0] sm:$0xff] %v2278_v45  ;;  %v2279_v15 = vadd.f32 %v2741_v21, %v1926_v27  ;;  %v2343_v27 = vld [vmem:[#allocation3 + $0xc8] sm:$0xff] (!%p2625_p2)  ;;  %v2381_v45 = vadd.f32 (!%p2625_p2), %v5091_v19, %v2342_v32  ;;  %2410 = vst [vmem:[%s3677_s1 + $0xa8] sm:$0xff] (!%p2625_p2), %v2378_v11 }
 0x44a   : > { %v2382_v21 = vadd.f32 (!%p2625_p2), %v5091_v19, %v2343_v27  ;;  %2412 = vst [vmem:[%s3677_s1 + $0xb8] sm:$0xff] (!%p2625_p2), %v2380_v41 }
 0x44b   : > { %2311 = vst [vmem:[#allocation3 + $0xe8] sm:$0xff] %v2279_v15  ;;  %v2742_v60 = vpop.f32.mrb[60].mxu1  ;;  %v2344_v15 = vld [vmem:[#allocation3 + $0xd0] sm:$0xff] (!%p2625_p2)  ;;  %2413 = vst [vmem:[%s3677_s1 + $0xc0] sm:$0xff] (!%p2625_p2), %v2381_v45 }
 0x44c   : > { %v2743_v46 = vpop.f32.mrb[61].mxu1  ;;  %2414 = vst [vmem:[%s3677_s1 + $0xc8] sm:$0xff] (!%p2625_p2), %v2382_v21 }
 0x44d   : > { %v2744_v22 = vadd.f32 %v2743_v46, %v2742_v60  ;;  %v2745_v25 = vpop.f32.mrb[62].mxu1  ;;  %2317 = sbr.rel (%p2625_p2) target bundleno = 1118 (0x45e), region = 68  ;;  %v2345_v60 = vld [vmem:[#allocation3 + $0xd8] sm:$0xff] (!%p2625_p2)  ;;  %v2383_v46 = vadd.f32 (!%p2625_p2), %v5091_v19, %v2344_v15 }
 0x44e   : > { %v2746_v37 = vpop.f32.mrb[63].mxu1 }
 0x44f   : > { %v2280_v5 = vadd.f32 %v2744_v22, %v1927_v30  ;;  %v2747_v53 = vadd.f32 %v2746_v37, %v2745_v25  ;;  %v2384_v22 = vadd.f32 (!%p2625_p2), %v5091_v19, %v2345_v60  ;;  %2415 = vst [vmem:[%s3677_s1 + $0xd0] sm:$0xff] (!%p2625_p2), %v2383_v46 }
 0x450   : > { %v2346_v30 = vld [vmem:[#allocation3 + $0xe0] sm:$0xff] (!%p2625_p2) }
 0x451   : > { %2312 = vst [vmem:[#allocation3 + $0xf0] sm:$0xff] %v2280_v5  ;;  %v2281_v54 = vadd.f32 %v2747_v53, %v1928_v18  ;;  %v2385_v25 = vadd.f32 (!%p2625_p2), %v5091_v19, %v2346_v30  ;;  %2416 = vst [vmem:[%s3677_s1 + $0xd8] sm:$0xff] (!%p2625_p2), %v2384_v22 }
 0x452   : > { %v2347_v18 = vld [vmem:[#allocation3 + $0xe8] sm:$0xff] (!%p2625_p2) }
 0x453   : > { %2313 = vst [vmem:[#allocation3 + $0xf8] sm:$0xff] %v2281_v54  ;;  %v2386_v53 = vadd.f32 (!%p2625_p2), %v5091_v19, %v2347_v18  ;;  %2417 = vst [vmem:[%s3677_s1 + $0xe0] sm:$0xff] (!%p2625_p2), %v2385_v25 }
 0x455   : > { %2418 = vst [vmem:[%s3677_s1 + $0xe8] sm:$0xff] %v2386_v53 }
 0x458   : > { %v2348_v37 = vld [vmem:[#allocation3 + $0xf0] sm:$0xff] }
 0x459   : > { %v2387_v54 = vadd.f32 %v5091_v19, %v2348_v37 }
 0x45a   : > { %v2349_v5 = vld [vmem:[#allocation3 + $0xf8] sm:$0xff] }
 0x45b   : > { %v2388_v58 = vadd.f32 %v5091_v19, %v2349_v5  ;;  %2419 = vst [vmem:[%s3677_s1 + $0xf0] sm:$0xff] %v2387_v54 }
 0x45d   : > { %2420 = vst [vmem:[%s3677_s1 + $0xf8] sm:$0xff] %v2388_v58 }
 0x45e PF: > { %s5387_s30 = sld [smem:[#allocation16_spill]]  ;;  %s2435_s12 = sshll.u32 %s3677_s1, 4  ;;  %s5164_s12 = int_to_ptr.vmem [resolvable:$true] %s2435_s12 }
 0x45f   : > { %s5388_s13 = sld [smem:[#allocation53_spill]]  ;;  %s2422_s8 = scalar_lea.sflag [#allocation6], %s3650_s3 }
 0x460   : > { %s3197_s23 = scalar_lea.vmem %s5164_s12, 4096  ;;  %p5389_p11 = scmp.ne.s32.totalorder %s5294_s21, 0 }
 0x461   : > { %p3198_p13 = scmp.ne.s32.totalorder %s5164_s12, %s3197_s23  ;;  %s3335_s2 = smov [#allocation10]  }
 0x462   : > { %s3201_s26 = sshll.u32 %s3335_s2, 4  ;;  %s3202_s26 = int_to_ptr.vmem [resolvable:$false] %s3201_s26 }
 0x463   : > { %p3199_p6 = pnand %p3198_p13, %p5389_p11  ;;  %s3203_s24 = scalar_lea.vmem %s3202_s26, 8192 }
 0x464   : > { %s2635_s7 = sshll.u32 %s5387_s30, 12  ;;  %p3204_p1 = scmp.lt.s32.totalorder %s5164_s12, %s3202_s26 }
 0x465   : > { %s5161_s29 = scalar_lea.hbm %s5388_s13, %s2635_s7  ;;  %p3200_p5 = pneg %p3199_p6 }
 0x466   : > { %p3205_p0 = scmp.lt.s32.totalorder %s3203_s24, %s3197_s23 }
 0x468   : > { %p3206_p9 = por %p3205_p0, %p3204_p1 }
 0x46a   : > { %p3207_p12 = pnand %p3206_p9, %p3200_p5 }
 0x46c   : > { %3210 = shalt.err (!%p3207_p12)
}
 0x46d   : > { %s3211_s1 = scalar_lea.hbm %s5161_s29, 4096  ;;  %s3215_s19 = scalar_lea.hbm %s5388_s13, 8192 }
 0x46e   : > { %p3212_p3 = scmp.ne.s32.totalorder %s5161_s29, %s3211_s1  ;;  %p3216_p8 = scmp.lt.u32.totalorder %s5161_s29, %s5388_s13 }
 0x46f   : > { %p3217_p10 = scmp.lt.u32.totalorder %s3215_s19, %s3211_s1  ;;  %p3219_p13 = scmp.lt.u32.totalorder %s3211_s1, %s5161_s29 }
 0x470   : > { %p3213_p4 = pnand %p3212_p3, %p5389_p11 }
 0x471   : > { %p3218_p2 = por %p3217_p10, %p3216_p8 }
 0x472   : > { %p3214_p7 = pneg %p3213_p4 }
 0x473   : > { %p3220_p6 = por %p3219_p13, %p3218_p2 }
 0x475   : > { %p3221_p5 = pnand %p3220_p6, %p3214_p7 }
 0x477   : > { %3224 = shalt.err (!%p3221_p5)
}
 0x478   : > { %s3336_s15 = smov 128   ;;  %s3337_s16 = smov 8  }
 0x479   : > { %2754 = dma.vmem_to_hbm [thread:$0]  (%p5389_p11), %s5164_s12, 4096, %s5161_s29, %s2422_s8, %s3336_s15, %s3336_s15, %s3337_s16  }
 0x47a PF: > { %p2771_p1 = scmp.ge.s32.totalorder %s3323_s11, 2  ;;  %s2450_s30 = sand.u32 1, %s3295_s27  }
 0x47b   : > { %p5390_p0 = scmp.ne.s32.totalorder %s5296_s6, 0  ;;  %s2451_s7 = scalar_lea.sflag [#allocation6], %s2450_s30 }
 0x47d   : > { %p2767_p9 = pnand %p2771_p1, %p5390_p0 }
 0x47f   : > { %3278 = dma.done.wait (!%p2767_p9), %s2451_s7, 4096  }
 0x480   : > { %3280 = vsyncadd (!%p2767_p9), %s2451_s7, 4294963200  ;;  %s26_s11 = sadd.s32 1, %s3323_s11   ;;  %s5391_s20 = sld [smem:[#allocation14_spill]] }
 0x481   : > { %p23_p12 = scmp.ge.s32.totalorder %s26_s11, 6   ;;  %s5392_s26 = sld [smem:[#allocation19_spill]] }
 0x482   : > { %s5393_s21 = sld [smem:[#allocation15_spill]]  ;;  %s5394_s29 = sld [smem:[#allocation21_spill]] }
 0x483   : > { %s5395_s8 = sld [smem:[#allocation17_spill]]  ;;  %s5396_s3 = sld [smem:[#allocation18_spill]] }
 0x484   : > { %s5397_s10 = sld [smem:[#allocation20_spill]]  ;;  %s5398_s24 = smov %s3287_s25 }
 0x485   : > { %s5400_s27 = smov %s3299_s28  ;;  %s5402_s30 = smov %s3315_s9 }
 0x486   : > { %s5399_s25 = smov %s5391_s20  ;;  %25 = sbr.rel (!%p23_p12) target bundleno = 17 (0x11), region = 128 }
 0x488   : > { %s5401_s28 = smov %s5393_s21 }
 0x489   : > { %s5403_s9 = smov %s5396_s3 }
 0x48d   :  { %2456 = vsyncpa [#allocation5], 1 }
 0x48e   :  { %2458 = vsyncpa [#allocation5 + $0x1], 1 }
 0x48f   :  { %2459 = vsyncpa [#allocation8], 1 }
 0x490   :  { %2461 = vsyncpa [#allocation8 + $0x1], 1 }
 0x491   :  { %2462 = vsyncpa [#allocation6], 1 }
 0x492   :  { %2464 = vsyncpa [#allocation6 + $0x1], 1 }

</bundles_post_ra>
